<compile_context>
chip_gen: v5e
topology: v5e:2x2
jax: 0.10.0
libtpu: 0.0.40
codegen_flags: <defaults>
</compile_context>

<pallas_src>
import jax
import jax.numpy as jnp
from jax.experimental import pallas as pl
from jax.experimental.pallas import tpu as pltpu

# ---- module hyperparameters (match the reference module) ----
N_EMBD = 384
HIDDEN = 4 * N_EMBD          # 1536


def ffn_kernel(x_ref, w1_ref, b1_ref, w2_ref, b2_ref, o_ref):
    """One grid step processes one (row_tile, C) slab of flattened activations."""
    x = x_ref[...]                                                   # (tm, C) f32

    # Matmul 1 on the MXU: bf16 inputs, f32 accumulation.
    h = jnp.dot(x.astype(jnp.bfloat16), w1_ref[...],
                preferred_element_type=jnp.float32)                  # (tm, H) f32
    h = jnp.maximum(h + b1_ref[...], 0.0)                            # bias + ReLU (f32 VPU)

    # Matmul 2 on the MXU: bf16 inputs, f32 accumulation.
    y = jnp.dot(h.astype(jnp.bfloat16), w2_ref[...],
                preferred_element_type=jnp.float32)                  # (tm, C) f32
    o_ref[...] = (y + b2_ref[...]).astype(o_ref.dtype)
    # Dropout: inference-mode identity (see TODO at top of file).


def feedforward(x, params, *, row_tile_cap=256):
    """x: (B, T, C) float32.  params: {'w1','b1','w2','b2'} with bf16 weights.

    row_tile_cap: 256 for v6e/v7x (MXU width), use 128 on v5e.
    """
    B, T, C = x.shape
    assert C == N_EMBD
    M = B * T
    x2 = x.reshape(M, C)                     # lane-dense (rows, 384) slab

    # Fixed row-tile cap; small inputs get one tile rounded up to a multiple of 8.
    if M >= row_tile_cap:
        row_tile = row_tile_cap
    else:
        row_tile = ((M + 7) // 8) * 8
    m_pad = pl.cdiv(M, row_tile) * row_tile
    if m_pad != M:
        x2 = jnp.pad(x2, ((0, m_pad - M), (0, 0)))
    grid = (m_pad // row_tile,)

    # Weight / bias blocks never change across grid steps -> single-buffered.
    def resident(r, c):
        return pl.BlockSpec((r, c), lambda i: (0, 0),
                            pipeline_mode=pl.Buffered(1))

    weight_bytes = (C * HIDDEN + HIDDEN * C) * 2 + (HIDDEN + C) * 4   # bf16 W + f32 b
    stream_bytes = 2 * m_pad * C * 4                                  # x + out (f32)
    cost = pl.CostEstimate(
        flops=4 * m_pad * C * HIDDEN,        # two matmuls, 2*M*K*N each
        transcendentals=0,
        bytes_accessed=weight_bytes + stream_bytes,
    )

    # VMEM budget: single-buffered weights/biases + double-buffered x/out
    # streams + the (row_tile, HIDDEN) f32 intermediate, plus headroom.
    vmem_limit = int(
        weight_bytes
        + 4 * row_tile * C * 4               # 2x x-block + 2x out-block
        + 2 * row_tile * HIDDEN * 4          # h temporary + slack
    ) + (8 << 20)

    # Only shard rows across TensorCores when each core gets >= 256 rows;
    # otherwise a "parallel" split just duplicates the weight DMA per core.
    semantics = ("parallel",) if (grid[0] > 1 and row_tile >= 256) else ("arbitrary",)

    out2d = pl.pallas_call(
        ffn_kernel,
        out_shape=jax.ShapeDtypeStruct((m_pad, C), jnp.float32),
        grid_spec=pltpu.PrefetchScalarGridSpec(
            num_scalar_prefetch=0,
            grid=grid,
            in_specs=[
                pl.BlockSpec((row_tile, C), lambda i: (i, 0)),        # x rows (streamed)
                resident(C, HIDDEN),                                  # W1 (bf16, resident)
                resident(1, HIDDEN),                                  # b1
                resident(HIDDEN, C),                                  # W2 (bf16, resident)
                resident(1, C),                                       # b2
            ],
            out_specs=pl.BlockSpec((row_tile, C), lambda i: (i, 0)),
        ),
        compiler_params=pltpu.CompilerParams(
            dimension_semantics=semantics,
            vmem_limit_bytes=vmem_limit),
        cost_estimate=cost,
    )(x2, params["w1"], params["b1"], params["w2"], params["b2"])

    return out2d[:M].reshape(B, T, C)


def init_params(key):
    k1, k2 = jax.random.split(key)
    std = 0.02
    return {
        "w1": (std * jax.random.normal(k1, (N_EMBD, HIDDEN), jnp.float32)
               ).astype(jnp.bfloat16),
        "b1": 0.01 * jnp.ones((1, HIDDEN), jnp.float32),
        "w2": (std * jax.random.normal(k2, (HIDDEN, N_EMBD), jnp.float32)
               ).astype(jnp.bfloat16),
        "b2": 0.01 * jnp.ones((1, N_EMBD), jnp.float32),
    }


def reference_ffn(x, p):
    """Pure-JAX reference mirroring the PyTorch FeedFoward (eval mode), f32 math."""
    w1 = p["w1"].astype(jnp.float32)
    w2 = p["w2"].astype(jnp.float32)
    h = jnp.maximum(x @ w1 + p["b1"][0], 0.0)
    return h @ w2 + p["b2"][0]


if __name__ == "__main__":
    key = jax.random.PRNGKey(0)
    kx, kp = jax.random.split(key)

    B, T = 2, 16
    x = jax.random.normal(kx, (B, T, N_EMBD), jnp.float32)
    params = init_params(kp)

    out = feedforward(x, params)
    out = jax.block_until_ready(out)

    ref = reference_ffn(x, params)
    assert out.shape == (B, T, N_EMBD)
    # bf16 MXU inputs with f32 accumulation -> small drift vs the f32 reference.
    assert jnp.allclose(out, ref, rtol=2e-2, atol=2e-2), "mismatch vs reference"

    print("KERNEL_OK")
</pallas_src>

<mosaic_0001>
module attributes {stable_mosaic.version = 11 : i64} {
  func.func @ffn_kernel(%arg0: i32, %arg1: memref<32x384xf32, #tpu.memory_space<vmem>>, %arg2: memref<384x1536xbf16, #tpu.memory_space<vmem>>, %arg3: memref<1x1536xf32, #tpu.memory_space<vmem>>, %arg4: memref<1536x384xbf16, #tpu.memory_space<vmem>>, %arg5: memref<1x384xf32, #tpu.memory_space<vmem>>, %arg6: memref<32x384xf32, #tpu.memory_space<vmem>>) attributes {dimension_semantics = [#tpu.dimension_semantics<arbitrary>], iteration_bounds = array<i64: 1>, scalar_prefetch = 0 : i64, scratch_operands = 0 : i64, tpu.core_type = #tpu.core_type<tc>, window_params = [{transform_indices = @transform_0, window_bounds = array<i64: 32, 384>}, {pipeline_mode = #tpu.pipeline_mode<synchronous>, transform_indices = @transform_1, window_bounds = array<i64: 384, 1536>}, {pipeline_mode = #tpu.pipeline_mode<synchronous>, transform_indices = @transform_2, window_bounds = array<i64: 1, 1536>}, {pipeline_mode = #tpu.pipeline_mode<synchronous>, transform_indices = @transform_3, window_bounds = array<i64: 1536, 384>}, {pipeline_mode = #tpu.pipeline_mode<synchronous>, transform_indices = @transform_4, window_bounds = array<i64: 1, 384>}, {transform_indices = @transform_5, window_bounds = array<i64: 32, 384>}]} {
    %c0 = arith.constant 0 : index
    %c0_0 = arith.constant 0 : index
    %0 = vector.load %arg1[%c0, %c0_0] : memref<32x384xf32, #tpu.memory_space<vmem>>, vector<32x384xf32>
    %1 = arith.truncf %0 : vector<32x384xf32> to vector<32x384xbf16>
    %c0_1 = arith.constant 0 : index
    %c0_2 = arith.constant 0 : index
    %2 = vector.load %arg2[%c0_1, %c0_2] : memref<384x1536xbf16, #tpu.memory_space<vmem>>, vector<384x1536xbf16>
    %cst = arith.constant dense<0.000000e+00> : vector<32x1536xf32>
    %3 = tpu.matmul %1, %2, %cst {dimension_numbers = #tpu.dot_dimension_numbers<[1], [0], [0], [1], [0, 0, 1, 1], [], []>} : vector<32x384xbf16>, vector<384x1536xbf16>, vector<32x1536xf32> -> vector<32x1536xf32>
    %c0_3 = arith.constant 0 : index
    %c0_4 = arith.constant 0 : index
    %4 = vector.load %arg3[%c0_3, %c0_4] : memref<1x1536xf32, #tpu.memory_space<vmem>>, vector<1x1536xf32>
    %5 = vector.broadcast %4 : vector<1x1536xf32> to vector<32x1536xf32>
    %6 = arith.addf %3, %5 : vector<32x1536xf32>
    %cst_5 = arith.constant 0.000000e+00 : f32
    %7 = vector.broadcast %cst_5 : f32 to vector<32x1536xf32>
    %8 = arith.maximumf %6, %7 : vector<32x1536xf32>
    %9 = arith.truncf %8 : vector<32x1536xf32> to vector<32x1536xbf16>
    %c0_6 = arith.constant 0 : index
    %c0_7 = arith.constant 0 : index
    %10 = vector.load %arg4[%c0_6, %c0_7] : memref<1536x384xbf16, #tpu.memory_space<vmem>>, vector<1536x384xbf16>
    %cst_8 = arith.constant dense<0.000000e+00> : vector<32x384xf32>
    %11 = tpu.matmul %9, %10, %cst_8 {dimension_numbers = #tpu.dot_dimension_numbers<[1], [0], [0], [1], [0, 0, 1, 1], [], []>} : vector<32x1536xbf16>, vector<1536x384xbf16>, vector<32x384xf32> -> vector<32x384xf32>
    %c0_9 = arith.constant 0 : index
    %c0_10 = arith.constant 0 : index
    %12 = vector.load %arg5[%c0_9, %c0_10] : memref<1x384xf32, #tpu.memory_space<vmem>>, vector<1x384xf32>
    %13 = vector.broadcast %12 : vector<1x384xf32> to vector<32x384xf32>
    %14 = arith.addf %11, %13 : vector<32x384xf32>
    %c0_11 = arith.constant 0 : index
    %c0_12 = arith.constant 0 : index
    %15 = vector.load %arg6[%c0_11, %c0_12] : memref<32x384xf32, #tpu.memory_space<vmem>>, vector<32x384xf32>
    tpu.vector_store %arg6[%c0_11, %c0_12], %14 {strides = array<i32>} : memref<32x384xf32, #tpu.memory_space<vmem>>, vector<32x384xf32>,
    return
  }
  func.func @transform_0(%arg0: i32) -> (i32, i32) {
    %c0_i32 = arith.constant 0 : i32
    %c0_i32_0 = arith.constant 0 : i32
    return %arg0, %c0_i32 : i32, i32
  }
  func.func @transform_1(%arg0: i32) -> (i32, i32) {
    %c0_i32 = arith.constant 0 : i32
    %c0_i32_0 = arith.constant 0 : i32
    %c0_i32_1 = arith.constant 0 : i32
    return %c0_i32, %c0_i32_0 : i32, i32
  }
  func.func @transform_2(%arg0: i32) -> (i32, i32) {
    %c0_i32 = arith.constant 0 : i32
    %c0_i32_0 = arith.constant 0 : i32
    %c0_i32_1 = arith.constant 0 : i32
    return %c0_i32, %c0_i32_0 : i32, i32
  }
  func.func @transform_3(%arg0: i32) -> (i32, i32) {
    %c0_i32 = arith.constant 0 : i32
    %c0_i32_0 = arith.constant 0 : i32
    %c0_i32_1 = arith.constant 0 : i32
    return %c0_i32, %c0_i32_0 : i32, i32
  }
  func.func @transform_4(%arg0: i32) -> (i32, i32) {
    %c0_i32 = arith.constant 0 : i32
    %c0_i32_0 = arith.constant 0 : i32
    %c0_i32_1 = arith.constant 0 : i32
    return %c0_i32, %c0_i32_0 : i32, i32
  }
  func.func @transform_5(%arg0: i32) -> (i32, i32) {
    %c0_i32 = arith.constant 0 : i32
    %c0_i32_0 = arith.constant 0 : i32
    return %arg0, %c0_i32 : i32, i32
  }
}

</mosaic_0001>

<bundles_post_ra>
// kernel: tpu_custom_call.1
= control target key start
LH: loop header
LB: loop body
LE: loop exit
PB: predicated region body
PF: predicated region fallthrough
CT: control target
= control target key end

     0   :  { %10 = vsyncpa [#allocation3], 0  ;;  %s9010_s0 = inlined_call_operand.hbm [shape: f32[32,384], index: 0, kind: input, shape index: {}]   ;;  %s9011_s1 = inlined_call_operand.hbm [shape: bf16[384,1536], index: 1, kind: input, shape index: {}]   ;;  %s9012_s2 = inlined_call_operand.hbm [shape: f32[1,1536], index: 2, kind: input, shape index: {}]   ;;  %s9013_s3 = inlined_call_operand.hbm [shape: bf16[1536,384], index: 3, kind: input, shape index: {}]   ;;  %s9014_s4 = inlined_call_operand.hbm [shape: f32[1,384], index: 4, kind: input, shape index: {}]   ;;  %s9015_s5 = inlined_call_operand.hbm [shape: f32[32,384], index: 5, kind: output, shape index: {}]  }
   0x1   :  { %11 = vsyncpa [#allocation6], 0 }
   0x2   :  { %12 = vsyncpa [#allocation9], 0  ;;  %s31_s20 = sshll.u32 %s9011_s1, 4  ;;  %s32_s20 = int_to_ptr.hbm [resolvable:$true] %s31_s20 }
   0x3   :  { %13 = vsyncpa [#allocation4], 0  ;;  %s8315_s21 = smov [#allocation5]   ;;  %s55_s25 = sshll.u32 %s9013_s3, 4  ;;  %s56_s25 = int_to_ptr.hbm [resolvable:$true] %s55_s25 }
   0x4   :  { %s33_s22 = sshll.u32 %s8315_s21, 4  ;;  %s8316_s26 = smov 768   ;;  %s34_s22 = int_to_ptr.vmem [resolvable:$true] %s33_s22 }
   0x5   :  { %s8317_s27 = smov 48   ;;  %s8318_s28 = smov [#allocation8]  }
   0x6   :  { %39 = dma.hbm_to_vmem [thread:$0]  %s32_s20, 36864, %s34_s22, [#allocation6], %s8316_s26, %s8316_s26, %s8317_s27  }
   0x7   :  { %s57_s29 = sshll.u32 %s8318_s28, 4  ;;  %s8319_s30 = smov 192   ;;  %s58_s29 = int_to_ptr.vmem [resolvable:$true] %s57_s29 }
   0x8   :  { %s8320_s6 = smov 12   ;;  %s18_s8 = sshll.u32 %s9010_s0, 4  ;;  %s19_s8 = int_to_ptr.hbm [resolvable:$true] %s18_s8 }
   0x9   :  { %63 = dma.hbm_to_vmem [thread:$0]  %s56_s25, 36864, %s58_s29, [#allocation9], %s8319_s30, %s8319_s30, %s8320_s6  }
   0xa   :  { %s8321_s9 = smov [#allocation2]   ;;  %s45_s12 = sshll.u32 %s9012_s2, 4  ;;  %s46_s12 = int_to_ptr.hbm [resolvable:$true] %s45_s12 }
   0xb   :  { %s20_s10 = sshll.u32 %s8321_s9, 4  ;;  %s8322_s13 = smov 384   ;;  %s21_s10 = int_to_ptr.vmem [resolvable:$true] %s20_s10 }
   0xc   :  { %s8323_s14 = smov 24   ;;  %s8324_s15 = smov [#allocation7]  }
   0xd   :  { %26 = dma.hbm_to_vmem [thread:$0]  %s19_s8, 1536, %s21_s10, [#allocation3], %s8322_s13, %s8322_s13, %s8323_s14  }
   0xe   :  { %s47_s16 = sshll.u32 %s8324_s15, 4  ;;  %s69_s0 = sshll.u32 %s9014_s4, 4  ;;  %s48_s16 = int_to_ptr.vmem [resolvable:$true] %s47_s16  ;;  %s70_s0 = int_to_ptr.hbm [resolvable:$true] %s69_s0 }
   0xf   :  { %50 = dma.hbm_to_vmem [thread:$0]  %s46_s12, 192, %s48_s16, [#allocation6]  }
  0x10   :  { %s8325_s19 = smov [#allocation10]  }
  0x11   :  { %s71_s20 = sshll.u32 %s8325_s19, 4  ;;  %s72_s20 = int_to_ptr.vmem [resolvable:$true] %s71_s20 }
  0x12   :  { %74 = dma.hbm_to_vmem [thread:$0]  %s70_s0, 48, %s72_s20, [#allocation9]  }
  0x13   :  { %8307 = dma.done.wait [#allocation3], 1536  }
  0x14   :  { %8308 = vsyncadd [#allocation3], 4294965760 }
  0x15   :  { %8309 = dma.done.wait [#allocation6], 37056  }
  0x16   :  { %8310 = vsyncadd [#allocation6], 4294930240 }
  0x17   :  { %8311 = dma.done.wait [#allocation9], 36912  }
  0x18   :  { %8312 = vsyncadd [#allocation9], 4294930384  ;;  %v5608_v0 = vld [vmem:[#allocation5 + $0x2a0] sm:$0xf]  ;;  %v7664_v1 = vld [vmem:[#allocation5 + $0x2cc] sm:$0xf0] }
  0x19   :  { %v5992_v2 = vld [vmem:[#allocation5 + $0x5a0] sm:$0xf]  ;;  %v5609_v3 = vor.u32 %v7664_v1, %v5608_v0  ;;  %v7760_v4 = vld [vmem:[#allocation5 + $0x5cc] sm:$0xf0]  ;;  %v7658_v9 = vld [vmem:[#allocation5 + $0x2a4] sm:$0xf] }
  0x1a   :  { %v6376_v5 = vld [vmem:[#allocation5 + $0x8a0] sm:$0xf]  ;;  %v7856_v6 = vld [vmem:[#allocation5 + $0x8cc] sm:$0xf0]  ;;  %v5993_v7 = vor.u32 %v7760_v4, %v5992_v2  ;;  %v5610_v10 = vld [vmem:[#allocation5 + $0x2d0] sm:$0xf0] }
  0x1b   :  { %v6377_v8 = vor.u32 %v7856_v6, %v6376_v5  ;;  %v5560_v11 = vld [vmem:[#allocation5 + $0x240] sm:$0xf]  ;;  %1869 = vmatpush.bf16.msra.mxu0 %v5609_v3  ;;  %v5613_v12 = vor.u32 %v7658_v9, %v5610_v10  ;;  %v7652_v13 = vld [vmem:[#allocation5 + $0x26c] sm:$0xf0]  ;;  %v7646_v20 = vld [vmem:[#allocation5 + $0x244] sm:$0xf] }
  0x1c   :  { %v5944_v14 = vld [vmem:[#allocation5 + $0x540] sm:$0xf]  ;;  %v7748_v15 = vld [vmem:[#allocation5 + $0x56c] sm:$0xf0]  ;;  %1888 = vmatpush.bf16.msra.mxu1 %v5993_v7  ;;  %v5561_v16 = vor.u32 %v7652_v13, %v5560_v11  ;;  %v5562_v22 = vld [vmem:[#allocation5 + $0x270] sm:$0xf0] }
  0x1d   :  { %1907 = vmatpush.bf16.msra.mxu2 %v6377_v8  ;;  %v5945_v17 = vor.u32 %v7748_v15, %v5944_v14  ;;  %v6328_v18 = vld [vmem:[#allocation5 + $0x840] sm:$0xf]  ;;  %v7844_v19 = vld [vmem:[#allocation5 + $0x86c] sm:$0xf0]  ;;  %1926 = vmatpush.bf16.msra.mxu3 %v5613_v12  ;;  %v5565_v25 = vor.u32 %v7646_v20, %v5562_v22  ;;  %v7634_v31 = vld [vmem:[#allocation5 + $0x1e4] sm:$0xf] }
  0x1e   :  { %v6329_v21 = vor.u32 %v7844_v19, %v6328_v18  ;;  %v5512_v23 = vld [vmem:[#allocation5 + $0x1e0] sm:$0xf]  ;;  %v7640_v24 = vld [vmem:[#allocation5 + $0x20c] sm:$0xf0]  ;;  %v5514_v32 = vld [vmem:[#allocation5 + $0x210] sm:$0xf0] }
  0x1f   :  { %v5896_v26 = vld [vmem:[#allocation5 + $0x4e0] sm:$0xf]  ;;  %v7736_v27 = vld [vmem:[#allocation5 + $0x50c] sm:$0xf0]  ;;  %1870 = vmatpush.bf16.msra.mxu0 %v5561_v16  ;;  %v5513_v29 = vor.u32 %v7640_v24, %v5512_v23  ;;  %v5517_v38 = vor.u32 %v7634_v31, %v5514_v32  ;;  %v7622_v42 = vld [vmem:[#allocation5 + $0x184] sm:$0xf] }
  0x20   :  { %v6280_v28 = vld [vmem:[#allocation5 + $0x7e0] sm:$0xf]  ;;  %v7832_v30 = vld [vmem:[#allocation5 + $0x80c] sm:$0xf0]  ;;  %1889 = vmatpush.bf16.msra.mxu1 %v5945_v17  ;;  %v5897_v33 = vor.u32 %v7736_v27, %v5896_v26  ;;  %v5466_v43 = vld [vmem:[#allocation5 + $0x1b0] sm:$0xf0] }
  0x21   :  { %1908 = vmatpush.bf16.msra.mxu2 %v6329_v21  ;;  %v6281_v34 = vor.u32 %v7832_v30, %v6280_v28  ;;  %v5464_v35 = vld [vmem:[#allocation5 + $0x180] sm:$0xf]  ;;  %v7628_v36 = vld [vmem:[#allocation5 + $0x1ac] sm:$0xf0]  ;;  %1927 = vmatpush.bf16.msra.mxu3 %v5565_v25  ;;  %v5469_v50 = vor.u32 %v7622_v42, %v5466_v43  ;;  %v7610_v54 = vld [vmem:[#allocation5 + $0x124] sm:$0xf] }
  0x22   :  { %v5848_v37 = vld [vmem:[#allocation5 + $0x480] sm:$0xf]  ;;  %v7724_v39 = vld [vmem:[#allocation5 + $0x4ac] sm:$0xf0]  ;;  %v5465_v44 = vor.u32 %v7628_v36, %v5464_v35  ;;  %v5418_v55 = vld [vmem:[#allocation5 + $0x150] sm:$0xf0] }
  0x23   :  { %v6232_v40 = vld [vmem:[#allocation5 + $0x780] sm:$0xf]  ;;  %v7820_v41 = vld [vmem:[#allocation5 + $0x7ac] sm:$0xf0]  ;;  %1871 = vmatpush.bf16.msra.mxu0 %v5513_v29  ;;  %v5849_v45 = vor.u32 %v7724_v39, %v5848_v37  ;;  %v5421_v62 = vor.u32 %v7610_v54, %v5418_v55  ;;  %v7598_v2 = vld [vmem:[#allocation5 + $0xc4] sm:$0xf] }
  0x24   :  { %1890 = vmatpush.bf16.msra.mxu1 %v5897_v33  ;;  %v6233_v46 = vor.u32 %v7820_v41, %v6232_v40  ;;  %v5416_v47 = vld [vmem:[#allocation5 + $0x120] sm:$0xf]  ;;  %v7616_v48 = vld [vmem:[#allocation5 + $0x14c] sm:$0xf0]  ;;  %v5370_v3 = vld [vmem:[#allocation5 + $0xf0] sm:$0xf0] }
  0x25   :  { %1909 = vmatpush.bf16.msra.mxu2 %v6281_v34  ;;  %v5800_v49 = vld [vmem:[#allocation5 + $0x420] sm:$0xf]  ;;  %1928 = vmatpush.bf16.msra.mxu3 %v5517_v38  ;;  %v7712_v51 = vld [vmem:[#allocation5 + $0x44c] sm:$0xf0]  ;;  %v5417_v56 = vor.u32 %v7616_v48, %v5416_v47  ;;  %v5373_v10 = vor.u32 %v7598_v2, %v5370_v3  ;;  %v7586_v14 = vld [vmem:[#allocation5 + $0x64] sm:$0xf] }
  0x26   :  { %v6184_v52 = vld [vmem:[#allocation5 + $0x720] sm:$0xf]  ;;  %v7808_v53 = vld [vmem:[#allocation5 + $0x74c] sm:$0xf0]  ;;  %v5801_v57 = vor.u32 %v7712_v51, %v5800_v49  ;;  %v5322_v15 = vld [vmem:[#allocation5 + $0x90] sm:$0xf0] }
  0x27   :  { %1872 = vmatpush.bf16.msra.mxu0 %v5465_v44  ;;  %v6185_v58 = vor.u32 %v7808_v53, %v6184_v52  ;;  %v5368_v59 = vld [vmem:[#allocation5 + $0xc0] sm:$0xf]  ;;  %v7604_v60 = vld [vmem:[#allocation5 + $0xec] sm:$0xf0]  ;;  %v5325_v25 = vor.u32 %v7586_v14, %v5322_v15  ;;  %v7574_v26 = vld [vmem:[#allocation5 + $0x4] sm:$0xf] }
  0x28   :  { %1891 = vmatpush.bf16.msra.mxu1 %v5849_v45  ;;  %v5752_v61 = vld [vmem:[#allocation5 + $0x3c0] sm:$0xf]  ;;  %v7700_v63 = vld [vmem:[#allocation5 + $0x3ec] sm:$0xf0]  ;;  %v5369_v4 = vor.u32 %v7604_v60, %v5368_v59  ;;  %v5274_v27 = vld [vmem:[#allocation5 + $0x30] sm:$0xf0] }
  0x29   :  { %1910 = vmatpush.bf16.msra.mxu2 %v6233_v46  ;;  %1929 = vmatpush.bf16.msra.mxu3 %v5469_v50  ;;  %v6136_v0 = vld [vmem:[#allocation5 + $0x6c0] sm:$0xf]  ;;  %v7796_v1 = vld [vmem:[#allocation5 + $0x6ec] sm:$0xf0]  ;;  %v5753_v5 = vor.u32 %v7700_v63, %v5752_v61  ;;  %v98_v29 = vld [vmem:[#allocation2 + $0x18] sm:$0xff]  ;;  %v5277_v41 = vor.u32 %v7574_v26, %v5274_v27  ;;  %s8326_s2 = smov [#allocation11]  }
  0x2a   :  { %v6137_v6 = vor.u32 %v7796_v1, %v6136_v0  ;;  %v5320_v7 = vld [vmem:[#allocation5 + $0x60] sm:$0xf]  ;;  %v7592_v8 = vld [vmem:[#allocation5 + $0x8c] sm:$0xf0]  ;;  %v5616_v30 = vld [vmem:[#allocation5 + $0x2a8] sm:$0xf] }
  0x2b   :  { %1873 = vmatpush.bf16.msra.mxu0 %v5417_v56  ;;  %v5704_v9 = vld [vmem:[#allocation5 + $0x360] sm:$0xf]  ;;  %v7688_v11 = vld [vmem:[#allocation5 + $0x38c] sm:$0xf0]  ;;  %v5321_v16 = vor.u32 %v7592_v8, %v5320_v7  ;;  %v7665_v31 = vld [vmem:[#allocation5 + $0x2d4] sm:$0xf0] }
  0x2c   :  { %1892 = vmatpush.bf16.msra.mxu1 %v5801_v57  ;;  %v6088_v12 = vld [vmem:[#allocation5 + $0x660] sm:$0xf]  ;;  %v7784_v13 = vld [vmem:[#allocation5 + $0x68c] sm:$0xf0]  ;;  %v5705_v20 = vor.u32 %v7688_v11, %v5704_v9  ;;  %v96_v33 = vld [vmem:[#allocation2 + $0x8] sm:$0xff]  ;;  %v5617_v42 = vor.u32 %v7665_v31, %v5616_v30  ;;  %s5253_s4 = sshll.u32 %s8326_s2, 4  ;;  %s5254_s4 = int_to_ptr.vmem [resolvable:$true] %s5253_s4 }
  0x2d   :  { %1911 = vmatpush.bf16.msra.mxu2 %v6185_v58  ;;  %1930 = vmatpush.bf16.msra.mxu3 %v5421_v62  ;;  %v5272_v17 = vld [vmem:[#allocation5] sm:$0xf]  ;;  %v7580_v18 = vld [vmem:[#allocation5 + $0x2c] sm:$0xf0]  ;;  %v6089_v21 = vor.u32 %v7784_v13, %v6088_v12  ;;  %v7850_v34 = vld [vmem:[#allocation5 + $0x8a4] sm:$0xf] }
  0x2e   :  { %v5656_v19 = vld [vmem:[#allocation5 + $0x300] sm:$0xf]  ;;  %v7676_v22 = vld [vmem:[#allocation5 + $0x32c] sm:$0xf0]  ;;  %v5273_v32 = vor.u32 %v7580_v18, %v5272_v17  ;;  %v6378_v35 = vld [vmem:[#allocation5 + $0x8d0] sm:$0xf0] }
  0x2f   :  { %1874 = vmatpush.bf16.msra.mxu0 %v5369_v4  ;;  %v6040_v23 = vld [vmem:[#allocation5 + $0x600] sm:$0xf]  ;;  %v7772_v24 = vld [vmem:[#allocation5 + $0x62c] sm:$0xf0]  ;;  %v5657_v36 = vor.u32 %v7676_v22, %v5656_v19  ;;  %v100_v40 = vld [vmem:[#allocation2 + $0x28] sm:$0xff]  ;;  %v6381_v47 = vor.u32 %v7850_v34, %v6378_v35  ;;  %s5255_s23 = sshll.u32 %s9015_s5, 4  ;;  %s5256_s23 = int_to_ptr.hbm [resolvable:$true] %s5255_s23 }
  0x30   :  { %1893 = vmatpush.bf16.msra.mxu1 %v5753_v5  ;;  %v95_v28 = vld [vmem:[#allocation2] sm:$0xff]  ;;  %v6041_v37 = vor.u32 %v7772_v24, %v6040_v23  ;;  %v97_v39 = vld [vmem:[#allocation2 + $0x10] sm:$0xff]  ;;  %v6000_v45 = vld [vmem:[#allocation5 + $0x5a8] sm:$0xf] }
  0x31   :  { %1912 = vmatpush.bf16.msra.mxu2 %v6137_v6  ;;  %1931 = vmatpush.bf16.msra.mxu3 %v5373_v10  ;;  %v99_v38 = vld [vmem:[#allocation2 + $0x20] sm:$0xff]  ;;  %v5994_v44 = vld [vmem:[#allocation5 + $0x5d0] sm:$0xf0]  ;;  %v8375_v46 = vpack.c.bf16 %v98_v29, %v95_v28  ;;  %v7761_v48 = vld [vmem:[#allocation5 + $0x5d4] sm:$0xf0]  ;;  %v8379_v52 = vpack.c.bf16 %v100_v40, %v97_v39 }
  0x32   :  { %v7754_v43 = vld [vmem:[#allocation5 + $0x5a4] sm:$0xf]  ;;  %v5568_v49 = vld [vmem:[#allocation5 + $0x248] sm:$0xf]  ;;  %v7653_v50 = vld [vmem:[#allocation5 + $0x274] sm:$0xf0]  ;;  %v8377_v51 = vpack.c.bf16 %v99_v38, %v96_v33  ;;  %v6001_v56 = vor.u32 %v7761_v48, %v6000_v45 }
  0x33   :  { %1875 = vmatpush.bf16.msra.mxu0 %v5321_v16  ;;  %v7838_v53 = vld [vmem:[#allocation5 + $0x844] sm:$0xf]  ;;  %v6330_v54 = vld [vmem:[#allocation5 + $0x870] sm:$0xf0]  ;;  %v5997_v55 = vor.u32 %v7754_v43, %v5994_v44  ;;  %v5569_v57 = vor.u32 %v7653_v50, %v5568_v49  ;;  %v5952_v60 = vld [vmem:[#allocation5 + $0x548] sm:$0xf] }
  0x34   :  { %1894 = vmatpush.bf16.msra.mxu1 %v5705_v20  ;;  %v7742_v58 = vld [vmem:[#allocation5 + $0x544] sm:$0xf]  ;;  %v5946_v59 = vld [vmem:[#allocation5 + $0x570] sm:$0xf0]  ;;  %v6333_v61 = vor.u32 %v7838_v53, %v6330_v54  ;;  %v7749_v62 = vld [vmem:[#allocation5 + $0x574] sm:$0xf0] }
  0x35   :  { %1913 = vmatpush.bf16.msra.mxu2 %v6089_v21  ;;  %1932 = vmatpush.bf16.msra.mxu3 %v5325_v25  ;;  %v5520_v63 = vld [vmem:[#allocation5 + $0x1e8] sm:$0xf]  ;;  %v7641_v0 = vld [vmem:[#allocation5 + $0x214] sm:$0xf0]  ;;  %v7826_v1 = vld [vmem:[#allocation5 + $0x7e4] sm:$0xf]  ;;  %v5949_v3 = vor.u32 %v7742_v58, %v5946_v59  ;;  %v5953_v4 = vor.u32 %v7749_v62, %v5952_v60 }
  0x36   :  { %v6282_v2 = vld [vmem:[#allocation5 + $0x810] sm:$0xf0]  ;;  %v5521_v5 = vor.u32 %v7641_v0, %v5520_v63  ;;  %v7730_v6 = vld [vmem:[#allocation5 + $0x4e4] sm:$0xf]  ;;  %v5904_v8 = vld [vmem:[#allocation5 + $0x4e8] sm:$0xf] }
  0x37   :  { %1876 = vmatpush.bf16.msra.mxu0 %v5273_v32  ;;  %v5898_v7 = vld [vmem:[#allocation5 + $0x510] sm:$0xf0]  ;;  %v6285_v9 = vor.u32 %v7826_v1, %v6282_v2  ;;  %v7737_v10 = vld [vmem:[#allocation5 + $0x514] sm:$0xf0]  ;;  %v5472_v11 = vld [vmem:[#allocation5 + $0x188] sm:$0xf] }
  0x38   :  { %1895 = vmatpush.bf16.msra.mxu1 %v5657_v36  ;;  %v7629_v12 = vld [vmem:[#allocation5 + $0x1b4] sm:$0xf0]  ;;  %v7814_v13 = vld [vmem:[#allocation5 + $0x784] sm:$0xf]  ;;  %v6234_v14 = vld [vmem:[#allocation5 + $0x7b0] sm:$0xf0]  ;;  %v5901_v15 = vor.u32 %v7730_v6, %v5898_v7  ;;  %v5905_v18 = vor.u32 %v7737_v10, %v5904_v8 }
  0x39   :  { %1914 = vmatpush.bf16.msra.mxu2 %v6041_v37  ;;  %1933 = vmatpush.bf16.msra.mxu3 %v5277_v41  ;;  %v7718_v16 = vld [vmem:[#allocation5 + $0x484] sm:$0xf]  ;;  %v5850_v17 = vld [vmem:[#allocation5 + $0x4b0] sm:$0xf0]  ;;  %v5473_v19 = vor.u32 %v7629_v12, %v5472_v11  ;;  %v5856_v20 = vld [vmem:[#allocation5 + $0x488] sm:$0xf]  ;;  %v6237_v23 = vor.u32 %v7814_v13, %v6234_v14 }
  0x3a   :  { %1877 = vmatmul.bf16.vlgmr.msra.gmra.mxu0 %v8375_v46  ;;  %v7725_v21 = vld [vmem:[#allocation5 + $0x4b4] sm:$0xf0]  ;;  %v101_v22 = vld [vmem:[#allocation2 + $0x30] sm:$0xff]  ;;  %v104_v24 = vld [vmem:[#allocation2 + $0x48] sm:$0xff]  ;;  %v5853_v30 = vor.u32 %v7718_v16, %v5850_v17 }
  0x3b   :  { %1896 = vmatmul.bf16.vlgmr.msra.gmra.mxu1 %v8377_v51  ;;  %1945 = vmatpush.bf16.msrb.mxu0 %v5997_v55  ;;  %v5424_v25 = vld [vmem:[#allocation5 + $0x128] sm:$0xf]  ;;  %v7617_v26 = vld [vmem:[#allocation5 + $0x154] sm:$0xf0]  ;;  %v7802_v28 = vld [vmem:[#allocation5 + $0x724] sm:$0xf]  ;;  %v5857_v34 = vor.u32 %v7725_v21, %v5856_v20  ;;  %v8385_v39 = vpack.c.bf16 %v104_v24, %v101_v22 }
  0x3c   :  { %1964 = vmatpush.bf16.msrb.mxu1 %v6381_v47  ;;  %1915 = vmatmul.bf16.vlgmr.msra.gmra.mxu2 %v8379_v52  ;;  %v102_v27 = vld [vmem:[#allocation2 + $0x38] sm:$0xff]  ;;  %v6186_v29 = vld [vmem:[#allocation5 + $0x750] sm:$0xf0]  ;;  %v103_v32 = vld [vmem:[#allocation2 + $0x40] sm:$0xff]  ;;  %v5425_v35 = vor.u32 %v7617_v26, %v5424_v25 }
  0x3d   :  { %1983 = vmatpush.bf16.msrb.mxu2 %v5617_v42  ;;  %1934 = vmatmul.bf16.vlgmr.msra.gmra.mxu3 %v8375_v46  ;;  %v105_v31 = vld [vmem:[#allocation2 + $0x50] sm:$0xff]  ;;  %v106_v33 = vld [vmem:[#allocation2 + $0x58] sm:$0xff]  ;;  %v7706_v36 = vld [vmem:[#allocation5 + $0x424] sm:$0xf]  ;;  %v6189_v40 = vor.u32 %v7802_v28, %v6186_v29 }
  0x3e   :  { %2002 = vmatpush.bf16.msrb.mxu3 %v6001_v56  ;;  %v5802_v37 = vld [vmem:[#allocation5 + $0x450] sm:$0xf0]  ;;  %v5808_v38 = vld [vmem:[#allocation5 + $0x428] sm:$0xf]  ;;  %v7713_v41 = vld [vmem:[#allocation5 + $0x454] sm:$0xf0]  ;;  %v8387_v44 = vpack.c.bf16 %v105_v31, %v102_v27  ;;  %v8389_v45 = vpack.c.bf16 %v106_v33, %v103_v32 }
  0x3f   :  { %1946 = vmatpush.bf16.msrb.mxu0 %v5949_v3  ;;  %v5376_v42 = vld [vmem:[#allocation5 + $0xc8] sm:$0xf]  ;;  %v7605_v43 = vld [vmem:[#allocation5 + $0xf4] sm:$0xf0]  ;;  %v7790_v47 = vld [vmem:[#allocation5 + $0x6c4] sm:$0xf]  ;;  %v5805_v49 = vor.u32 %v7706_v36, %v5802_v37  ;;  %v5809_v50 = vor.u32 %v7713_v41, %v5808_v38 }
  0x40   :  { %1965 = vmatpush.bf16.msrb.mxu1 %v6333_v61  ;;  %v6138_v48 = vld [vmem:[#allocation5 + $0x6f0] sm:$0xf0]  ;;  %v5377_v53 = vor.u32 %v7605_v43, %v5376_v42  ;;  %v7694_v54 = vld [vmem:[#allocation5 + $0x3c4] sm:$0xf]  ;;  %v5760_v56 = vld [vmem:[#allocation5 + $0x3c8] sm:$0xf] }
  0x41   :  { %1984 = vmatpush.bf16.msrb.mxu2 %v5569_v57  ;;  %v5754_v55 = vld [vmem:[#allocation5 + $0x3f0] sm:$0xf0]  ;;  %v6141_v57 = vor.u32 %v7790_v47, %v6138_v48  ;;  %v7701_v58 = vld [vmem:[#allocation5 + $0x3f4] sm:$0xf0]  ;;  %v5328_v59 = vld [vmem:[#allocation5 + $0x68] sm:$0xf] }
  0x42   :  { %2003 = vmatpush.bf16.msrb.mxu3 %v5953_v4  ;;  %v7593_v60 = vld [vmem:[#allocation5 + $0x94] sm:$0xf0]  ;;  %v7778_v61 = vld [vmem:[#allocation5 + $0x664] sm:$0xf]  ;;  %v6090_v62 = vld [vmem:[#allocation5 + $0x690] sm:$0xf0]  ;;  %v5757_v63 = vor.u32 %v7694_v54, %v5754_v55  ;;  %v5761_v1 = vor.u32 %v7701_v58, %v5760_v56 }
  0x43   :  { %1947 = vmatpush.bf16.msrb.mxu0 %v5901_v15  ;;  %v7682_v0 = vld [vmem:[#allocation5 + $0x364] sm:$0xf]  ;;  %v5329_v2 = vor.u32 %v7593_v60, %v5328_v59  ;;  %v5706_v3 = vld [vmem:[#allocation5 + $0x390] sm:$0xf0]  ;;  %v5712_v4 = vld [vmem:[#allocation5 + $0x368] sm:$0xf]  ;;  %v6093_v6 = vor.u32 %v7778_v61, %v6090_v62 }
  0x44   :  { %1966 = vmatpush.bf16.msrb.mxu1 %v6285_v9  ;;  %v5280_v7 = vld [vmem:[#allocation5 + $0x8] sm:$0xf]  ;;  %v7581_v8 = vld [vmem:[#allocation5 + $0x34] sm:$0xf0]  ;;  %v7766_v9 = vld [vmem:[#allocation5 + $0x604] sm:$0xf]  ;;  %v5709_v13 = vor.u32 %v7682_v0, %v5706_v3 }
  0x45   :  { %1985 = vmatpush.bf16.msrb.mxu2 %v5521_v5  ;;  %v7689_v5 = vld [vmem:[#allocation5 + $0x394] sm:$0xf0]  ;;  %v6042_v10 = vld [vmem:[#allocation5 + $0x630] sm:$0xf0]  ;;  %v7755_v11 = vld [vmem:[#allocation5 + $0x5ac] sm:$0xf] }
  0x46   :  { %2004 = vmatpush.bf16.msrb.mxu3 %v5905_v18  ;;  %v6002_v12 = vld [vmem:[#allocation5 + $0x5d8] sm:$0xf0]  ;;  %v7670_v14 = vld [vmem:[#allocation5 + $0x304] sm:$0xf]  ;;  %v7659_v15 = vld [vmem:[#allocation5 + $0x2ac] sm:$0xf]  ;;  %v5713_v17 = vor.u32 %v7689_v5, %v5712_v4  ;;  %v5281_v18 = vor.u32 %v7581_v8, %v5280_v7  ;;  %v6045_v22 = vor.u32 %v7766_v9, %v6042_v10 }
  0x47   :  { %1948 = vmatpush.bf16.msrb.mxu0 %v5853_v30  ;;  %v5618_v16 = vld [vmem:[#allocation5 + $0x2d8] sm:$0xf0]  ;;  %v5664_v20 = vld [vmem:[#allocation5 + $0x308] sm:$0xf]  ;;  %v7677_v21 = vld [vmem:[#allocation5 + $0x334] sm:$0xf0] }
  0x48   :  { %1967 = vmatpush.bf16.msrb.mxu1 %v6237_v23  ;;  %v6005_v23 = vor.u32 %v7755_v11, %v6002_v12  ;;  %v6384_v24 = vld [vmem:[#allocation5 + $0x8a8] sm:$0xf]  ;;  %v7857_v25 = vld [vmem:[#allocation5 + $0x8d4] sm:$0xf0]  ;;  %v7851_v26 = vld [vmem:[#allocation5 + $0x8ac] sm:$0xf]  ;;  %v5621_v27 = vor.u32 %v7659_v15, %v5618_v16  ;;  %v5665_v32 = vor.u32 %v7677_v21, %v5664_v20 }
  0x49   :  { %1986 = vmatpush.bf16.msrb.mxu2 %v5473_v19  ;;  %v5658_v19 = vld [vmem:[#allocation5 + $0x330] sm:$0xf0]  ;;  %v6386_v28 = vld [vmem:[#allocation5 + $0x8d8] sm:$0xf0]  ;;  %v7743_v29 = vld [vmem:[#allocation5 + $0x54c] sm:$0xf]  ;;  %v6385_v33 = vor.u32 %v7857_v25, %v6384_v24 }
  0x4a   :  { %2005 = vmatpush.bf16.msrb.mxu3 %v5857_v34  ;;  %1882 = vmatmul.bf16.gmra.mxu0 %v8385_v39  ;;  %v5954_v30 = vld [vmem:[#allocation5 + $0x578] sm:$0xf0]  ;;  %v5661_v31 = vor.u32 %v7670_v14, %v5658_v19  ;;  %v6336_v34 = vld [vmem:[#allocation5 + $0x848] sm:$0xf]  ;;  %v6389_v36 = vor.u32 %v7851_v26, %v6386_v28  ;;  %v7647_v38 = vld [vmem:[#allocation5 + $0x24c] sm:$0xf] }
  0x4b   :  { %1901 = vmatmul.bf16.gmra.mxu1 %v8387_v44  ;;  %1949 = vmatpush.bf16.msrb.mxu0 %v5805_v49  ;;  %v5957_v37 = vor.u32 %v7743_v29, %v5954_v30  ;;  %v7839_v41 = vld [vmem:[#allocation5 + $0x84c] sm:$0xf]  ;;  %v6338_v42 = vld [vmem:[#allocation5 + $0x878] sm:$0xf0]  ;;  %v6240_v0 = vld [vmem:[#allocation5 + $0x788] sm:$0xf] }
  0x4c   :  { %1968 = vmatpush.bf16.msrb.mxu1 %v6189_v40  ;;  %1920 = vmatmul.bf16.gmra.mxu2 %v8389_v45  ;;  %v5570_v40 = vld [vmem:[#allocation5 + $0x278] sm:$0xf0]  ;;  %v7731_v43 = vld [vmem:[#allocation5 + $0x4ec] sm:$0xf]  ;;  %v6341_v54 = vor.u32 %v7839_v41, %v6338_v42  ;;  %v6192_v12 = vld [vmem:[#allocation5 + $0x728] sm:$0xf] }
  0x4d   :  { %1987 = vmatpush.bf16.msrb.mxu2 %v5425_v35  ;;  %1939 = vmatmul.bf16.gmra.mxu3 %v8385_v39  ;;  %v7845_v35 = vld [vmem:[#allocation5 + $0x874] sm:$0xf0]  ;;  %v5906_v47 = vld [vmem:[#allocation5 + $0x518] sm:$0xf0]  ;;  %v5573_v49 = vor.u32 %v7647_v38, %v5570_v40  ;;  %v7635_v56 = vld [vmem:[#allocation5 + $0x1ec] sm:$0xf] }
  0x4e   :  { %2006 = vmatpush.bf16.msrb.mxu3 %v5809_v50  ;;  %v6337_v48 = vor.u32 %v7845_v35, %v6336_v34  ;;  %v6288_v50 = vld [vmem:[#allocation5 + $0x7e8] sm:$0xf]  ;;  %v5909_v55 = vor.u32 %v7731_v43, %v5906_v47  ;;  %v7827_v58 = vld [vmem:[#allocation5 + $0x7ec] sm:$0xf]  ;;  %v6290_v59 = vld [vmem:[#allocation5 + $0x818] sm:$0xf0] }
  0x4f   :  { %1950 = vmatpush.bf16.msrb.mxu0 %v5757_v63  ;;  %v7719_v60 = vld [vmem:[#allocation5 + $0x48c] sm:$0xf]  ;;  %v5858_v61 = vld [vmem:[#allocation5 + $0x4b8] sm:$0xf0]  ;;  %v6144_v24 = vld [vmem:[#allocation5 + $0x6c8] sm:$0xf] }
  0x50   :  { %1969 = vmatpush.bf16.msrb.mxu1 %v6141_v57  ;;  %v5522_v57 = vld [vmem:[#allocation5 + $0x218] sm:$0xf0]  ;;  %v5861_v3 = vor.u32 %v7719_v60, %v5858_v61  ;;  %v7623_v4 = vld [vmem:[#allocation5 + $0x18c] sm:$0xf]  ;;  %v7797_v25 = vld [vmem:[#allocation5 + $0x6f4] sm:$0xf0] }
  0x51   :  { %1988 = vmatpush.bf16.msrb.mxu2 %v5377_v53  ;;  %v7833_v53 = vld [vmem:[#allocation5 + $0x814] sm:$0xf0]  ;;  %v5525_v63 = vor.u32 %v7635_v56, %v5522_v57  ;;  %v5474_v5 = vld [vmem:[#allocation5 + $0x1b8] sm:$0xf0]  ;;  %v7707_v8 = vld [vmem:[#allocation5 + $0x42c] sm:$0xf]  ;;  %v6145_v34 = vor.u32 %v7797_v25, %v6144_v24 }
  0x52   :  { %2007 = vmatpush.bf16.msrb.mxu3 %v5761_v1  ;;  %v6289_v62 = vor.u32 %v7833_v53, %v6288_v50  ;;  %v7821_v1 = vld [vmem:[#allocation5 + $0x7b4] sm:$0xf0]  ;;  %v6242_v7 = vld [vmem:[#allocation5 + $0x7b8] sm:$0xf0]  ;;  %v5477_v11 = vor.u32 %v7623_v4, %v5474_v5  ;;  %v7611_v16 = vld [vmem:[#allocation5 + $0x12c] sm:$0xf] }
  0x53   :  { %1951 = vmatpush.bf16.msrb.mxu0 %v5709_v13  ;;  %v5810_v9 = vld [vmem:[#allocation5 + $0x458] sm:$0xf0]  ;;  %v6241_v10 = vor.u32 %v7821_v1, %v6240_v0  ;;  %v7809_v13 = vld [vmem:[#allocation5 + $0x754] sm:$0xf0]  ;;  %v7695_v20 = vld [vmem:[#allocation5 + $0x3cc] sm:$0xf] }
  0x54   :  { %1970 = vmatpush.bf16.msrb.mxu1 %v6093_v6  ;;  %v7815_v6 = vld [vmem:[#allocation5 + $0x78c] sm:$0xf]  ;;  %v5813_v15 = vor.u32 %v7707_v8, %v5810_v9  ;;  %v6194_v19 = vld [vmem:[#allocation5 + $0x758] sm:$0xf0]  ;;  %v6392_v50 = vld [vmem:[#allocation5 + $0x8b0] sm:$0xf] }
  0x55   :  { %1989 = vmatpush.bf16.msrb.mxu2 %v5329_v2  ;;  %v6293_v2 = vor.u32 %v7827_v58, %v6290_v59  ;;  %v6245_v14 = vor.u32 %v7815_v6, %v6242_v7  ;;  %v5762_v21 = vld [vmem:[#allocation5 + $0x3f8] sm:$0xf0]  ;;  %v7599_v28 = vld [vmem:[#allocation5 + $0xcc] sm:$0xf]  ;;  %v7858_v53 = vld [vmem:[#allocation5 + $0x8dc] sm:$0xf0] }
  0x56   :  { %2008 = vmatpush.bf16.msrb.mxu3 %v5713_v17  ;;  %v5426_v17 = vld [vmem:[#allocation5 + $0x158] sm:$0xf0]  ;;  %v7791_v30 = vld [vmem:[#allocation5 + $0x6cc] sm:$0xf]  ;;  %v6048_v56 = vld [vmem:[#allocation5 + $0x608] sm:$0xf]  ;;  %v6393_v0 = vor.u32 %v7858_v53, %v6392_v50 }
  0x57   :  { %1952 = vmatpush.bf16.msrb.mxu0 %v5661_v31  ;;  %v5378_v29 = vld [vmem:[#allocation5 + $0xf8] sm:$0xf0]  ;;  %v7587_v41 = vld [vmem:[#allocation5 + $0x6c] sm:$0xf]  ;;  %v7773_v57 = vld [vmem:[#allocation5 + $0x634] sm:$0xf0] }
  0x58   :  { %1971 = vmatpush.bf16.msrb.mxu1 %v6045_v22  ;;  %v6193_v22 = vor.u32 %v7809_v13, %v6192_v12  ;;  %v6146_v31 = vld [vmem:[#allocation5 + $0x6f8] sm:$0xf0]  ;;  %v5381_v35 = vor.u32 %v7599_v28, %v5378_v29  ;;  %v7779_v43 = vld [vmem:[#allocation5 + $0x66c] sm:$0xf]  ;;  %v5624_v1 = vld [vmem:[#allocation5 + $0x2b0] sm:$0xf]  ;;  %v6049_v7 = vor.u32 %v7773_v57, %v6048_v56 }
  0x59   :  { %1990 = vmatpush.bf16.msrb.mxu2 %v5281_v18  ;;  %v7803_v18 = vld [vmem:[#allocation5 + $0x72c] sm:$0xf]  ;;  %v6149_v38 = vor.u32 %v7791_v30, %v6146_v31  ;;  %v5330_v42 = vld [vmem:[#allocation5 + $0x98] sm:$0xf0]  ;;  %v7762_v4 = vld [vmem:[#allocation5 + $0x5dc] sm:$0xf0] }
  0x5a   :  { %2009 = vmatpush.bf16.msrb.mxu3 %v5665_v32  ;;  %1953 = vmatmul.bf16.vlgmr.msrb.gmra.mxu0 %v8377_v51  ;;  %v6197_v26 = vor.u32 %v7803_v18, %v6194_v19  ;;  %v7683_v32 = vld [vmem:[#allocation5 + $0x36c] sm:$0xf]  ;;  %v6098_v47 = vld [vmem:[#allocation5 + $0x698] sm:$0xf0]  ;;  %v7660_v5 = vld [vmem:[#allocation5 + $0x2b4] sm:$0xf] }
  0x5b   :  { %2021 = vmatpush.bf16.msra.mxu0 %v6385_v33  ;;  %1972 = vmatmul.bf16.vlgmr.msrb.gmra.mxu1 %v8379_v52  ;;  %v5714_v33 = vld [vmem:[#allocation5 + $0x398] sm:$0xf0]  ;;  %v7575_v58 = vld [vmem:[#allocation5 + $0xc] sm:$0xf]  ;;  %v6101_v59 = vor.u32 %v7779_v43, %v6098_v47  ;;  %v5626_v6 = vld [vmem:[#allocation5 + $0x2e0] sm:$0xf0] }
  0x5c   :  { %2040 = vmatpush.bf16.msra.mxu1 %v5621_v27  ;;  %1991 = vmatmul.bf16.vlgmr.msrb.gmra.mxu2 %v8375_v46  ;;  %v5765_v27 = vor.u32 %v7695_v20, %v5762_v21  ;;  %v5717_v40 = vor.u32 %v7683_v32, %v5714_v33  ;;  %v5282_v61 = vld [vmem:[#allocation5 + $0x38] sm:$0xf0]  ;;  %v6344_v9 = vld [vmem:[#allocation5 + $0x850] sm:$0xf]  ;;  %v7750_v19 = vld [vmem:[#allocation5 + $0x57c] sm:$0xf0] }
  0x5d   :  { %2059 = vmatpush.bf16.msra.mxu2 %v6005_v23  ;;  %2010 = vmatmul.bf16.vlgmr.msrb.gmra.mxu3 %v8377_v51  ;;  %v5429_v23 = vor.u32 %v7611_v16, %v5426_v17  ;;  %v5285_v8 = vor.u32 %v7575_v58, %v5282_v61  ;;  %v7654_v16 = vld [vmem:[#allocation5 + $0x27c] sm:$0xf0]  ;;  %v5960_v18 = vld [vmem:[#allocation5 + $0x550] sm:$0xf]  ;;  %v7648_v21 = vld [vmem:[#allocation5 + $0x254] sm:$0xf] }
  0x5e   :  { %2078 = vmatpush.bf16.msra.mxu3 %v6389_v36  ;;  %v6096_v36 = vld [vmem:[#allocation5 + $0x668] sm:$0xf]  ;;  %v7834_v24 = vld [vmem:[#allocation5 + $0x81c] sm:$0xf0]  ;;  %v5528_v25 = vld [vmem:[#allocation5 + $0x1f0] sm:$0xf] }
  0x5f   :  { %2022 = vmatpush.bf16.msra.mxu0 %v6337_v48  ;;  %v7671_v48 = vld [vmem:[#allocation5 + $0x30c] sm:$0xf]  ;;  %v5912_v29 = vld [vmem:[#allocation5 + $0x4f0] sm:$0xf]  ;;  %v7738_v30 = vld [vmem:[#allocation5 + $0x51c] sm:$0xf0] }
  0x60   :  { %2041 = vmatpush.bf16.msra.mxu1 %v5573_v49  ;;  %v5666_v49 = vld [vmem:[#allocation5 + $0x338] sm:$0xf0]  ;;  %v7636_v33 = vld [vmem:[#allocation5 + $0x1f4] sm:$0xf]  ;;  %v7726_v43 = vld [vmem:[#allocation5 + $0x4bc] sm:$0xf0] }
  0x61   :  { %2060 = vmatpush.bf16.msra.mxu2 %v5957_v37  ;;  %v7785_v37 = vld [vmem:[#allocation5 + $0x694] sm:$0xf0]  ;;  %v5669_v60 = vor.u32 %v7671_v48, %v5666_v49  ;;  %v7624_v49 = vld [vmem:[#allocation5 + $0x194] sm:$0xf]  ;;  %v5482_v50 = vld [vmem:[#allocation5 + $0x1c0] sm:$0xf0] }
  0x62   :  { %2079 = vmatpush.bf16.msra.mxu3 %v6341_v54  ;;  %v6097_v54 = vor.u32 %v7785_v37, %v6096_v36  ;;  %v7822_v36 = vld [vmem:[#allocation5 + $0x7bc] sm:$0xf0]  ;;  %v5480_v37 = vld [vmem:[#allocation5 + $0x190] sm:$0xf]  ;;  %v5485_v58 = vor.u32 %v7624_v49, %v5482_v50  ;;  %v6016_v49 = vld [vmem:[#allocation5 + $0x5b8] sm:$0xf] }
  0x63   :  { %2023 = vmatpush.bf16.msra.mxu0 %v6289_v62  ;;  %v7767_v62 = vld [vmem:[#allocation5 + $0x60c] sm:$0xf]  ;;  %v6200_v53 = vld [vmem:[#allocation5 + $0x730] sm:$0xf]  ;;  %v7618_v56 = vld [vmem:[#allocation5 + $0x15c] sm:$0xf0] }
  0x64   :  { %2042 = vmatpush.bf16.msra.mxu1 %v5525_v63  ;;  %v6050_v63 = vld [vmem:[#allocation5 + $0x638] sm:$0xf0]  ;;  %v7763_v50 = vld [vmem:[#allocation5 + $0x5e4] sm:$0xf0] }
  0x65   :  { %2061 = vmatpush.bf16.msra.mxu2 %v5909_v55  ;;  %v5333_v55 = vor.u32 %v7587_v41, %v5330_v42  ;;  %v5864_v42 = vld [vmem:[#allocation5 + $0x490] sm:$0xf] }
  0x66   :  { %2080 = vmatpush.bf16.msra.mxu3 %v6293_v2  ;;  %v7666_v2 = vld [vmem:[#allocation5 + $0x2dc] sm:$0xf0]  ;;  %v5865_v57 = vor.u32 %v7726_v43, %v5864_v42  ;;  %v7852_v42 = vld [vmem:[#allocation5 + $0x8b4] sm:$0xf]  ;;  %v6394_v43 = vld [vmem:[#allocation5 + $0x8e0] sm:$0xf0] }
  0x67   :  { %2024 = vmatpush.bf16.msra.mxu0 %v6241_v10  ;;  %v7846_v10 = vld [vmem:[#allocation5 + $0x87c] sm:$0xf0]  ;;  %v5625_v12 = vor.u32 %v7666_v2, %v5624_v1  ;;  %v6152_v1 = vld [vmem:[#allocation5 + $0x6d0] sm:$0xf] }
  0x68   :  { %2043 = vmatpush.bf16.msra.mxu1 %v5477_v11  ;;  %v6053_v11 = vor.u32 %v7767_v62, %v6050_v63  ;;  %v6345_v17 = vor.u32 %v7846_v10, %v6344_v9  ;;  %v7612_v63 = vld [vmem:[#allocation5 + $0x134] sm:$0xf]  ;;  %v7798_v2 = vld [vmem:[#allocation5 + $0x6fc] sm:$0xf0] }
  0x69   :  { %2062 = vmatpush.bf16.msra.mxu2 %v5861_v3  ;;  %v6008_v3 = vld [vmem:[#allocation5 + $0x5b0] sm:$0xf]  ;;  %v6153_v9 = vor.u32 %v7798_v2, %v6152_v1  ;;  %v5968_v1 = vld [vmem:[#allocation5 + $0x558] sm:$0xf]  ;;  %v7751_v2 = vld [vmem:[#allocation5 + $0x584] sm:$0xf0] }
  0x6a   :  { %2081 = vmatpush.bf16.msra.mxu3 %v6245_v14  ;;  %1958 = vmatmul.bf16.gmra.mxu0 %v8387_v44  ;;  %v6009_v13 = vor.u32 %v7762_v4, %v6008_v3  ;;  %v5629_v14 = vor.u32 %v7660_v5, %v5626_v6  ;;  %v5384_v3 = vld [vmem:[#allocation5 + $0xd0] sm:$0xf]  ;;  %v7606_v4 = vld [vmem:[#allocation5 + $0xfc] sm:$0xf0] }
  0x6b   :  { %2025 = vmatpush.bf16.msra.mxu0 %v6193_v22  ;;  %1977 = vmatmul.bf16.gmra.mxu1 %v8389_v45  ;;  %v5578_v22 = vld [vmem:[#allocation5 + $0x280] sm:$0xf0]  ;;  %v5385_v10 = vor.u32 %v7606_v4, %v5384_v3  ;;  %v5536_v3 = vld [vmem:[#allocation5 + $0x1f8] sm:$0xf]  ;;  %v7643_v4 = vld [vmem:[#allocation5 + $0x224] sm:$0xf0] }
  0x6c   :  { %2044 = vmatpush.bf16.msra.mxu1 %v5429_v23  ;;  %1996 = vmatmul.bf16.gmra.mxu2 %v8385_v39  ;;  %v6296_v23 = vld [vmem:[#allocation5 + $0x7f0] sm:$0xf]  ;;  %v5581_v28 = vor.u32 %v7648_v21, %v5578_v22  ;;  %v7588_v21 = vld [vmem:[#allocation5 + $0x74] sm:$0xf] }
  0x6d   :  { %2063 = vmatpush.bf16.msra.mxu2 %v5813_v15  ;;  %2015 = vmatmul.bf16.gmra.mxu3 %v8387_v44  ;;  %v5576_v15 = vld [vmem:[#allocation5 + $0x250] sm:$0xf]  ;;  %v6297_v31 = vor.u32 %v7834_v24, %v6296_v23  ;;  %v5338_v24 = vld [vmem:[#allocation5 + $0xa0] sm:$0xf0] }
  0x6e   :  { %2082 = vmatpush.bf16.msra.mxu3 %v6197_v26  ;;  %v5577_v20 = vor.u32 %v7654_v16, %v5576_v15  ;;  %v7642_v26 = vld [vmem:[#allocation5 + $0x21c] sm:$0xf0]  ;;  %v5336_v15 = vld [vmem:[#allocation5 + $0x70] sm:$0xf] }
  0x6f   :  { %2026 = vmatpush.bf16.msra.mxu0 %v6145_v34  ;;  %v5529_v32 = vor.u32 %v7642_v26, %v5528_v25  ;;  %v5530_v34 = vld [vmem:[#allocation5 + $0x220] sm:$0xf0]  ;;  %v7594_v16 = vld [vmem:[#allocation5 + $0x9c] sm:$0xf0]  ;;  %v6056_v25 = vld [vmem:[#allocation5 + $0x610] sm:$0xf] }
  0x70   :  { %2045 = vmatpush.bf16.msra.mxu1 %v5381_v35  ;;  %v6248_v35 = vld [vmem:[#allocation5 + $0x790] sm:$0xf]  ;;  %v5533_v41 = vor.u32 %v7636_v33, %v5530_v34  ;;  %v5337_v23 = vor.u32 %v7594_v16, %v5336_v15  ;;  %v7774_v26 = vld [vmem:[#allocation5 + $0x63c] sm:$0xf0]  ;;  %v5341_v34 = vor.u32 %v7588_v21, %v5338_v24  ;;  %v5488_v15 = vld [vmem:[#allocation5 + $0x198] sm:$0xf] }
  0x71   :  { %2064 = vmatpush.bf16.msra.mxu2 %v5765_v27  ;;  %v5961_v27 = vor.u32 %v7750_v19, %v5960_v18  ;;  %v6249_v47 = vor.u32 %v7822_v36, %v6248_v35  ;;  %v5720_v19 = vld [vmem:[#allocation5 + $0x370] sm:$0xf]  ;;  %v7678_v36 = vld [vmem:[#allocation5 + $0x33c] sm:$0xf0]  ;;  %v7631_v16 = vld [vmem:[#allocation5 + $0x1c4] sm:$0xf0] }
  0x72   :  { %2083 = vmatpush.bf16.msra.mxu3 %v6149_v38  ;;  %v7630_v38 = vld [vmem:[#allocation5 + $0x1bc] sm:$0xf0]  ;;  %v5672_v35 = vld [vmem:[#allocation5 + $0x310] sm:$0xf]  ;;  %v7816_v21 = vld [vmem:[#allocation5 + $0x794] sm:$0xf] }
  0x73   :  { %2027 = vmatpush.bf16.msra.mxu0 %v6097_v54  ;;  %v5481_v48 = vor.u32 %v7630_v38, %v5480_v37  ;;  %v7810_v54 = vld [vmem:[#allocation5 + $0x75c] sm:$0xf0]  ;;  %v7576_v37 = vld [vmem:[#allocation5 + $0x14] sm:$0xf]  ;;  %v6057_v38 = vor.u32 %v7774_v26, %v6056_v25  ;;  %v7727_v24 = vld [vmem:[#allocation5 + $0x4c4] sm:$0xf0]  ;;  %v5489_v25 = vor.u32 %v7631_v16, %v5488_v15 }
  0x74   :  { %2046 = vmatpush.bf16.msra.mxu1 %v5333_v55  ;;  %v5432_v55 = vld [vmem:[#allocation5 + $0x130] sm:$0xf]  ;;  %v6201_v61 = vor.u32 %v7810_v54, %v6200_v53  ;;  %v5584_v53 = vld [vmem:[#allocation5 + $0x258] sm:$0xf]  ;;  %v7655_v54 = vld [vmem:[#allocation5 + $0x284] sm:$0xf0] }
  0x75   :  { %2065 = vmatpush.bf16.msra.mxu2 %v5717_v40  ;;  %v5913_v40 = vor.u32 %v7738_v30, %v5912_v29  ;;  %v5433_v62 = vor.u32 %v7618_v56, %v5432_v55  ;;  %v5632_v29 = vld [vmem:[#allocation5 + $0x2b8] sm:$0xf]  ;;  %v7667_v30 = vld [vmem:[#allocation5 + $0x2e4] sm:$0xf0]  ;;  %v7744_v55 = vld [vmem:[#allocation5 + $0x554] sm:$0xf] }
  0x76   :  { %2084 = vmatpush.bf16.msra.mxu3 %v6101_v59  ;;  %v5816_v59 = vld [vmem:[#allocation5 + $0x430] sm:$0xf]  ;;  %v5962_v56 = vld [vmem:[#allocation5 + $0x580] sm:$0xf0]  ;;  %v7757_v15 = vld [vmem:[#allocation5 + $0x5bc] sm:$0xf] }
  0x77   :  { %2028 = vmatpush.bf16.msra.mxu0 %v6049_v7  ;;  %v5768_v7 = vld [vmem:[#allocation5 + $0x3d0] sm:$0xf]  ;;  %v6018_v16 = vld [vmem:[#allocation5 + $0x5e8] sm:$0xf0] }
  0x78   :  { %2047 = vmatpush.bf16.msra.mxu1 %v5285_v8  ;;  %v7702_v8 = vld [vmem:[#allocation5 + $0x3fc] sm:$0xf0] }
  0x79   :  { %2066 = vmatpush.bf16.msra.mxu2 %v5669_v60  ;;  %v7714_v60 = vld [vmem:[#allocation5 + $0x45c] sm:$0xf0] }
  0x7a   :  { %2085 = vmatpush.bf16.msra.mxu3 %v6053_v11  ;;  %2029 = vmatmul.bf16.vlgmr.msra.gmra.mxu0 %v8379_v52  ;;  %v5817_v5 = vor.u32 %v7714_v60, %v5816_v59  ;;  %v7600_v11 = vld [vmem:[#allocation5 + $0xd4] sm:$0xf]  ;;  %v6397_v59 = vor.u32 %v7852_v42, %v6394_v43  ;;  %v6017_v60 = vor.u32 %v7763_v50, %v6016_v49  ;;  %v6154_v50 = vld [vmem:[#allocation5 + $0x700] sm:$0xf0] }
  0x7b   :  { %2097 = vmatpush.bf16.msrb.mxu0 %v5625_v12  ;;  %2048 = vmatmul.bf16.vlgmr.msra.gmra.mxu1 %v8375_v46  ;;  %v5386_v12 = vld [vmem:[#allocation5 + $0x100] sm:$0xf0]  ;;  %v7792_v49 = vld [vmem:[#allocation5 + $0x6d4] sm:$0xf] }
  0x7c   :  { %2116 = vmatpush.bf16.msrb.mxu1 %v6009_v13  ;;  %2067 = vmatmul.bf16.vlgmr.msra.gmra.mxu2 %v8377_v51  ;;  %v6104_v13 = vld [vmem:[#allocation5 + $0x670] sm:$0xf]  ;;  %v5389_v18 = vor.u32 %v7600_v11, %v5386_v12  ;;  %v5920_v11 = vld [vmem:[#allocation5 + $0x4f8] sm:$0xf]  ;;  %v7739_v12 = vld [vmem:[#allocation5 + $0x524] sm:$0xf0] }
  0x7d   :  { %2135 = vmatpush.bf16.msrb.mxu2 %v6393_v0  ;;  %2086 = vmatmul.bf16.vlgmr.msra.gmra.mxu3 %v8379_v52  ;;  %v5434_v0 = vld [vmem:[#allocation5 + $0x160] sm:$0xf0] }
  0x7e   :  { %2154 = vmatpush.bf16.msrb.mxu3 %v5629_v14  ;;  %v5437_v6 = vor.u32 %v7612_v63, %v5434_v0  ;;  %v7786_v14 = vld [vmem:[#allocation5 + $0x69c] sm:$0xf0]  ;;  %v5965_v63 = vor.u32 %v7744_v55, %v5962_v56  ;;  %v6346_v0 = vld [vmem:[#allocation5 + $0x880] sm:$0xf0] }
  0x7f   :  { %2098 = vmatpush.bf16.msrb.mxu0 %v5577_v20  ;;  %v7690_v20 = vld [vmem:[#allocation5 + $0x39c] sm:$0xf0]  ;;  %v6105_v22 = vor.u32 %v7786_v14, %v6104_v13  ;;  %v5537_v13 = vor.u32 %v7643_v4, %v5536_v3  ;;  %v5296_v3 = vld [vmem:[#allocation5 + $0x18] sm:$0xf] }
  0x80   :  { %2117 = vmatpush.bf16.msrb.mxu1 %v5961_v27  ;;  %v5288_v27 = vld [vmem:[#allocation5 + $0x10] sm:$0xf]  ;;  %v5721_v33 = vor.u32 %v7690_v20, %v5720_v19  ;;  %v7720_v19 = vld [vmem:[#allocation5 + $0x494] sm:$0xf]  ;;  %v5866_v20 = vld [vmem:[#allocation5 + $0x4c0] sm:$0xf0] }
  0x81   :  { %2136 = vmatpush.bf16.msrb.mxu2 %v6345_v17  ;;  %v5769_v17 = vor.u32 %v7702_v8, %v5768_v7  ;;  %v7732_v7 = vld [vmem:[#allocation5 + $0x4f4] sm:$0xf]  ;;  %v5914_v8 = vld [vmem:[#allocation5 + $0x520] sm:$0xf0]  ;;  %v5869_v26 = vor.u32 %v7720_v19, %v5866_v20  ;;  %v7661_v19 = vld [vmem:[#allocation5 + $0x2bc] sm:$0xf] }
  0x82   :  { %2155 = vmatpush.bf16.msrb.mxu3 %v5581_v28  ;;  %v7582_v28 = vld [vmem:[#allocation5 + $0x3c] sm:$0xf0]  ;;  %v5917_v14 = vor.u32 %v7732_v7, %v5914_v8  ;;  %v7672_v7 = vld [vmem:[#allocation5 + $0x314] sm:$0xf]  ;;  %v5674_v8 = vld [vmem:[#allocation5 + $0x340] sm:$0xf0] }
  0x83   :  { %2099 = vmatpush.bf16.msrb.mxu0 %v5529_v32  ;;  %v6010_v32 = vld [vmem:[#allocation5 + $0x5e0] sm:$0xf0] }
  0x84   :  { %2118 = vmatpush.bf16.msrb.mxu1 %v5913_v40  ;;  %v5289_v40 = vor.u32 %v7582_v28, %v5288_v27  ;;  %v5440_v27 = vld [vmem:[#allocation5 + $0x138] sm:$0xf]  ;;  %v7619_v28 = vld [vmem:[#allocation5 + $0x164] sm:$0xf0] }
  0x85   :  { %2137 = vmatpush.bf16.msrb.mxu2 %v6297_v31  ;;  %v7756_v31 = vld [vmem:[#allocation5 + $0x5b4] sm:$0xf] }
  0x86   :  { %2156 = vmatpush.bf16.msrb.mxu3 %v5533_v41  ;;  %v5290_v41 = vld [vmem:[#allocation5 + $0x40] sm:$0xf0] }
  0x87   :  { %2100 = vmatpush.bf16.msrb.mxu0 %v5481_v48  ;;  %v6013_v48 = vor.u32 %v7756_v31, %v6010_v32  ;;  %v7708_v31 = vld [vmem:[#allocation5 + $0x434] sm:$0xf]  ;;  %v5818_v32 = vld [vmem:[#allocation5 + $0x460] sm:$0xf0] }
  0x88   :  { %2119 = vmatpush.bf16.msrb.mxu1 %v5865_v57  ;;  %v5673_v57 = vor.u32 %v7678_v36, %v5672_v35  ;;  %v5824_v35 = vld [vmem:[#allocation5 + $0x438] sm:$0xf]  ;;  %v7715_v36 = vld [vmem:[#allocation5 + $0x464] sm:$0xf0] }
  0x89   :  { %2138 = vmatpush.bf16.msrb.mxu2 %v6249_v47  ;;  %v5633_v47 = vor.u32 %v7667_v30, %v5632_v29  ;;  %v5825_v43 = vor.u32 %v7715_v36, %v5824_v35  ;;  %v7847_v35 = vld [vmem:[#allocation5 + $0x884] sm:$0xf0]  ;;  %v7649_v36 = vld [vmem:[#allocation5 + $0x25c] sm:$0xf] }
  0x8a   :  { %2157 = vmatpush.bf16.msrb.mxu3 %v5485_v58  ;;  %2034 = vmatmul.bf16.gmra.mxu0 %v8389_v45  ;;  %v5293_v58 = vor.u32 %v7576_v37, %v5290_v41  ;;  %v5441_v37 = vor.u32 %v7619_v28, %v5440_v27  ;;  %v7607_v41 = vld [vmem:[#allocation5 + $0x104] sm:$0xf0]  ;;  %v8419_v27 = vld [vmem:[#allocation7] sm:$0xff]  ;;  %v6021_v28 = vor.u32 %v7757_v15, %v6018_v16 }
  0x8b   :  { %2101 = vmatpush.bf16.msrb.mxu0 %v5433_v62  ;;  %2053 = vmatmul.bf16.gmra.mxu1 %v8385_v39  ;;  %v5585_v62 = vor.u32 %v7655_v54, %v5584_v53  ;;  %v5776_v53 = vld [vmem:[#allocation5 + $0x3d8] sm:$0xf]  ;;  %v7703_v54 = vld [vmem:[#allocation5 + $0x404] sm:$0xf0] }
  0x8c   :  { %2120 = vmatpush.bf16.msrb.mxu1 %v5817_v5  ;;  %2072 = vmatmul.bf16.gmra.mxu2 %v8387_v44 }
  0x8d   :  { %2139 = vmatpush.bf16.msrb.mxu2 %v6201_v61  ;;  %2091 = vmatmul.bf16.gmra.mxu3 %v8389_v45  ;;  %v7840_v61 = vld [vmem:[#allocation5 + $0x854] sm:$0xf] }
  0x8e   :  { %2158 = vmatpush.bf16.msrb.mxu3 %v5437_v6  ;;  %v6349_v5 = vor.u32 %v7840_v61, %v6346_v0  ;;  %v5969_v6 = vor.u32 %v7751_v2, %v5968_v1  ;;  %v7684_v61 = vld [vmem:[#allocation5 + $0x374] sm:$0xf]  ;;  %v6106_v0 = vld [vmem:[#allocation5 + $0x6a0] sm:$0xf0]  ;;  %v5728_v1 = vld [vmem:[#allocation5 + $0x378] sm:$0xf] }
  0x8f   :  { %2102 = vmatpush.bf16.msrb.mxu0 %v5385_v10  ;;  %v6298_v10 = vld [vmem:[#allocation5 + $0x820] sm:$0xf0]  ;;  %v7691_v2 = vld [vmem:[#allocation5 + $0x3a4] sm:$0xf0] }
  0x90   :  { %2121 = vmatpush.bf16.msrb.mxu1 %v5769_v17 }
  0x91   :  { %2140 = vmatpush.bf16.msrb.mxu2 %v6153_v9  ;;  %v7828_v9 = vld [vmem:[#allocation5 + $0x7f4] sm:$0xf] }
  0x92   :  { %2159 = vmatpush.bf16.msrb.mxu3 %v5389_v18  ;;  %v6301_v17 = vor.u32 %v7828_v9, %v6298_v10  ;;  %v5921_v18 = vor.u32 %v7739_v12, %v5920_v11  ;;  %v5729_v10 = vor.u32 %v7691_v2, %v5728_v1  ;;  %v7768_v11 = vld [vmem:[#allocation5 + $0x614] sm:$0xf]  ;;  %v6058_v12 = vld [vmem:[#allocation5 + $0x640] sm:$0xf0]  ;;  %v5874_v1 = vld [vmem:[#allocation5 + $0x4c8] sm:$0xf0] }
  0x93   :  { %2103 = vmatpush.bf16.msrb.mxu0 %v5337_v23  ;;  %v5872_v23 = vld [vmem:[#allocation5 + $0x498] sm:$0xf] }
  0x94   :  { %2122 = vmatpush.bf16.msrb.mxu1 %v5721_v33  ;;  %v5873_v30 = vor.u32 %v7727_v24, %v5872_v23  ;;  %v7804_v33 = vld [vmem:[#allocation5 + $0x734] sm:$0xf]  ;;  %v7853_v23 = vld [vmem:[#allocation5 + $0x8bc] sm:$0xf]  ;;  %v6402_v24 = vld [vmem:[#allocation5 + $0x8e8] sm:$0xf0] }
  0x95   :  { %2141 = vmatpush.bf16.msrb.mxu2 %v6105_v22  ;;  %v6250_v22 = vld [vmem:[#allocation5 + $0x7c0] sm:$0xf0] }
  0x96   :  { %2160 = vmatpush.bf16.msrb.mxu3 %v5341_v34  ;;  %v6253_v29 = vor.u32 %v7816_v21, %v6250_v22  ;;  %v6202_v34 = vld [vmem:[#allocation5 + $0x760] sm:$0xf0]  ;;  %v5677_v21 = vor.u32 %v7672_v7, %v5674_v8  ;;  %v5634_v22 = vld [vmem:[#allocation5 + $0x2e8] sm:$0xf0]  ;;  %v7625_v7 = vld [vmem:[#allocation5 + $0x19c] sm:$0xf] }
  0x97   :  { %2104 = vmatpush.bf16.msrb.mxu0 %v5289_v40  ;;  %v5392_v40 = vld [vmem:[#allocation5 + $0xd8] sm:$0xf]  ;;  %v6205_v42 = vor.u32 %v7804_v33, %v6202_v34  ;;  %v6405_v33 = vor.u32 %v7853_v23, %v6402_v24  ;;  %v5490_v8 = vld [vmem:[#allocation5 + $0x1c8] sm:$0xf0] }
  0x98   :  { %2123 = vmatpush.bf16.msrb.mxu1 %v5673_v57  ;;  %v5393_v55 = vor.u32 %v7607_v41, %v5392_v40  ;;  %v5344_v57 = vld [vmem:[#allocation5 + $0x78] sm:$0xf]  ;;  %v6354_v40 = vld [vmem:[#allocation5 + $0x888] sm:$0xf0]  ;;  %v5493_v16 = vor.u32 %v7625_v7, %v5490_v8 }
  0x99   :  { %2142 = vmatpush.bf16.msrb.mxu2 %v6057_v38  ;;  %v5821_v38 = vor.u32 %v7708_v31, %v5818_v32  ;;  %v5970_v31 = vld [vmem:[#allocation5 + $0x588] sm:$0xf0]  ;;  %v5637_v32 = vor.u32 %v7661_v19, %v5634_v22  ;;  %v6352_v34 = vld [vmem:[#allocation5 + $0x858] sm:$0xf]  ;;  %v7811_v19 = vld [vmem:[#allocation5 + $0x764] sm:$0xf0] }
  0x9a   :  { %2161 = vmatpush.bf16.msrb.mxu3 %v5293_v58  ;;  %2105 = vmatmul.bf16.vlgmr.msrb.gmra.mxu0 %v8375_v46  ;;  %v7595_v58 = vld [vmem:[#allocation5 + $0xa4] sm:$0xf0]  ;;  %v5442_v24 = vld [vmem:[#allocation5 + $0x168] sm:$0xf0] }
  0x9b   :  { %2173 = vmatpush.bf16.msra.mxu0 %v6013_v48  ;;  %2124 = vmatmul.bf16.vlgmr.msrb.gmra.mxu1 %v8377_v51  ;;  %v5770_v48 = vld [vmem:[#allocation5 + $0x400] sm:$0xf0]  ;;  %v5345_v4 = vor.u32 %v7595_v58, %v5344_v57  ;;  %v5538_v57 = vld [vmem:[#allocation5 + $0x228] sm:$0xf0]  ;;  %v7829_v58 = vld [vmem:[#allocation5 + $0x7fc] sm:$0xf] }
  0x9c   :  { %2192 = vmatpush.bf16.msra.mxu1 %v6397_v59  ;;  %2143 = vmatmul.bf16.vlgmr.msrb.gmra.mxu2 %v8379_v52  ;;  %v6157_v59 = vor.u32 %v7792_v49, %v6154_v50  ;;  %v7733_v49 = vld [vmem:[#allocation5 + $0x4fc] sm:$0xf]  ;;  %v5922_v50 = vld [vmem:[#allocation5 + $0x528] sm:$0xf0] }
  0x9d   :  { %2211 = vmatpush.bf16.msra.mxu2 %v5633_v47  ;;  %2162 = vmatmul.bf16.vlgmr.msrb.gmra.mxu3 %v8375_v46  ;;  %v7696_v47 = vld [vmem:[#allocation5 + $0x3d4] sm:$0xf] }
  0x9e   :  { %2230 = vmatpush.bf16.msra.mxu3 %v6017_v60  ;;  %v5773_v56 = vor.u32 %v7696_v47, %v5770_v48  ;;  %v5777_v60 = vor.u32 %v7703_v54, %v5776_v53  ;;  %v6304_v53 = vld [vmem:[#allocation5 + $0x7f8] sm:$0xf]  ;;  %v7835_v54 = vld [vmem:[#allocation5 + $0x824] sm:$0xf0] }
  0x9f   :  { %2174 = vmatpush.bf16.msra.mxu0 %v5965_v63  ;;  %v7780_v63 = vld [vmem:[#allocation5 + $0x674] sm:$0xf] }
  0xa0   :  { %2193 = vmatpush.bf16.msra.mxu1 %v6349_v5  ;;  %v6109_v9 = vor.u32 %v7780_v63, %v6106_v0  ;;  %v6305_v63 = vor.u32 %v7835_v54, %v6304_v53  ;;  %v7721_v0 = vld [vmem:[#allocation5 + $0x49c] sm:$0xf]  ;;  %v5730_v53 = vld [vmem:[#allocation5 + $0x3a8] sm:$0xf0] }
  0xa1   :  { %2212 = vmatpush.bf16.msra.mxu2 %v5585_v62  ;;  %v5722_v62 = vld [vmem:[#allocation5 + $0x3a0] sm:$0xf0] }
  0xa2   :  { %2231 = vmatpush.bf16.msra.mxu3 %v5969_v6  ;;  %v5725_v5 = vor.u32 %v7684_v61, %v5722_v62  ;;  %v7583_v6 = vld [vmem:[#allocation5 + $0x44] sm:$0xf0]  ;;  %v5925_v62 = vor.u32 %v7733_v49, %v5922_v50  ;;  %v7685_v50 = vld [vmem:[#allocation5 + $0x37c] sm:$0xf] }
  0xa3   :  { %2175 = vmatpush.bf16.msra.mxu0 %v5917_v14  ;;  %v7679_v14 = vld [vmem:[#allocation5 + $0x344] sm:$0xf0]  ;;  %v5297_v20 = vor.u32 %v7583_v6, %v5296_v3  ;;  %v5733_v8 = vor.u32 %v7685_v50, %v5730_v53  ;;  %v5592_v53 = vld [vmem:[#allocation5 + $0x260] sm:$0xf] }
  0xa4   :  { %2194 = vmatpush.bf16.msra.mxu1 %v6301_v17  ;;  %v6400_v17 = vld [vmem:[#allocation5 + $0x8b8] sm:$0xf]  ;;  %v7823_v6 = vld [vmem:[#allocation5 + $0x7c4] sm:$0xf0] }
  0xa5   :  { %2213 = vmatpush.bf16.msra.mxu2 %v5537_v13  ;;  %v5680_v13 = vld [vmem:[#allocation5 + $0x318] sm:$0xf] }
  0xa6   :  { %2232 = vmatpush.bf16.msra.mxu3 %v5921_v18  ;;  %v7859_v18 = vld [vmem:[#allocation5 + $0x8e4] sm:$0xf0] }
  0xa7   :  { %2176 = vmatpush.bf16.msra.mxu0 %v5869_v26  ;;  %v5681_v26 = vor.u32 %v7679_v14, %v5680_v13  ;;  %v7709_v13 = vld [vmem:[#allocation5 + $0x43c] sm:$0xf]  ;;  %v5826_v14 = vld [vmem:[#allocation5 + $0x468] sm:$0xf0] }
  0xa8   :  { %2195 = vmatpush.bf16.msra.mxu1 %v6253_v29  ;;  %v6401_v29 = vor.u32 %v7859_v18, %v6400_v17  ;;  %v6208_v18 = vld [vmem:[#allocation5 + $0x738] sm:$0xf] }
  0xa9   :  { %2214 = vmatpush.bf16.msra.mxu2 %v5489_v25  ;;  %v6061_v25 = vor.u32 %v7768_v11, %v6058_v12  ;;  %v5877_v11 = vor.u32 %v7721_v0, %v5874_v1  ;;  %v7781_v0 = vld [vmem:[#allocation5 + $0x67c] sm:$0xf]  ;;  %v6114_v1 = vld [vmem:[#allocation5 + $0x6a8] sm:$0xf0] }
  0xaa   :  { %2233 = vmatpush.bf16.msra.mxu3 %v5873_v30  ;;  %2110 = vmatmul.bf16.gmra.mxu0 %v8385_v39  ;;  %v7745_v30 = vld [vmem:[#allocation5 + $0x55c] sm:$0xf] }
  0xab   :  { %2177 = vmatpush.bf16.msra.mxu0 %v5821_v38  ;;  %2129 = vmatmul.bf16.gmra.mxu1 %v8387_v44  ;;  %v7841_v38 = vld [vmem:[#allocation5 + $0x85c] sm:$0xf]  ;;  %v5973_v41 = vor.u32 %v7745_v30, %v5970_v31  ;;  %v5829_v30 = vor.u32 %v7709_v13, %v5826_v14  ;;  %v6209_v31 = vor.u32 %v7811_v19, %v6208_v18  ;;  %v6066_v19 = vld [vmem:[#allocation5 + $0x648] sm:$0xf0] }
  0xac   :  { %2196 = vmatpush.bf16.msra.mxu1 %v6205_v42  ;;  %2148 = vmatmul.bf16.gmra.mxu2 %v8389_v45  ;;  %v6353_v42 = vor.u32 %v7847_v35, %v6352_v34  ;;  %v6357_v48 = vor.u32 %v7841_v38, %v6354_v40  ;;  %v7799_v38 = vld [vmem:[#allocation5 + $0x704] sm:$0xf0]  ;;  %v7601_v40 = vld [vmem:[#allocation5 + $0xdc] sm:$0xf]  ;;  %v6117_v14 = vor.u32 %v7781_v0, %v6114_v1  ;;  %v6312_v1 = vld [vmem:[#allocation5 + $0x800] sm:$0xf] }
  0xad   :  { %2215 = vmatpush.bf16.msra.mxu2 %v5441_v37  ;;  %2167 = vmatmul.bf16.gmra.mxu3 %v8385_v39  ;;  %v5586_v37 = vld [vmem:[#allocation5 + $0x288] sm:$0xf0] }
  0xae   :  { %2234 = vmatpush.bf16.msra.mxu3 %v5825_v43  ;;  %v8422_v43 = vperm.slane %v8419_v27, 0  ;;  %v5589_v47 = vor.u32 %v7649_v36, %v5586_v37  ;;  %v6160_v37 = vld [vmem:[#allocation5 + $0x6d8] sm:$0xf] }
  0xaf   :  { %2178 = vmatpush.bf16.msra.mxu0 %v5773_v56  ;;  %v6161_v49 = vor.u32 %v7799_v38, %v6160_v37 }
  0xb0   :  { %2197 = vmatpush.bf16.msra.mxu1 %v6157_v59  ;;  %v6306_v59 = vld [vmem:[#allocation5 + $0x828] sm:$0xf0] }
  0xb1   :  { %2216 = vmatpush.bf16.msra.mxu2 %v5393_v55  ;;  %v7637_v55 = vld [vmem:[#allocation5 + $0x1fc] sm:$0xf] }
  0xb2   :  { %2235 = vmatpush.bf16.msra.mxu3 %v5777_v60  ;;  %v5541_v3 = vor.u32 %v7637_v55, %v5538_v57  ;;  %v6112_v57 = vld [vmem:[#allocation5 + $0x678] sm:$0xf] }
  0xb3   :  { %2179 = vmatpush.bf16.msra.mxu0 %v5725_v5  ;;  %v6256_v5 = vld [vmem:[#allocation5 + $0x798] sm:$0xf] }
  0xb4   :  { %2198 = vmatpush.bf16.msra.mxu1 %v6109_v9  ;;  %v7817_v9 = vld [vmem:[#allocation5 + $0x79c] sm:$0xf]  ;;  %v6257_v12 = vor.u32 %v7823_v6, %v6256_v5  ;;  %v5682_v5 = vld [vmem:[#allocation5 + $0x348] sm:$0xf0] }
  0xb5   :  { %2217 = vmatpush.bf16.msra.mxu2 %v5345_v4  ;;  %v6309_v4 = vor.u32 %v7829_v58, %v6306_v59  ;;  %v7787_v58 = vld [vmem:[#allocation5 + $0x6a4] sm:$0xf0]  ;;  %v7589_v59 = vld [vmem:[#allocation5 + $0x7c] sm:$0xf] }
  0xb6   :  { %2236 = vmatpush.bf16.msra.mxu3 %v5729_v10  ;;  %v6258_v10 = vld [vmem:[#allocation5 + $0x7c8] sm:$0xf0] }
  0xb7   :  { %2180 = vmatpush.bf16.msra.mxu0 %v5677_v21  ;;  %v1878_v56 = vpop.f32.mrf.mxu0  ;;  %v6261_v17 = vor.u32 %v7817_v9, %v6258_v10  ;;  %v6113_v9 = vor.u32 %v7787_v58, %v6112_v57  ;;  %v6064_v10 = vld [vmem:[#allocation5 + $0x618] sm:$0xf]  ;;  %v7650_v57 = vld [vmem:[#allocation5 + $0x264] sm:$0xf]  ;;  %v5594_v58 = vld [vmem:[#allocation5 + $0x290] sm:$0xf0] }
  0xb8   :  { %2199 = vmatpush.bf16.msra.mxu1 %v6061_v25  ;;  %v1879_v60 = vadd.f32 %v1878_v56, %v8422_v43  ;;  %v1897_v61 = vpop.f32.mrf.mxu1  ;;  %v7805_v25 = vld [vmem:[#allocation5 + $0x73c] sm:$0xf]  ;;  %v5597_v0 = vor.u32 %v7650_v57, %v5594_v58  ;;  %v5450_v57 = vld [vmem:[#allocation5 + $0x170] sm:$0xf0] }
  0xb9   :  { %2218 = vmatpush.bf16.msra.mxu2 %v5297_v20  ;;  %v7613_v20 = vld [vmem:[#allocation5 + $0x13c] sm:$0xf] }
  0xba   :  { %2237 = vmatpush.bf16.msra.mxu3 %v5681_v26  ;;  %v1898_v2 = vadd.f32 %v1897_v61, %v1879_v60  ;;  %2181 = vmatmul.bf16.vlgmr.msra.gmra.mxu0 %v8377_v51  ;;  %v6210_v26 = vld [vmem:[#allocation5 + $0x768] sm:$0xf0]  ;;  %v5445_v35 = vor.u32 %v7613_v20, %v5442_v24  ;;  %v6408_v20 = vld [vmem:[#allocation5 + $0x8c0] sm:$0xf]  ;;  %v7668_v24 = vld [vmem:[#allocation5 + $0x2ec] sm:$0xf0] }
  0xbb   :  { %2249 = vmatpush.bf16.msrb.mxu0 %v6401_v29  ;;  %2200 = vmatmul.bf16.vlgmr.msra.gmra.mxu1 %v8379_v52  ;;  %v6213_v36 = vor.u32 %v7805_v25, %v6210_v26  ;;  %v6024_v25 = vld [vmem:[#allocation5 + $0x5c0] sm:$0xf] }
  0xbc   :  { %2268 = vmatpush.bf16.msrb.mxu1 %v5637_v32  ;;  %2219 = vmatmul.bf16.vlgmr.msra.gmra.mxu2 %v8375_v46  ;;  %v7697_v32 = vld [vmem:[#allocation5 + $0x3dc] sm:$0xf] }
  0xbd   :  { %2287 = vmatpush.bf16.msrb.mxu2 %v6021_v28  ;;  %2238 = vmatmul.bf16.vlgmr.msra.gmra.mxu3 %v8377_v51 }
  0xbe   :  { %2306 = vmatpush.bf16.msrb.mxu3 %v6405_v33  ;;  %v5778_v33 = vld [vmem:[#allocation5 + $0x408] sm:$0xf0] }
  0xbf   :  { %2250 = vmatpush.bf16.msrb.mxu0 %v6353_v42  ;;  %v1916_v15 = vpop.f32.mrf.mxu2  ;;  %v1880_v23 = vpop.f32.mrf.mxu0  ;;  %v7793_v42 = vld [vmem:[#allocation5 + $0x6dc] sm:$0xf] }
  0xc0   :  { %2269 = vmatpush.bf16.msrb.mxu1 %v5589_v47  ;;  %v8429_v21 = vadd.f32 %v1916_v15, %v1898_v2  ;;  %v8431_v22 = vpop.f32.mrf.mxu3  ;;  %v1881_v28 = vadd.f32 %v1880_v23, %v8422_v43  ;;  %v1899_v29 = vpop.f32.mrf.mxu1  ;;  %v6162_v47 = vld [vmem:[#allocation5 + $0x708] sm:$0xf0]  ;;  %v7577_v15 = vld [vmem:[#allocation5 + $0x1c] sm:$0xf]  ;;  %v5640_v23 = vld [vmem:[#allocation5 + $0x2c0] sm:$0xf] }
  0xc1   :  { %2288 = vmatpush.bf16.msrb.mxu2 %v5973_v41  ;;  %v5394_v41 = vld [vmem:[#allocation5 + $0x108] sm:$0xf0]  ;;  %v6165_v56 = vor.u32 %v7793_v42, %v6162_v47  ;;  %v7848_v42 = vld [vmem:[#allocation5 + $0x88c] sm:$0xf0] }
  0xc2   :  { %2307 = vmatpush.bf16.msrb.mxu3 %v6357_v48  ;;  %v1900_v34 = vadd.f32 %v1899_v29, %v1881_v28  ;;  %v5781_v48 = vor.u32 %v7697_v32, %v5778_v33  ;;  %v5397_v55 = vor.u32 %v7601_v40, %v5394_v41  ;;  %v2553_v6 = vmax.f32 %v8429_v21, 0.0  ;;  %v7860_v21 = vld [vmem:[#allocation5 + $0x8ec] sm:$0xf0]  ;;  %v6360_v41 = vld [vmem:[#allocation5 + $0x860] sm:$0xf] }
  0xc3   :  { %2251 = vmatpush.bf16.msrb.mxu0 %v6305_v63  ;;  %v5346_v63 = vld [vmem:[#allocation5 + $0xa8] sm:$0xf0]  ;;  %v7764_v29 = vld [vmem:[#allocation5 + $0x5ec] sm:$0xf0]  ;;  %v6409_v38 = vor.u32 %v7860_v21, %v6408_v20  ;;  %v5641_v40 = vor.u32 %v7668_v24, %v5640_v23  ;;  %v6264_v21 = vld [vmem:[#allocation5 + $0x7a0] sm:$0xf] }
  0xc4   :  { %2270 = vmatpush.bf16.msrb.mxu1 %v5541_v3  ;;  %v5349_v13 = vor.u32 %v7589_v59, %v5346_v63 }
  0xc5   :  { %2289 = vmatpush.bf16.msrb.mxu2 %v5925_v62 }
  0xc6   :  { %2308 = vmatpush.bf16.msrb.mxu3 %v6309_v4  ;;  %v7673_v4 = vld [vmem:[#allocation5 + $0x31c] sm:$0xf] }
  0xc7   :  { %2252 = vmatpush.bf16.msrb.mxu0 %v6257_v12  ;;  %v1918_v54 = vpop.f32.mrf.mxu2  ;;  %v1883_v62 = vpop.f32.mrf.mxu0  ;;  %v5685_v26 = vor.u32 %v7673_v4, %v5682_v5  ;;  %v5544_v4 = vld [vmem:[#allocation5 + $0x200] sm:$0xf]  ;;  %v7644_v5 = vld [vmem:[#allocation5 + $0x22c] sm:$0xf0] }
  0xc8   :  { %2271 = vmatpush.bf16.msrb.mxu1 %v5493_v16  ;;  %v1919_v60 = vadd.f32 %v1918_v54, %v1900_v34  ;;  %v8434_v61 = vpop.f32.mrf.mxu3  ;;  %v1884_v2 = vadd.f32 %v1883_v62, %v8422_v43  ;;  %v1902_v3 = vpop.f32.mrf.mxu1  ;;  %v5298_v16 = vld [vmem:[#allocation5 + $0x48] sm:$0xf0]  ;;  %v7656_v54 = vld [vmem:[#allocation5 + $0x28c] sm:$0xf0]  ;;  %v5545_v20 = vor.u32 %v7644_v5, %v5544_v4  ;;  %v5400_v5 = vld [vmem:[#allocation5 + $0xe0] sm:$0xf] }
  0xc9   :  { %2290 = vmatpush.bf16.msrb.mxu2 %v5877_v11  ;;  %v7775_v11 = vld [vmem:[#allocation5 + $0x644] sm:$0xf0]  ;;  %v5301_v33 = vor.u32 %v7577_v15, %v5298_v16  ;;  %v5593_v62 = vor.u32 %v7656_v54, %v5592_v53 }
  0xca   :  { %2309 = vmatpush.bf16.msrb.mxu3 %v6261_v17  ;;  %v2565_v7 = vmax.f32 %v1919_v60, 0.0  ;;  %v1903_v12 = vadd.f32 %v1902_v3, %v1884_v2  ;;  %v7769_v17 = vld [vmem:[#allocation5 + $0x61c] sm:$0xf]  ;;  %2186 = vmatmul.bf16.gmra.mxu0 %v8387_v44  ;;  %v6065_v28 = vor.u32 %v7775_v11, %v6064_v10  ;;  %v8450_v60 = vperm.slane %v8419_v27, 1  ;;  %v7836_v2 = vld [vmem:[#allocation5 + $0x82c] sm:$0xf0] }
  0xcb   :  { %2253 = vmatpush.bf16.msrb.mxu0 %v6209_v31  ;;  %2205 = vmatmul.bf16.gmra.mxu1 %v8389_v45  ;;  %v5642_v31 = vld [vmem:[#allocation5 + $0x2f0] sm:$0xf0]  ;;  %v6069_v34 = vor.u32 %v7769_v17, %v6066_v19  ;;  %v7740_v10 = vld [vmem:[#allocation5 + $0x52c] sm:$0xf0]  ;;  %v7638_v11 = vld [vmem:[#allocation5 + $0x204] sm:$0xf]  ;;  %v6313_v15 = vor.u32 %v7836_v2, %v6312_v1 }
  0xcc   :  { %2272 = vmatpush.bf16.msrb.mxu1 %v5445_v35  ;;  %v8438_v18 = vpack.c.bf16 %v2565_v7, %v2553_v6  ;;  %2224 = vmatmul.bf16.gmra.mxu2 %v8385_v39  ;;  %v5928_v6 = vld [vmem:[#allocation5 + $0x500] sm:$0xf]  ;;  %v1936_v7 = vadd.f32 %v8431_v22, %v8450_v60  ;;  %v7824_v22 = vld [vmem:[#allocation5 + $0x7cc] sm:$0xf0] }
  0xcd   :  { %2291 = vmatpush.bf16.msrb.mxu2 %v5829_v30  ;;  %2243 = vmatmul.bf16.gmra.mxu3 %v8387_v44  ;;  %v7662_v30 = vld [vmem:[#allocation5 + $0x2c4] sm:$0xf]  ;;  %v5929_v23 = vor.u32 %v7740_v10, %v5928_v6  ;;  %v6168_v1 = vld [vmem:[#allocation5 + $0x6e0] sm:$0xf]  ;;  %v7800_v2 = vld [vmem:[#allocation5 + $0x70c] sm:$0xf0] }
  0xce   :  { %2310 = vmatpush.bf16.msrb.mxu3 %v6213_v36  ;;  %v5645_v50 = vor.u32 %v7662_v30, %v5642_v31  ;;  %v7728_v30 = vld [vmem:[#allocation5 + $0x4cc] sm:$0xf0]  ;;  %v7626_v31 = vld [vmem:[#allocation5 + $0x1a4] sm:$0xf] }
  0xcf   :  { %2254 = vmatpush.bf16.msrb.mxu0 %v6161_v49  ;;  %v1921_v32 = vpop.f32.mrf.mxu2  ;;  %v1885_v37 = vpop.f32.mrf.mxu0  ;;  %v6025_v49 = vor.u32 %v7764_v29, %v6024_v25  ;;  %v5496_v25 = vld [vmem:[#allocation5 + $0x1a0] sm:$0xf]  ;;  %v7608_v6 = vld [vmem:[#allocation5 + $0x10c] sm:$0xf0] }
  0xd0   :  { %2273 = vmatpush.bf16.msrb.mxu1 %v5397_v55  ;;  %v8444_v35 = vadd.f32 %v1921_v32, %v1903_v12  ;;  %v8446_v36 = vpop.f32.mrf.mxu3  ;;  %v1886_v47 = vadd.f32 %v1885_v37, %v8422_v43  ;;  %v5976_v55 = vld [vmem:[#allocation5 + $0x560] sm:$0xf]  ;;  %v6361_v43 = vor.u32 %v7848_v42, %v6360_v41  ;;  %v5546_v12 = vld [vmem:[#allocation5 + $0x230] sm:$0xf0]  ;;  %v7704_v10 = vld [vmem:[#allocation5 + $0x40c] sm:$0xf0] }
  0xd1   :  { %2292 = vmatpush.bf16.msrb.mxu2 %v5781_v48  ;;  %v1904_v48 = vpop.f32.mrf.mxu1  ;;  %v5549_v24 = vor.u32 %v7638_v11, %v5546_v12  ;;  %v5498_v32 = vld [vmem:[#allocation5 + $0x1d0] sm:$0xf0]  ;;  %v7602_v11 = vld [vmem:[#allocation5 + $0xe4] sm:$0xf] }
  0xd2   :  { %2311 = vmatpush.bf16.msrb.mxu3 %v6165_v56  ;;  %v7752_v56 = vld [vmem:[#allocation5 + $0x58c] sm:$0xf0]  ;;  %v1905_v59 = vadd.f32 %v1904_v48, %v1886_v47  ;;  %v2577_v16 = vmax.f32 %v8444_v35, 0.0  ;;  %v6265_v35 = vor.u32 %v7824_v22, %v6264_v21  ;;  %v5501_v42 = vor.u32 %v7626_v31, %v5498_v32  ;;  %v5448_v47 = vld [vmem:[#allocation5 + $0x140] sm:$0xf] }
  0xd3   :  { %2255 = vmatpush.bf16.msrb.mxu0 %v6113_v9  ;;  %v5977_v63 = vor.u32 %v7752_v56, %v5976_v55  ;;  %v7620_v48 = vld [vmem:[#allocation5 + $0x16c] sm:$0xf0]  ;;  %v7614_v56 = vld [vmem:[#allocation5 + $0x144] sm:$0xf]  ;;  %v5402_v12 = vld [vmem:[#allocation5 + $0x110] sm:$0xf0] }
  0xd4   :  { %2274 = vmatpush.bf16.msrb.mxu1 %v5349_v13  ;;  %v7716_v55 = vld [vmem:[#allocation5 + $0x46c] sm:$0xf0]  ;;  %v5453_v4 = vor.u32 %v7614_v56, %v5450_v57  ;;  %v5405_v21 = vor.u32 %v7602_v11, %v5402_v12  ;;  %v5352_v22 = vld [vmem:[#allocation5 + $0x80] sm:$0xf]  ;;  %v7590_v31 = vld [vmem:[#allocation5 + $0x84] sm:$0xf] }
  0xd5   :  { %2293 = vmatpush.bf16.msrb.mxu2 %v5733_v8  ;;  %v5354_v32 = vld [vmem:[#allocation5 + $0xb0] sm:$0xf0]  ;;  %v7680_v56 = vld [vmem:[#allocation5 + $0x34c] sm:$0xf0]  ;;  %v7578_v57 = vld [vmem:[#allocation5 + $0x24] sm:$0xf] }
  0xd6   :  { %2312 = vmatpush.bf16.msrb.mxu3 %v6117_v14 }
  0xd7   :  { %2256 = vmatpush.bf16.msrb.mxu0 %v6065_v28  ;;  %v1923_v3 = vpop.f32.mrf.mxu2  ;;  %v1954_v13 = vpop.f32.mrf.mxu0  ;;  %v5880_v28 = vld [vmem:[#allocation5 + $0x4a0] sm:$0xf] }
  0xd8   :  { %2275 = vmatpush.bf16.msrb.mxu1 %v5301_v33  ;;  %v1924_v8 = vadd.f32 %v1923_v3, %v1905_v59  ;;  %v8454_v9 = vpop.f32.mrf.mxu3  ;;  %v1955_v19 = vadd.f32 %v1954_v13, %v1936_v7  ;;  %v5881_v41 = vor.u32 %v7728_v30, %v5880_v28  ;;  %v5784_v7 = vld [vmem:[#allocation5 + $0x3e0] sm:$0xf]  ;;  %v7692_v30 = vld [vmem:[#allocation5 + $0x3ac] sm:$0xf0] }
  0xd9   :  { %2294 = vmatpush.bf16.msrb.mxu2 %v5685_v26  ;;  %v1973_v14 = vpop.f32.mrf.mxu1  ;;  %v7632_v26 = vld [vmem:[#allocation5 + $0x1cc] sm:$0xf0] }
  0xda   :  { %2313 = vmatpush.bf16.msrb.mxu3 %v6069_v34  ;;  %v2589_v17 = vmax.f32 %v1924_v8, 0.0  ;;  %v8457_v29 = vadd.f32 %v1973_v14, %v1955_v19  ;;  %2257 = vmatmul.bf16.vlgmr.msrb.gmra.mxu0 %v8379_v52  ;;  %v8466_v34 = vperm.slane %v8419_v27, 2  ;;  %v5497_v37 = vor.u32 %v7632_v26, %v5496_v25  ;;  %v7788_v19 = vld [vmem:[#allocation5 + $0x6ac] sm:$0xf0] }
  0xdb   :  { %2325 = vmatpush.bf16.msra.mxu0 %v5641_v40  ;;  %2276 = vmatmul.bf16.vlgmr.msrb.gmra.mxu1 %v8375_v46  ;;  %v7812_v40 = vld [vmem:[#allocation5 + $0x76c] sm:$0xf0]  ;;  %v1941_v25 = vadd.f32 %v8446_v36, %v8450_v60 }
  0xdc   :  { %2344 = vmatpush.bf16.msra.mxu1 %v6025_v49  ;;  %v8461_v33 = vpack.c.bf16 %v2589_v17, %v2577_v16  ;;  %2295 = vmatmul.bf16.vlgmr.msrb.gmra.mxu2 %v8377_v51  ;;  %v5832_v49 = vld [vmem:[#allocation5 + $0x440] sm:$0xf]  ;;  %v2554_v13 = vmax.f32 %v8457_v29, 0.0  ;;  %v5401_v16 = vor.u32 %v7608_v6, %v5400_v5  ;;  %v7584_v36 = vld [vmem:[#allocation5 + $0x4c] sm:$0xf0] }
  0xdd   :  { %2363 = vmatpush.bf16.msra.mxu2 %v6409_v38  ;;  %2314 = vmatmul.bf16.vlgmr.msrb.gmra.mxu3 %v8379_v52  ;;  %v6216_v38 = vld [vmem:[#allocation5 + $0x740] sm:$0xf]  ;;  %v6032_v5 = vld [vmem:[#allocation5 + $0x5c8] sm:$0xf]  ;;  %v7765_v6 = vld [vmem:[#allocation5 + $0x5f4] sm:$0xf0] }
  0xde   :  { %2382 = vmatpush.bf16.msra.mxu3 %v5645_v50  ;;  %v1938_v50 = vadd.f32 %v8434_v61, %v8450_v60  ;;  %v5833_v61 = vor.u32 %v7716_v55, %v5832_v49  ;;  %v6120_v17 = vld [vmem:[#allocation5 + $0x680] sm:$0xf] }
  0xdf   :  { %2326 = vmatpush.bf16.msra.mxu0 %v5593_v62  ;;  %v1992_v53 = vpop.f32.mrf.mxu2  ;;  %v1956_v59 = vpop.f32.mrf.mxu0  ;;  %v5304_v49 = vld [vmem:[#allocation5 + $0x20] sm:$0xf] }
  0xe0   :  { %2345 = vmatpush.bf16.msra.mxu1 %v5977_v63  ;;  %v2011_v54 = vpop.f32.mrf.mxu3  ;;  %v1993_v58 = vadd.f32 %v1992_v53, %v8466_v34  ;;  %v1957_v62 = vadd.f32 %v1956_v59, %v1938_v50  ;;  %v6217_v63 = vor.u32 %v7812_v40, %v6216_v38  ;;  %v6072_v40 = vld [vmem:[#allocation5 + $0x620] sm:$0xf]  ;;  %v5306_v59 = vld [vmem:[#allocation5 + $0x50] sm:$0xf0] }
  0xe1   :  { %2364 = vmatpush.bf16.msra.mxu2 %v6361_v43  ;;  %v1975_v43 = vpop.f32.mrf.mxu1  ;;  %v5688_v55 = vld [vmem:[#allocation5 + $0x320] sm:$0xf] }
  0xe2   :  { %2383 = vmatpush.bf16.msra.mxu3 %v5597_v0  ;;  %v5449_v0 = vor.u32 %v7620_v48, %v5448_v47  ;;  %v8471_v3 = vadd.f32 %v2011_v54, %v1993_v58  ;;  %v1976_v8 = vadd.f32 %v1975_v43, %v1957_v62  ;;  %v7776_v48 = vld [vmem:[#allocation5 + $0x64c] sm:$0xf0]  ;;  %v5357_v54 = vor.u32 %v7590_v31, %v5354_v32  ;;  %v5648_v43 = vld [vmem:[#allocation5 + $0x2c8] sm:$0xf]  ;;  %v7669_v62 = vld [vmem:[#allocation5 + $0x2f4] sm:$0xf0] }
  0xe3   :  { %2327 = vmatpush.bf16.msra.mxu0 %v5545_v20  ;;  %v5785_v20 = vor.u32 %v7704_v10, %v5784_v7  ;;  %v5689_v7 = vor.u32 %v7680_v56, %v5688_v55  ;;  %v1943_v10 = vadd.f32 %v8454_v9, %v8450_v60  ;;  %v5984_v60 = vld [vmem:[#allocation5 + $0x568] sm:$0xf]  ;;  %v7753_v9 = vld [vmem:[#allocation5 + $0x594] sm:$0xf0]  ;;  %v6314_v55 = vld [vmem:[#allocation5 + $0x830] sm:$0xf0] }
  0xe4   :  { %2346 = vmatpush.bf16.msra.mxu1 %v5929_v23  ;;  %v2566_v14 = vmax.f32 %v1976_v8, 0.0  ;;  %v7596_v23 = vld [vmem:[#allocation5 + $0xac] sm:$0xf0]  ;;  %v5309_v8 = vor.u32 %v7578_v57, %v5306_v59  ;;  %v5936_v56 = vld [vmem:[#allocation5 + $0x508] sm:$0xf] }
  0xe5   :  { %2365 = vmatpush.bf16.msra.mxu2 %v6313_v15  ;;  %v6169_v15 = vor.u32 %v7800_v2, %v6168_v1  ;;  %v5353_v47 = vor.u32 %v7596_v23, %v5352_v22  ;;  %v7854_v1 = vld [vmem:[#allocation5 + $0x8c4] sm:$0xf]  ;;  %v6073_v2 = vor.u32 %v7776_v48, %v6072_v40  ;;  %v6033_v22 = vor.u32 %v7765_v6, %v6032_v5  ;;  %v7741_v57 = vld [vmem:[#allocation5 + $0x534] sm:$0xf0] }
  0xe6   :  { %2384 = vmatpush.bf16.msra.mxu3 %v5549_v24  ;;  %v5736_v24 = vld [vmem:[#allocation5 + $0x380] sm:$0xf]  ;;  %v8476_v26 = vpack.c.bf16 %v2566_v14, %v2554_v13  ;;  %v5649_v13 = vor.u32 %v7669_v62, %v5648_v43  ;;  %v7746_v23 = vld [vmem:[#allocation5 + $0x564] sm:$0xf] }
  0xe7   :  { %2328 = vmatpush.bf16.msra.mxu0 %v5497_v37  ;;  %v1994_v28 = vpop.f32.mrf.mxu2  ;;  %v1959_v37 = vpop.f32.mrf.mxu0  ;;  %v5737_v53 = vor.u32 %v7692_v30, %v5736_v24  ;;  %v5978_v24 = vld [vmem:[#allocation5 + $0x590] sm:$0xf0]  ;;  %v7734_v48 = vld [vmem:[#allocation5 + $0x504] sm:$0xf] }
  0xe8   :  { %2347 = vmatpush.bf16.msra.mxu1 %v5881_v41  ;;  %v2013_v29 = vpop.f32.mrf.mxu3  ;;  %v1960_v41 = vadd.f32 %v1959_v37, %v1941_v25  ;;  %v7842_v25 = vld [vmem:[#allocation5 + $0x864] sm:$0xf] }
  0xe9   :  { %2366 = vmatpush.bf16.msra.mxu2 %v6265_v35  ;;  %v1995_v35 = vadd.f32 %v1994_v28, %v8466_v34  ;;  %v1978_v38 = vpop.f32.mrf.mxu1 }
  0xea   :  { %2385 = vmatpush.bf16.msra.mxu3 %v5501_v42  ;;  %v6121_v42 = vor.u32 %v7788_v19, %v6120_v17  ;;  %v8481_v58 = vadd.f32 %v1978_v38, %v1960_v41  ;;  %2262 = vmatmul.bf16.gmra.mxu0 %v8389_v45  ;;  %v5985_v38 = vor.u32 %v7753_v9, %v5984_v60 }
  0xeb   :  { %2329 = vmatpush.bf16.msra.mxu0 %v5449_v0  ;;  %v8479_v50 = vadd.f32 %v2013_v29, %v1995_v35  ;;  %2281 = vmatmul.bf16.gmra.mxu1 %v8385_v39  ;;  %v6026_v0 = vld [vmem:[#allocation5 + $0x5f0] sm:$0xf0]  ;;  %v5981_v35 = vor.u32 %v7746_v23, %v5978_v24 }
  0xec   :  { %2348 = vmatpush.bf16.msra.mxu1 %v5833_v61  ;;  %2300 = vmatmul.bf16.gmra.mxu2 %v8387_v44  ;;  %v5305_v61 = vor.u32 %v7584_v36, %v5304_v49  ;;  %v6362_v29 = vld [vmem:[#allocation5 + $0x890] sm:$0xf0]  ;;  %v2578_v40 = vmax.f32 %v8481_v58, 0.0  ;;  %v7830_v36 = vld [vmem:[#allocation5 + $0x804] sm:$0xf]  ;;  %v8497_v58 = vperm.slane %v8419_v27, 3 }
  0xed   :  { %2367 = vmatpush.bf16.msra.mxu2 %v6217_v63  ;;  %2319 = vmatmul.bf16.gmra.mxu3 %v8389_v45  ;;  %v7758_v63 = vld [vmem:[#allocation5 + $0x5c4] sm:$0xf]  ;;  %v6365_v37 = vor.u32 %v7842_v25, %v6362_v29  ;;  %v5930_v49 = vld [vmem:[#allocation5 + $0x530] sm:$0xf0]  ;;  %v6317_v6 = vor.u32 %v7830_v36, %v6314_v55  ;;  %v7717_v29 = vld [vmem:[#allocation5 + $0x474] sm:$0xf0] }
  0xee   :  { %2386 = vmatpush.bf16.msra.mxu3 %v5453_v4  ;;  %v6410_v4 = vld [vmem:[#allocation5 + $0x8f0] sm:$0xf0]  ;;  %v6029_v14 = vor.u32 %v7758_v63, %v6026_v0  ;;  %v7794_v36 = vld [vmem:[#allocation5 + $0x6e4] sm:$0xf] }
  0xef   :  { %2330 = vmatpush.bf16.msra.mxu0 %v5401_v16  ;;  %v1997_v11 = vpop.f32.mrf.mxu2  ;;  %v7657_v16 = vld [vmem:[#allocation5 + $0x294] sm:$0xf0]  ;;  %v1961_v19 = vpop.f32.mrf.mxu0  ;;  %v6266_v27 = vld [vmem:[#allocation5 + $0x7d0] sm:$0xf0] }
  0xf0   :  { %2349 = vmatpush.bf16.msra.mxu1 %v5785_v20  ;;  %v2016_v12 = vpop.f32.mrf.mxu3  ;;  %v1998_v17 = vadd.f32 %v1997_v11, %v8466_v34  ;;  %v1962_v28 = vadd.f32 %v1961_v19, %v1943_v10  ;;  %v5882_v10 = vld [vmem:[#allocation5 + $0x4d0] sm:$0xf0]  ;;  %v5888_v11 = vld [vmem:[#allocation5 + $0x4a8] sm:$0xf] }
  0xf1   :  { %2368 = vmatpush.bf16.msra.mxu2 %v6169_v15  ;;  %v5600_v15 = vld [vmem:[#allocation5 + $0x268] sm:$0xf]  ;;  %v1980_v20 = vpop.f32.mrf.mxu1  ;;  %v6218_v25 = vld [vmem:[#allocation5 + $0x770] sm:$0xf0] }
  0xf2   :  { %2387 = vmatpush.bf16.msra.mxu3 %v5405_v21  ;;  %v6413_v21 = vor.u32 %v7854_v1, %v6410_v4  ;;  %v8490_v30 = vadd.f32 %v2016_v12, %v1998_v17  ;;  %v1981_v31 = vadd.f32 %v1980_v20, %v1962_v28  ;;  %v5601_v32 = vor.u32 %v7657_v16, %v5600_v15  ;;  %v7633_v4 = vld [vmem:[#allocation5 + $0x1d4] sm:$0xf0]  ;;  %v5456_v15 = vld [vmem:[#allocation5 + $0x148] sm:$0xf]  ;;  %v7710_v20 = vld [vmem:[#allocation5 + $0x444] sm:$0xf] }
  0xf3   :  { %2331 = vmatpush.bf16.msra.mxu0 %v5353_v47  ;;  %v7645_v47 = vld [vmem:[#allocation5 + $0x234] sm:$0xf0]  ;;  %v5840_v28 = vld [vmem:[#allocation5 + $0x448] sm:$0xf] }
  0xf4   :  { %2350 = vmatpush.bf16.msra.mxu1 %v5737_v53  ;;  %v2590_v41 = vmax.f32 %v1981_v31, 0.0  ;;  %v7729_v12 = vld [vmem:[#allocation5 + $0x4d4] sm:$0xf0] }
  0xf5   :  { %2369 = vmatpush.bf16.msra.mxu2 %v6121_v42  ;;  %v5552_v42 = vld [vmem:[#allocation5 + $0x208] sm:$0xf]  ;;  %v7621_v16 = vld [vmem:[#allocation5 + $0x174] sm:$0xf0]  ;;  %v5889_v19 = vor.u32 %v7729_v12, %v5888_v11 }
  0xf6   :  { %2388 = vmatpush.bf16.msra.mxu3 %v5357_v54  ;;  %v8493_v59 = vpack.c.bf16 %v2590_v41, %v2578_v40  ;;  %v5553_v1 = vor.u32 %v7645_v47, %v5552_v42  ;;  %v7609_v40 = vld [vmem:[#allocation5 + $0x114] sm:$0xf0]  ;;  %v7698_v41 = vld [vmem:[#allocation5 + $0x3e4] sm:$0xf] }
  0xf7   :  { %2332 = vmatpush.bf16.msra.mxu0 %v5305_v61  ;;  %v1999_v53 = vpop.f32.mrf.mxu2  ;;  %v2030_v62 = vpop.f32.mrf.mxu0  ;;  %v5504_v61 = vld [vmem:[#allocation5 + $0x1a8] sm:$0xf]  ;;  %v7693_v11 = vld [vmem:[#allocation5 + $0x3b4] sm:$0xf0] }
  0xf8   :  { %2351 = vmatpush.bf16.msra.mxu1 %v5689_v7  ;;  %v2018_v54 = vpop.f32.mrf.mxu3  ;;  %v2000_v43 = vadd.f32 %v1999_v53, %v8466_v34  ;;  %v2031_v0 = vadd.f32 %v2030_v62, %v8471_v3  ;;  %v5937_v7 = vor.u32 %v7741_v57, %v5936_v56  ;;  %v7818_v34 = vld [vmem:[#allocation5 + $0x7a4] sm:$0xf]  ;;  %v6170_v53 = vld [vmem:[#allocation5 + $0x710] sm:$0xf0]  ;;  %v5792_v56 = vld [vmem:[#allocation5 + $0x3e8] sm:$0xf] }
  0xf9   :  { %2370 = vmatpush.bf16.msra.mxu2 %v6073_v2  ;;  %v2049_v63 = vpop.f32.mrf.mxu1  ;;  %v5933_v2 = vor.u32 %v7734_v48, %v5930_v49  ;;  %v6269_v17 = vor.u32 %v7818_v34, %v6266_v27  ;;  %v5841_v48 = vor.u32 %v7717_v29, %v5840_v28  ;;  %v5786_v49 = vld [vmem:[#allocation5 + $0x410] sm:$0xf0]  ;;  %v5744_v27 = vld [vmem:[#allocation5 + $0x388] sm:$0xf] }
  0xfa   :  { %2389 = vmatpush.bf16.msra.mxu3 %v5309_v8  ;;  %v8500_v5 = vadd.f32 %v2018_v54, %v2000_v43  ;;  %v7722_v8 = vld [vmem:[#allocation5 + $0x4a4] sm:$0xf]  ;;  %2333 = vmatmul.bf16.vlgmr.msra.gmra.mxu0 %v8375_v46  ;;  %v2050_v3 = vadd.f32 %v2049_v63, %v8497_v58  ;;  %v2555_v54 = vmax.f32 %v2031_v0, 0.0  ;;  %v5789_v62 = vor.u32 %v7698_v41, %v5786_v49  ;;  %v5360_v63 = vld [vmem:[#allocation5 + $0x88] sm:$0xf] }
  0xfb   :  { %2401 = vmatpush.bf16.msrb.mxu0 %v6029_v14  ;;  %2352 = vmatmul.bf16.vlgmr.msra.gmra.mxu1 %v8377_v51  ;;  %v5885_v14 = vor.u32 %v7722_v8, %v5882_v10  ;;  %v7782_v0 = vld [vmem:[#allocation5 + $0x684] sm:$0xf]  ;;  %v6122_v34 = vld [vmem:[#allocation5 + $0x6b0] sm:$0xf0]  ;;  %v5696_v29 = vld [vmem:[#allocation5 + $0x328] sm:$0xf] }
  0xfc   :  { %2420 = vmatpush.bf16.msrb.mxu1 %v6413_v21  ;;  %2371 = vmatmul.bf16.vlgmr.msra.gmra.mxu2 %v8379_v52  ;;  %v5834_v21 = vld [vmem:[#allocation5 + $0x470] sm:$0xf0]  ;;  %v7855_v49 = vld [vmem:[#allocation5 + $0x8cc] sm:$0xf] }
  0xfd   :  { %2439 = vmatpush.bf16.msrb.mxu2 %v5649_v13  ;;  %2390 = vmatmul.bf16.vlgmr.msra.gmra.mxu3 %v8375_v46  ;;  %v5505_v13 = vor.u32 %v7633_v4, %v5504_v61  ;;  %v6173_v61 = vor.u32 %v7794_v36, %v6170_v53  ;;  %v6074_v28 = vld [vmem:[#allocation5 + $0x650] sm:$0xf0]  ;;  %v6418_v36 = vld [vmem:[#allocation5 + $0x8f8] sm:$0xf0] }
  0xfe   :  { %2458 = vmatpush.bf16.msrb.mxu3 %v6033_v22  ;;  %v7806_v22 = vld [vmem:[#allocation5 + $0x744] sm:$0xf] }
  0xff   :  { %2402 = vmatpush.bf16.msrb.mxu0 %v5981_v35  ;;  %v2068_v23 = vpop.f32.mrf.mxu2  ;;  %v2032_v9 = vpop.f32.mrf.mxu0  ;;  %v5457_v35 = vor.u32 %v7621_v16, %v5456_v15  ;;  %v6221_v47 = vor.u32 %v7806_v22, %v6218_v25  ;;  %v7585_v15 = vld [vmem:[#allocation5 + $0x54] sm:$0xf0]  ;;  %v7770_v22 = vld [vmem:[#allocation5 + $0x624] sm:$0xf]  ;;  %v5745_v25 = vor.u32 %v7693_v11, %v5744_v27  ;;  %v7843_v27 = vld [vmem:[#allocation5 + $0x86c] sm:$0xf] }
 0x100   :  { %2421 = vmatpush.bf16.msrb.mxu1 %v6365_v37  ;;  %v2087_v24 = vpop.f32.mrf.mxu3  ;;  %v2069_v60 = vadd.f32 %v2068_v23, %v2050_v3  ;;  %v5837_v37 = vor.u32 %v7710_v20, %v5834_v21  ;;  %v7674_v20 = vld [vmem:[#allocation5 + $0x324] sm:$0xf]  ;;  %v5690_v21 = vld [vmem:[#allocation5 + $0x350] sm:$0xf0]  ;;  %v6370_v11 = vld [vmem:[#allocation5 + $0x898] sm:$0xf0] }
 0x101   :  { %2440 = vmatpush.bf16.msrb.mxu2 %v5601_v32  ;;  %v2051_v31 = vpop.f32.mrf.mxu1  ;;  %v2033_v32 = vadd.f32 %v2032_v9, %v8479_v50  ;;  %v7705_v50 = vld [vmem:[#allocation5 + $0x414] sm:$0xf0]  ;;  %v6034_v9 = vld [vmem:[#allocation5 + $0x5f8] sm:$0xf0] }
 0x102   :  { %2459 = vmatpush.bf16.msrb.mxu3 %v5985_v38  ;;  %v5408_v38 = vld [vmem:[#allocation5 + $0xe8] sm:$0xf]  ;;  %v8508_v42 = vadd.f32 %v2087_v24, %v2069_v60  ;;  %v5793_v4 = vor.u32 %v7705_v50, %v5792_v56  ;;  %v6125_v24 = vor.u32 %v7782_v0, %v6122_v34  ;;  %v7681_v60 = vld [vmem:[#allocation5 + $0x354] sm:$0xf0]  ;;  %v5602_v34 = vld [vmem:[#allocation5 + $0x298] sm:$0xf0] }
 0x103   :  { %2403 = vmatpush.bf16.msrb.mxu0 %v5933_v2  ;;  %v2567_v55 = vmax.f32 %v2033_v32, 0.0  ;;  %v5409_v43 = vor.u32 %v7609_v40, %v5408_v38  ;;  %v2052_v2 = vadd.f32 %v2051_v31, %v8497_v58  ;;  %v6416_v31 = vld [vmem:[#allocation5 + $0x8c8] sm:$0xf]  ;;  %v7861_v38 = vld [vmem:[#allocation5 + $0x8f4] sm:$0xf0] }
 0x104   :  { %2422 = vmatpush.bf16.msrb.mxu1 %v6317_v6  ;;  %v7686_v6 = vld [vmem:[#allocation5 + $0x384] sm:$0xf]  ;;  %v2556_v32 = vmax.f32 %v8508_v42, 0.0  ;;  %v7663_v40 = vld [vmem:[#allocation5 + $0x2cc] sm:$0xf]  ;;  %v6077_v42 = vor.u32 %v7770_v22, %v6074_v28 }
 0x105   :  { %2441 = vmatpush.bf16.msrb.mxu2 %v5553_v1  ;;  %v8510_v57 = vpack.c.bf16 %v2567_v55, %v2555_v54  ;;  %v7597_v1 = vld [vmem:[#allocation5 + $0xb4] sm:$0xf0]  ;;  %v5697_v54 = vor.u32 %v7681_v60, %v5696_v29  ;;  %v5938_v22 = vld [vmem:[#allocation5 + $0x538] sm:$0xf0]  ;;  %v7639_v28 = vld [vmem:[#allocation5 + $0x20c] sm:$0xf] }
 0x106   :  { %2460 = vmatpush.bf16.msrb.mxu3 %v5937_v7  ;;  %v5738_v7 = vld [vmem:[#allocation5 + $0x3b0] sm:$0xf0]  ;;  %v7849_v0 = vld [vmem:[#allocation5 + $0x894] sm:$0xf0] }
 0x107   :  { %2404 = vmatpush.bf16.msrb.mxu0 %v5885_v14  ;;  %v2070_v8 = vpop.f32.mrf.mxu2  ;;  %v2035_v3 = vpop.f32.mrf.mxu0  ;;  %v5312_v14 = vld [vmem:[#allocation5 + $0x28] sm:$0xf] }
 0x108   :  { %2423 = vmatpush.bf16.msrb.mxu1 %v6269_v17  ;;  %v2089_v10 = vpop.f32.mrf.mxu3  ;;  %v2071_v12 = vadd.f32 %v2070_v8, %v2052_v2  ;;  %v8514_v16 = vadd.f32 %v2035_v3, %v8490_v30  ;;  %v5361_v17 = vor.u32 %v7597_v1, %v5360_v63  ;;  %v7759_v30 = vld [vmem:[#allocation5 + $0x5cc] sm:$0xf]  ;;  %v5313_v41 = vor.u32 %v7585_v15, %v5312_v14  ;;  %v5986_v63 = vld [vmem:[#allocation5 + $0x598] sm:$0xf0] }
 0x109   :  { %2442 = vmatpush.bf16.msrb.mxu2 %v5505_v13  ;;  %v2054_v13 = vpop.f32.mrf.mxu1  ;;  %v6037_v50 = vor.u32 %v7759_v30, %v6034_v9  ;;  %v7651_v8 = vld [vmem:[#allocation5 + $0x26c] sm:$0xf]  ;;  %v5554_v30 = vld [vmem:[#allocation5 + $0x238] sm:$0xf0] }
 0x10a   :  { %2461 = vmatpush.bf16.msrb.mxu3 %v5889_v19  ;;  %v5741_v19 = vor.u32 %v7686_v6, %v5738_v7  ;;  %v2090_v23 = vadd.f32 %v2089_v10, %v2071_v12  ;;  %2338 = vmatmul.bf16.gmra.mxu0 %v8385_v39  ;;  %v6421_v6 = vor.u32 %v7855_v49, %v6418_v36  ;;  %v6368_v7 = vld [vmem:[#allocation5 + $0x868] sm:$0xf]  ;;  %v2579_v3 = vmax.f32 %v8514_v16, 0.0  ;;  %v7831_v9 = vld [vmem:[#allocation5 + $0x80c] sm:$0xf] }
 0x10b   :  { %2405 = vmatpush.bf16.msrb.mxu0 %v5837_v37  ;;  %2357 = vmatmul.bf16.gmra.mxu1 %v8387_v44  ;;  %v2055_v37 = vadd.f32 %v2054_v13, %v8497_v58  ;;  %v6369_v15 = vor.u32 %v7849_v0, %v6368_v7  ;;  %v5557_v49 = vor.u32 %v7639_v28, %v5554_v30  ;;  %v7801_v30 = vld [vmem:[#allocation5 + $0x714] sm:$0xf0] }
 0x10c   :  { %2424 = vmatpush.bf16.msrb.mxu1 %v6221_v47  ;;  %2376 = vmatmul.bf16.gmra.mxu2 %v8389_v45  ;;  %v5693_v47 = vor.u32 %v7674_v20, %v5690_v21  ;;  %v7735_v21 = vld [vmem:[#allocation5 + $0x50c] sm:$0xf] }
 0x10d   :  { %2443 = vmatpush.bf16.msrb.mxu2 %v5457_v35  ;;  %v2568_v35 = vmax.f32 %v2090_v23, 0.0  ;;  %2395 = vmatmul.bf16.gmra.mxu3 %v8385_v39 }
 0x10e   :  { %2462 = vmatpush.bf16.msrb.mxu3 %v5841_v48  ;;  %v5650_v48 = vld [vmem:[#allocation5 + $0x2f8] sm:$0xf0] }
 0x10f   :  { %2406 = vmatpush.bf16.msrb.mxu0 %v5789_v62  ;;  %v8522_v53 = vpack.c.bf16 %v2568_v35, %v2556_v32  ;;  %v2073_v55 = vpop.f32.mrf.mxu2  ;;  %v7747_v62 = vld [vmem:[#allocation5 + $0x56c] sm:$0xf]  ;;  %v2037_v2 = vpop.f32.mrf.mxu0 }
 0x110   :  { %2425 = vmatpush.bf16.msrb.mxu1 %v6173_v61  ;;  %v2092_v56 = vpop.f32.mrf.mxu3  ;;  %v2074_v1 = vadd.f32 %v2073_v55, %v2055_v37  ;;  %v2038_v10 = vadd.f32 %v2037_v2, %v8500_v5  ;;  %v5989_v14 = vor.u32 %v7747_v62, %v5986_v63  ;;  %v6373_v5 = vor.u32 %v7843_v27, %v6370_v11  ;;  %v7627_v55 = vld [vmem:[#allocation5 + $0x1ac] sm:$0xf]  ;;  %v6274_v62 = vld [vmem:[#allocation5 + $0x7d8] sm:$0xf0] }
 0x111   :  { %2444 = vmatpush.bf16.msrb.mxu2 %v5409_v43  ;;  %v6417_v43 = vor.u32 %v7861_v38, %v6416_v31  ;;  %v2056_v61 = vpop.f32.mrf.mxu1  ;;  %v6322_v31 = vld [vmem:[#allocation5 + $0x838] sm:$0xf0] }
 0x112   :  { %2463 = vmatpush.bf16.msrb.mxu3 %v5793_v4  ;;  %v5653_v4 = vor.u32 %v7663_v40, %v5650_v48  ;;  %v8525_v12 = vadd.f32 %v2092_v56, %v2074_v1  ;;  %v2591_v13 = vmax.f32 %v2038_v10, 0.0  ;;  %v2057_v16 = vadd.f32 %v2056_v61, %v8497_v58  ;;  %v7723_v58 = vld [vmem:[#allocation5 + $0x4ac] sm:$0xf]  ;;  %v7813_v10 = vld [vmem:[#allocation5 + $0x774] sm:$0xf0] }
 0x113   :  { %2407 = vmatpush.bf16.msrb.mxu0 %v5741_v19  ;;  %v8528_v19 = vld [vmem:[#allocation7] sm:$0xff]  ;;  %v5941_v40 = vor.u32 %v7735_v21, %v5938_v22  ;;  %v6325_v36 = vor.u32 %v7831_v9, %v6322_v31  ;;  %v7603_v9 = vld [vmem:[#allocation5 + $0xec] sm:$0xf] }
 0x114   :  { %2426 = vmatpush.bf16.msrb.mxu1 %v6125_v24  ;;  %v8531_v20 = vperm.slane %v8528_v19, 4  ;;  %v8533_v23 = vpack.c.bf16 %v2591_v13, %v2579_v3  ;;  %v6320_v24 = vld [vmem:[#allocation5 + $0x808] sm:$0xf]  ;;  %v2580_v63 = vmax.f32 %v8525_v12, 0.0  ;;  %v5458_v3 = vld [vmem:[#allocation5 + $0x178] sm:$0xf0] }
 0x115   :  { %2445 = vmatpush.bf16.msrb.mxu2 %v5361_v17  ;;  %v5605_v17 = vor.u32 %v7651_v8, %v5602_v34  ;;  %v6224_v8 = vld [vmem:[#allocation5 + $0x748] sm:$0xf]  ;;  %v7615_v34 = vld [vmem:[#allocation5 + $0x14c] sm:$0xf] }
 0x116   :  { %2464 = vmatpush.bf16.msrb.mxu3 %v5745_v25  ;;  %v7837_v25 = vld [vmem:[#allocation5 + $0x834] sm:$0xf0]  ;;  %v7807_v13 = vld [vmem:[#allocation5 + $0x74c] sm:$0xf]  ;;  %v5461_v28 = vor.u32 %v7615_v34, %v5458_v3 }
 0x117   :  { %2408 = vmatpush.bf16.msrb.mxu0 %v5693_v47  ;;  %v2075_v29 = vpop.f32.mrf.mxu2  ;;  %v2106_v35 = vpop.f32.mrf.mxu0  ;;  %v5890_v47 = vld [vmem:[#allocation5 + $0x4d8] sm:$0xf0] }
 0x118   :  { %2427 = vmatpush.bf16.msrb.mxu1 %v6077_v42  ;;  %v2094_v60 = vpop.f32.mrf.mxu3  ;;  %v2076_v32 = vadd.f32 %v2075_v29, %v2057_v16  ;;  %v2107_v38 = vadd.f32 %v2106_v35, %v8531_v20  ;;  %v6272_v42 = vld [vmem:[#allocation5 + $0x7a8] sm:$0xf]  ;;  %v5893_v2 = vor.u32 %v7723_v58, %v5890_v47  ;;  %v6225_v16 = vor.u32 %v7813_v10, %v6224_v8  ;;  %v7795_v35 = vld [vmem:[#allocation5 + $0x6ec] sm:$0xf]  ;;  %v5746_v58 = vld [vmem:[#allocation5 + $0x3b8] sm:$0xf0] }
 0x119   :  { %2446 = vmatpush.bf16.msrb.mxu2 %v5313_v41  ;;  %v2125_v37 = vpop.f32.mrf.mxu1  ;;  %v6321_v41 = vor.u32 %v7837_v25, %v6320_v24  ;;  %v7699_v24 = vld [vmem:[#allocation5 + $0x3ec] sm:$0xf]  ;;  %v5794_v25 = vld [vmem:[#allocation5 + $0x418] sm:$0xf0]  ;;  %v7777_v8 = vld [vmem:[#allocation5 + $0x654] sm:$0xf0] }
 0x11a   :  { %2465 = vmatpush.bf16.msrb.mxu3 %v5697_v54  ;;  %v2095_v48 = vadd.f32 %v2094_v60, %v2076_v32  ;;  %v7825_v54 = vld [vmem:[#allocation5 + $0x7d4] sm:$0xf0]  ;;  %v2126_v56 = vadd.f32 %v2125_v37, %v2107_v38  ;;  %2409 = vmatmul.bf16.vlgmr.msrb.gmra.mxu0 %v8377_v51  ;;  %v6176_v60 = vld [vmem:[#allocation5 + $0x6e8] sm:$0xf]  ;;  %v5410_v32 = vld [vmem:[#allocation5 + $0x118] sm:$0xf0]  ;;  %v5797_v38 = vor.u32 %v7699_v24, %v5794_v25 }
 0x11b   :  { %2477 = vmatpush.bf16.msra.mxu0 %v6417_v43  ;;  %2428 = vmatmul.bf16.vlgmr.msrb.gmra.mxu1 %v8379_v52  ;;  %v7819_v43 = vld [vmem:[#allocation5 + $0x7ac] sm:$0xf]  ;;  %v6273_v61 = vor.u32 %v7825_v54, %v6272_v42  ;;  %v6178_v37 = vld [vmem:[#allocation5 + $0x718] sm:$0xf0]  ;;  %v5413_v47 = vor.u32 %v7603_v9, %v5410_v32  ;;  %v7908_v25 = vld [vmem:[#allocation8 + $0x170] sm:$0xf0] }
 0x11c   :  { %2496 = vmatpush.bf16.msra.mxu1 %v5653_v4  ;;  %v2592_v1 = vmax.f32 %v2095_v48, 0.0  ;;  %2447 = vmatmul.bf16.vlgmr.msrb.gmra.mxu2 %v8375_v46  ;;  %v7711_v4 = vld [vmem:[#allocation5 + $0x44c] sm:$0xf]  ;;  %v6277_v0 = vor.u32 %v7819_v43, %v6274_v62  ;;  %v6181_v48 = vor.u32 %v7795_v35, %v6178_v37  ;;  %v6130_v43 = vld [vmem:[#allocation5 + $0x6b8] sm:$0xf0] }
 0x11d   :  { %2515 = vmatpush.bf16.msra.mxu2 %v6037_v50  ;;  %v5506_v50 = vld [vmem:[#allocation5 + $0x1d8] sm:$0xf0]  ;;  %2466 = vmatmul.bf16.vlgmr.msrb.gmra.mxu3 %v8377_v51  ;;  %v7591_v42 = vld [vmem:[#allocation5 + $0x8c] sm:$0xf]  ;;  %v6796_v9 = vld [vmem:[#allocation8 + $0x2e8] sm:$0xf] }
 0x11e   :  { %2534 = vmatpush.bf16.msra.mxu3 %v6421_v6  ;;  %v5842_v6 = vld [vmem:[#allocation5 + $0x478] sm:$0xf0]  ;;  %v5509_v7 = vor.u32 %v7627_v55, %v5506_v50  ;;  %v8542_v27 = vpack.c.bf16 %v2592_v1, %v2580_v63  ;;  %v7783_v50 = vld [vmem:[#allocation5 + $0x68c] sm:$0xf] }
 0x11f   :  { %2478 = vmatpush.bf16.msra.mxu0 %v6369_v15  ;;  %v2144_v11 = vpop.f32.mrf.mxu2  ;;  %v5845_v22 = vor.u32 %v7711_v4, %v5842_v6  ;;  %v7579_v10 = vld [vmem:[#allocation5 + $0x2c] sm:$0xf] }
 0x120   :  { %2497 = vmatpush.bf16.msra.mxu1 %v5605_v17  ;;  %9029 = vst [vmem:[#allocation16_spill] sm:$0xff] %v8542_v27  ;;  %v8544_v12 = vpop.f32.mrf.mxu3  ;;  %v8546_v15 = vadd.f32 %v2144_v11, %v2126_v56  ;;  %v2108_v17 = vpop.f32.mrf.mxu0  ;;  %v5362_v56 = vld [vmem:[#allocation5 + $0xb8] sm:$0xf0] }
 0x121   :  { %2516 = vmatpush.bf16.msra.mxu2 %v5989_v14  ;;  %v6226_v14 = vld [vmem:[#allocation5 + $0x778] sm:$0xf0]  ;;  %v2109_v21 = vadd.f32 %v2108_v17, %v8531_v20  ;;  %v5365_v3 = vor.u32 %v7591_v42, %v5362_v56  ;;  %v7771_v17 = vld [vmem:[#allocation5 + $0x62c] sm:$0xf] }
 0x122   :  { %2535 = vmatpush.bf16.msra.mxu3 %v6373_v5  ;;  %v2127_v5 = vpop.f32.mrf.mxu1  ;;  %v6229_v29 = vor.u32 %v7807_v13, %v6226_v14  ;;  %v2557_v34 = vmax.f32 %v8546_v15, 0.0  ;;  %v6133_v13 = vor.u32 %v7783_v50, %v6130_v43  ;;  %v5314_v14 = vld [vmem:[#allocation5 + $0x58] sm:$0xf0]  ;;  %v6604_v15 = vld [vmem:[#allocation8 + $0x168] sm:$0xf] }
 0x123   :  { %2479 = vmatpush.bf16.msra.mxu0 %v6321_v41  ;;  %v2128_v31 = vadd.f32 %v2127_v5, %v2109_v21  ;;  %v7687_v41 = vld [vmem:[#allocation5 + $0x38c] sm:$0xf]  ;;  %v6082_v21 = vld [vmem:[#allocation5 + $0x658] sm:$0xf0]  ;;  %v5317_v32 = vor.u32 %v7579_v10, %v5314_v14  ;;  %v7905_v50 = vld [vmem:[#allocation8 + $0x158] sm:$0xf0] }
 0x124   :  { %2498 = vmatpush.bf16.msra.mxu1 %v5557_v49  ;;  %v6128_v49 = vld [vmem:[#allocation5 + $0x688] sm:$0xf]  ;;  %v5749_v6 = vor.u32 %v7687_v41, %v5746_v58  ;;  %v6085_v35 = vor.u32 %v7771_v17, %v6082_v21  ;;  %v6605_v41 = vor.u32 %v7908_v25, %v6604_v15  ;;  %v6496_v58 = vld [vmem:[#allocation8 + $0x90] sm:$0xf]  ;;  %v7878_v10 = vld [vmem:[#allocation8 + $0x80] sm:$0xf0] }
 0x125   :  { %2517 = vmatpush.bf16.msra.mxu2 %v5941_v40  ;;  %v6177_v40 = vor.u32 %v7801_v30, %v6176_v60  ;;  %v7932_v30 = vld [vmem:[#allocation8 + $0x230] sm:$0xf0]  ;;  %v6592_v56 = vld [vmem:[#allocation8 + $0x150] sm:$0xf]  ;;  %v7926_v17 = vld [vmem:[#allocation8 + $0x200] sm:$0xf0] }
 0x126   :  { %2536 = vmatpush.bf16.msra.mxu3 %v6325_v36  ;;  %v7789_v36 = vld [vmem:[#allocation5 + $0x6b4] sm:$0xf0]  ;;  %v6688_v43 = vld [vmem:[#allocation8 + $0x210] sm:$0xf]  ;;  %v7950_v21 = vld [vmem:[#allocation8 + $0x2c0] sm:$0xf0] }
 0x127   :  { %2480 = vmatpush.bf16.msra.mxu0 %v6273_v61  ;;  %v2146_v54 = vpop.f32.mrf.mxu2  ;;  %v5698_v61 = vld [vmem:[#allocation5 + $0x358] sm:$0xf0] }
 0x128   :  { %2499 = vmatpush.bf16.msra.mxu1 %v5509_v7  ;;  %v8549_v55 = vpop.f32.mrf.mxu3  ;;  %v2147_v62 = vadd.f32 %v2146_v54, %v2128_v31  ;;  %v2111_v63 = vpop.f32.mrf.mxu0  ;;  %v6129_v7 = vor.u32 %v7789_v36, %v6128_v49  ;;  %v7956_v31 = vld [vmem:[#allocation8 + $0x2f0] sm:$0xf0] }
 0x129   :  { %2518 = vmatpush.bf16.msra.mxu2 %v5893_v2  ;;  %v7675_v2 = vld [vmem:[#allocation5 + $0x32c] sm:$0xf]  ;;  %v2112_v4 = vadd.f32 %v2111_v63, %v8531_v20  ;;  %v6797_v54 = vor.u32 %v7956_v31, %v6796_v9  ;;  %v7929_v63 = vld [vmem:[#allocation8 + $0x218] sm:$0xf0] }
 0x12a   :  { %2537 = vmatpush.bf16.msra.mxu3 %v6277_v0  ;;  %v2130_v1 = vpop.f32.mrf.mxu1  ;;  %v6080_v0 = vld [vmem:[#allocation5 + $0x628] sm:$0xf]  ;;  %v2569_v11 = vmax.f32 %v2147_v62, 0.0  ;;  %2414 = vmatmul.bf16.gmra.mxu0 %v8387_v44 }
 0x12b   :  { %2481 = vmatpush.bf16.msra.mxu0 %v6225_v16  ;;  %v2131_v5 = vadd.f32 %v2130_v1, %v2112_v4  ;;  %2433 = vmatmul.bf16.gmra.mxu1 %v8389_v45  ;;  %v7884_v16 = vld [vmem:[#allocation8 + $0xb0] sm:$0xf0]  ;;  %v6081_v60 = vor.u32 %v7777_v8, %v6080_v0  ;;  %v6784_v1 = vld [vmem:[#allocation8 + $0x2d0] sm:$0xf]  ;;  %v8565_v8 = vperm.slane %v8528_v19, 5 }
 0x12c   :  { %2500 = vmatpush.bf16.msra.mxu1 %v5461_v28  ;;  %v8555_v24 = vpack.c.bf16 %v2569_v11, %v2557_v34  ;;  %2452 = vmatmul.bf16.gmra.mxu2 %v8385_v39  ;;  %v6700_v28 = vld [vmem:[#allocation8 + $0x228] sm:$0xf]  ;;  %v6580_v34 = vld [vmem:[#allocation8 + $0x138] sm:$0xf]  ;;  %v7902_v11 = vld [vmem:[#allocation8 + $0x140] sm:$0xf0] }
 0x12d   :  { %2519 = vmatpush.bf16.msra.mxu2 %v5845_v22  ;;  %v6508_v22 = vld [vmem:[#allocation8 + $0xa8] sm:$0xf]  ;;  %2471 = vmatmul.bf16.gmra.mxu3 %v8387_v44  ;;  %v6701_v42 = vor.u32 %v7932_v30, %v6700_v28  ;;  %v6581_v28 = vor.u32 %v7902_v11, %v6580_v34  ;;  %v6568_v30 = vld [vmem:[#allocation8 + $0x120] sm:$0xf]  ;;  %v6448_v11 = vld [vmem:[#allocation8 + $0x30] sm:$0xf] }
 0x12e   :  { %2538 = vmatpush.bf16.msra.mxu3 %v6229_v29  ;;  %v5701_v29 = vor.u32 %v7675_v2, %v5698_v61  ;;  %v7953_v2 = vld [vmem:[#allocation8 + $0x2d8] sm:$0xf0] }
 0x12f   :  { %2482 = vmatpush.bf16.msra.mxu0 %v6177_v40  ;;  %v2149_v37 = vpop.f32.mrf.mxu2  ;;  %v6509_v40 = vor.u32 %v7884_v16, %v6508_v22  ;;  %v6785_v0 = vor.u32 %v7953_v2, %v6784_v1  ;;  %v7920_v2 = vld [vmem:[#allocation8 + $0x1d0] sm:$0xf0] }
 0x130   :  { %2501 = vmatpush.bf16.msra.mxu1 %v5413_v47  ;;  %v7881_v47 = vld [vmem:[#allocation8 + $0x98] sm:$0xf0]  ;;  %v2113_v49 = vpop.f32.mrf.mxu0 }
 0x131   :  { %2520 = vmatpush.bf16.msra.mxu2 %v5797_v38  ;;  %v8559_v38 = vpop.f32.mrf.mxu3  ;;  %v2114_v62 = vadd.f32 %v2113_v49, %v8531_v20  ;;  %v6497_v4 = vor.u32 %v7881_v47, %v6496_v58  ;;  %v6484_v20 = vld [vmem:[#allocation8 + $0x78] sm:$0xf]  ;;  %v7923_v58 = vld [vmem:[#allocation8 + $0x1e8] sm:$0xf0]  ;;  %v6760_v47 = vld [vmem:[#allocation8 + $0x2a0] sm:$0xf] }
 0x132   :  { %2539 = vmatpush.bf16.msra.mxu3 %v6181_v48  ;;  %v8561_v48 = vadd.f32 %v2149_v37, %v2131_v5  ;;  %v2132_v36 = vpop.f32.mrf.mxu1  ;;  %v6772_v5 = vld [vmem:[#allocation8 + $0x2b8] sm:$0xf]  ;;  %v6485_v25 = vor.u32 %v7878_v10, %v6484_v20  ;;  %v7899_v37 = vld [vmem:[#allocation8 + $0x128] sm:$0xf0] }
 0x133   :  { %2483 = vmatpush.bf16.msra.mxu0 %v6129_v7  ;;  %v2133_v61 = vadd.f32 %v2132_v36, %v2114_v62  ;;  %v6689_v7 = vor.u32 %v7929_v63, %v6688_v43  ;;  %v7947_v49 = vld [vmem:[#allocation8 + $0x2a8] sm:$0xf0]  ;;  %v6556_v43 = vld [vmem:[#allocation8 + $0x108] sm:$0xf]  ;;  %v7896_v62 = vld [vmem:[#allocation8 + $0x110] sm:$0xf0] }
 0x134   :  { %2502 = vmatpush.bf16.msra.mxu1 %v5365_v3  ;;  %v6676_v3 = vld [vmem:[#allocation8 + $0x1f8] sm:$0xf]  ;;  %v2581_v9 = vmax.f32 %v8561_v48, 0.0  ;;  %v6652_v63 = vld [vmem:[#allocation8 + $0x1c8] sm:$0xf]  ;;  %v6557_v34 = vor.u32 %v7896_v62, %v6556_v43 }
 0x135   :  { %2521 = vmatpush.bf16.msra.mxu2 %v5749_v6  ;;  %v6593_v6 = vor.u32 %v7905_v50, %v6592_v56  ;;  %v6460_v56 = vld [vmem:[#allocation8 + $0x48] sm:$0xf]  ;;  %v7863_v62 = vld [vmem:[#allocation8 + $0x8] sm:$0xf0] }
 0x136   :  { %2540 = vmatpush.bf16.msra.mxu3 %v6133_v13 }
 0x137   :  { %2484 = vmatpush.bf16.msra.mxu0 %v6081_v60  ;;  %v2151_v13 = vpop.f32.mrf.mxu2  ;;  %v7875_v60 = vld [vmem:[#allocation8 + $0x68] sm:$0xf0] }
 0x138   :  { %2503 = vmatpush.bf16.msra.mxu1 %v5317_v32  ;;  %v2152_v22 = vadd.f32 %v2151_v13, %v2133_v61  ;;  %v2182_v16 = vpop.f32.mrf.mxu0  ;;  %v6677_v32 = vor.u32 %v7926_v17, %v6676_v3  ;;  %v6748_v61 = vld [vmem:[#allocation8 + $0x288] sm:$0xf]  ;;  %v7869_v3 = vld [vmem:[#allocation8 + $0x38] sm:$0xf0]  ;;  %v6544_v17 = vld [vmem:[#allocation8 + $0xf0] sm:$0xf] }
 0x139   :  { %2522 = vmatpush.bf16.msra.mxu2 %v5701_v29  ;;  %v8567_v14 = vpop.f32.mrf.mxu3  ;;  %v6472_v29 = vld [vmem:[#allocation8 + $0x60] sm:$0xf] }
 0x13a   :  { %2541 = vmatpush.bf16.msra.mxu3 %v6085_v35  ;;  %v2201_v15 = vpop.f32.mrf.mxu1  ;;  %v2593_v31 = vmax.f32 %v2152_v22, 0.0  ;;  %v6773_v35 = vor.u32 %v7950_v21, %v6772_v5  ;;  %2485 = vmatmul.bf16.vlgmr.msra.gmra.mxu0 %v8379_v52  ;;  %v7893_v5 = vld [vmem:[#allocation8 + $0xf8] sm:$0xf0]  ;;  %v6640_v21 = vld [vmem:[#allocation8 + $0x1b0] sm:$0xf] }
 0x13b   :  { %4553 = vmatpush.bf16.msrb.mxu0 %v6509_v40  ;;  %v6664_v40 = vld [vmem:[#allocation8 + $0x1e0] sm:$0xf]  ;;  %2504 = vmatmul.bf16.vlgmr.msra.gmra.mxu1 %v8375_v46  ;;  %v6761_v46 = vor.u32 %v7947_v49, %v6760_v47 }
 0x13c   :  { %4572 = vmatpush.bf16.msrb.mxu1 %v6605_v41  ;;  %v2164_v41 = vadd.f32 %v8544_v12, %v8565_v8  ;;  %2523 = vmatmul.bf16.vlgmr.msra.gmra.mxu2 %v8377_v51  ;;  %v8576_v48 = vpack.c.bf16 %v2593_v31, %v2581_v9  ;;  %v7872_v12 = vld [vmem:[#allocation8 + $0x50] sm:$0xf0]  ;;  %v6665_v50 = vor.u32 %v7923_v58, %v6664_v40  ;;  %v6436_v9 = vld [vmem:[#allocation8 + $0x18] sm:$0xf]  ;;  %v7866_v31 = vld [vmem:[#allocation8 + $0x20] sm:$0xf0] }
 0x13d   :  { %4591 = vmatpush.bf16.msrb.mxu2 %v6701_v42  ;;  %2542 = vmatmul.bf16.vlgmr.msra.gmra.mxu3 %v8379_v52  ;;  %v6473_v42 = vor.u32 %v7875_v60, %v6472_v29  ;;  %v2166_v51 = vadd.f32 %v8549_v55, %v8565_v8  ;;  %v6653_v55 = vor.u32 %v7920_v2, %v6652_v63  ;;  %v7890_v40 = vld [vmem:[#allocation8 + $0xe0] sm:$0xf0]  ;;  %v6520_v63 = vld [vmem:[#allocation8 + $0xc0] sm:$0xf] }
 0x13e   :  { %4610 = vmatpush.bf16.msrb.mxu3 %v6797_v54  ;;  %v2183_v36 = vadd.f32 %v2182_v16, %v2164_v41  ;;  %v6569_v54 = vor.u32 %v7899_v37, %v6568_v30  ;;  %v7917_v16 = vld [vmem:[#allocation8 + $0x1b8] sm:$0xf0]  ;;  %v6545_v30 = vor.u32 %v7893_v5, %v6544_v17  ;;  %v6532_v37 = vld [vmem:[#allocation8 + $0xd8] sm:$0xf] }
 0x13f   :  { %4554 = vmatpush.bf16.msrb.mxu0 %v6497_v4  ;;  %v8580_v52 = vpop.f32.mrf.mxu2  ;;  %v7944_v4 = vld [vmem:[#allocation8 + $0x290] sm:$0xf0]  ;;  %v6628_v41 = vld [vmem:[#allocation8 + $0x198] sm:$0xf]  ;;  %v6533_v43 = vor.u32 %v7890_v40, %v6532_v37  ;;  %v8001_v37 = vld [vmem:[#allocation8 + $0x458] sm:$0xf0] }
 0x140   :  { %4573 = vmatpush.bf16.msrb.mxu1 %v6593_v6  ;;  %v2184_v6 = vpop.f32.mrf.mxu0  ;;  %v2202_v20 = vadd.f32 %v2201_v15, %v2183_v36  ;;  %v6749_v13 = vor.u32 %v7944_v4, %v6748_v61  ;;  %v6449_v15 = vor.u32 %v7869_v3, %v6448_v11  ;;  %v7914_v36 = vld [vmem:[#allocation8 + $0x1a0] sm:$0xf0]  ;;  %v6616_v4 = vld [vmem:[#allocation8 + $0x180] sm:$0xf]  ;;  %v6988_v11 = vld [vmem:[#allocation8 + $0x468] sm:$0xf] }
 0x141   :  { %4592 = vmatpush.bf16.msrb.mxu2 %v6689_v7  ;;  %v8582_v1 = vpop.f32.mrf.mxu3  ;;  %v2185_v10 = vadd.f32 %v2184_v6, %v2166_v51  ;;  %v7887_v51 = vld [vmem:[#allocation8 + $0xc8] sm:$0xf0]  ;;  %v6629_v2 = vor.u32 %v7914_v36, %v6628_v41  ;;  %v8004_v3 = vld [vmem:[#allocation8 + $0x470] sm:$0xf0]  ;;  %v7072_v40 = vld [vmem:[#allocation8 + $0x510] sm:$0xf] }
 0x142   :  { %4611 = vmatpush.bf16.msrb.mxu3 %v6785_v0  ;;  %v2203_v7 = vpop.f32.mrf.mxu1  ;;  %v6461_v0 = vor.u32 %v7872_v12, %v6460_v56  ;;  %v2558_v29 = vmax.f32 %v2202_v20, 0.0  ;;  %v7911_v6 = vld [vmem:[#allocation8 + $0x188] sm:$0xf0]  ;;  %v6521_v5 = vor.u32 %v7887_v51, %v6520_v63  ;;  %v7974_v51 = vld [vmem:[#allocation8 + $0x380] sm:$0xf0] }
 0x143   :  { %4555 = vmatpush.bf16.msrb.mxu0 %v6485_v25  ;;  %v2204_v22 = vadd.f32 %v2203_v7, %v2185_v10  ;;  %v6736_v25 = vld [vmem:[#allocation8 + $0x270] sm:$0xf]  ;;  %v6712_v7 = vld [vmem:[#allocation8 + $0x240] sm:$0xf]  ;;  %v7935_v20 = vld [vmem:[#allocation8 + $0x248] sm:$0xf0] }
 0x144   :  { %4574 = vmatpush.bf16.msrb.mxu1 %v6581_v28  ;;  %v7941_v28 = vld [vmem:[#allocation8 + $0x278] sm:$0xf0]  ;;  %v6892_v10 = vld [vmem:[#allocation8 + $0x3a8] sm:$0xf] }
 0x145   :  { %4593 = vmatpush.bf16.msrb.mxu2 %v6677_v32  ;;  %v2570_v60 = vmax.f32 %v2204_v22, 0.0  ;;  %v6641_v32 = vor.u32 %v7917_v16, %v6640_v21  ;;  %v7180_v21 = vld [vmem:[#allocation8 + $0x5e8] sm:$0xf]  ;;  %v8052_v22 = vld [vmem:[#allocation8 + $0x5f0] sm:$0xf0]  ;;  %v6713_v16 = vor.u32 %v7935_v20, %v6712_v7 }
 0x146   :  { %4612 = vmatpush.bf16.msrb.mxu3 %v6773_v35  ;;  %v6737_v35 = vor.u32 %v7941_v28, %v6736_v25  ;;  %v7156_v20 = vld [vmem:[#allocation8 + $0x5b8] sm:$0xf] }
 0x147   :  { %4556 = vmatpush.bf16.msrb.mxu0 %v6473_v42  ;;  %v8584_v58 = vpack.c.bf16 %v2570_v60, %v2558_v29  ;;  %v8586_v47 = vpop.f32.mrf.mxu2  ;;  %v6724_v42 = vld [vmem:[#allocation8 + $0x258] sm:$0xf]  ;;  %v6989_v29 = vor.u32 %v8004_v3, %v6988_v11  ;;  %v6880_v60 = vld [vmem:[#allocation8 + $0x390] sm:$0xf] }
 0x148   :  { %4575 = vmatpush.bf16.msrb.mxu1 %v6569_v54  ;;  %v7938_v54 = vld [vmem:[#allocation8 + $0x260] sm:$0xf0]  ;;  %v2187_v56 = vpop.f32.mrf.mxu0 }
 0x149   :  { %4594 = vmatpush.bf16.msrb.mxu2 %v6665_v50  ;;  %v8588_v49 = vpop.f32.mrf.mxu3  ;;  %v6424_v50 = vld [vmem:[#allocation8] sm:$0xf]  ;;  %v6725_v61 = vor.u32 %v7938_v54, %v6724_v42  ;;  %v8049_v42 = vld [vmem:[#allocation8 + $0x5d8] sm:$0xf0] }
 0x14a   :  { %4613 = vmatpush.bf16.msrb.mxu3 %v6761_v46  ;;  %v2206_v12 = vpop.f32.mrf.mxu1  ;;  %v6437_v46 = vor.u32 %v7866_v31, %v6436_v9  ;;  %2490 = vmatmul.bf16.gmra.mxu0 %v8389_v45  ;;  %v6425_v17 = vor.u32 %v7863_v62, %v6424_v50 }
 0x14b   :  { %4557 = vmatpush.bf16.msrb.mxu0 %v6461_v0  ;;  %v2169_v0 = vadd.f32 %v8559_v38, %v8565_v8  ;;  %2509 = vmatmul.bf16.gmra.mxu1 %v8385_v39  ;;  %v8028_v38 = vld [vmem:[#allocation8 + $0x530] sm:$0xf0]  ;;  %v6617_v39 = vor.u32 %v7911_v6, %v6616_v4  ;;  %v7060_v4 = vld [vmem:[#allocation8 + $0x4f8] sm:$0xf] }
 0x14c   :  { %4576 = vmatpush.bf16.msrb.mxu1 %v6557_v34  ;;  %v7980_v34 = vld [vmem:[#allocation8 + $0x3b0] sm:$0xf0]  ;;  %2528 = vmatmul.bf16.gmra.mxu2 %v8387_v44  ;;  %v2171_v44 = vadd.f32 %v8567_v14, %v8565_v8  ;;  %v8025_v8 = vld [vmem:[#allocation8 + $0x518] sm:$0xf0]  ;;  %v7168_v14 = vld [vmem:[#allocation8 + $0x5d0] sm:$0xf] }
 0x14d   :  { %4595 = vmatpush.bf16.msrb.mxu2 %v6653_v55  ;;  %2547 = vmatmul.bf16.gmra.mxu3 %v8389_v45  ;;  %v7084_v55 = vld [vmem:[#allocation8 + $0x528] sm:$0xf]  ;;  %v6893_v28 = vor.u32 %v7980_v34, %v6892_v10  ;;  %v8046_v10 = vld [vmem:[#allocation8 + $0x5c0] sm:$0xf0] }
 0x14e   :  { %4614 = vmatpush.bf16.msrb.mxu3 %v6749_v13  ;;  %v2188_v13 = vadd.f32 %v2187_v56, %v2169_v0  ;;  %v7085_v31 = vor.u32 %v8028_v38, %v7084_v55  ;;  %v8022_v0 = vld [vmem:[#allocation8 + $0x500] sm:$0xf0] }
 0x14f   :  { %4558 = vmatpush.bf16.msrb.mxu0 %v6449_v15  ;;  %v8598_v25 = vpop.f32.mrf.mxu2  ;;  %v7977_v15 = vld [vmem:[#allocation8 + $0x398] sm:$0xf0]  ;;  %v7061_v38 = vor.u32 %v8022_v0, %v7060_v4  ;;  %v7120_v0 = vld [vmem:[#allocation8 + $0x570] sm:$0xf] }
 0x150   :  { %4577 = vmatpush.bf16.msrb.mxu1 %v6545_v30  ;;  %v2189_v30 = vpop.f32.mrf.mxu0  ;;  %v2207_v41 = vadd.f32 %v2206_v12, %v2188_v13  ;;  %v6881_v56 = vor.u32 %v7977_v15, %v6880_v60  ;;  %v6868_v12 = vld [vmem:[#allocation8 + $0x378] sm:$0xf]  ;;  %v8013_v4 = vld [vmem:[#allocation8 + $0x4b8] sm:$0xf0] }
 0x151   :  { %4596 = vmatpush.bf16.msrb.mxu2 %v6641_v32  ;;  %v8600_v45 = vpop.f32.mrf.mxu3  ;;  %v7181_v32 = vor.u32 %v8052_v22, %v7180_v21  ;;  %v2190_v36 = vadd.f32 %v2189_v30, %v2171_v44  ;;  %v6869_v55 = vor.u32 %v7974_v51, %v6868_v12  ;;  %v7157_v21 = vor.u32 %v8046_v10, %v7156_v20  ;;  %v6952_v22 = vld [vmem:[#allocation8 + $0x420] sm:$0xf]  ;;  %v8019_v44 = vld [vmem:[#allocation8 + $0x4e8] sm:$0xf0]  ;;  %v6844_v30 = vld [vmem:[#allocation8 + $0x348] sm:$0xf] }
 0x152   :  { %4615 = vmatpush.bf16.msrb.mxu3 %v6737_v35  ;;  %v2208_v9 = vpop.f32.mrf.mxu1  ;;  %v6976_v35 = vld [vmem:[#allocation8 + $0x450] sm:$0xf]  ;;  %v2582_v62 = vmax.f32 %v2207_v41, 0.0  ;;  %v8037_v20 = vld [vmem:[#allocation8 + $0x578] sm:$0xf0] }
 0x153   :  { %4559 = vmatpush.bf16.msrb.mxu0 %v6437_v46  ;;  %v2209_v54 = vadd.f32 %v2208_v9, %v2190_v36  ;;  %v6977_v50 = vor.u32 %v8001_v37, %v6976_v35  ;;  %v7073_v46 = vor.u32 %v8025_v8, %v7072_v40  ;;  %v7968_v9 = vld [vmem:[#allocation8 + $0x350] sm:$0xf0]  ;;  %v6940_v35 = vld [vmem:[#allocation8 + $0x408] sm:$0xf]  ;;  %v6928_v51 = vld [vmem:[#allocation8 + $0x3f0] sm:$0xf] }
 0x154   :  { %4578 = vmatpush.bf16.msrb.mxu1 %v6533_v43  ;;  %v7169_v43 = vor.u32 %v8049_v42, %v7168_v14  ;;  %v7992_v37 = vld [vmem:[#allocation8 + $0x410] sm:$0xf0]  ;;  %v7036_v40 = vld [vmem:[#allocation8 + $0x4c8] sm:$0xf] }
 0x155   :  { %4597 = vmatpush.bf16.msrb.mxu2 %v6629_v2  ;;  %v2594_v63 = vmax.f32 %v2209_v54, 0.0  ;;  %v6964_v2 = vld [vmem:[#allocation8 + $0x438] sm:$0xf]  ;;  %v8016_v8 = vld [vmem:[#allocation8 + $0x4d0] sm:$0xf0] }
 0x156   :  { %4616 = vmatpush.bf16.msrb.mxu3 %v6725_v61  ;;  %v7998_v61 = vld [vmem:[#allocation8 + $0x440] sm:$0xf0]  ;;  %v7132_v14 = vld [vmem:[#allocation8 + $0x588] sm:$0xf]  ;;  %v8040_v42 = vld [vmem:[#allocation8 + $0x590] sm:$0xf0] }
 0x157   :  { %4560 = vmatpush.bf16.msrb.mxu0 %v6425_v17  ;;  %v8602_v6 = vpop.f32.mrf.mxu2  ;;  %v8606_v34 = vpack.c.bf16 %v2594_v63, %v2582_v62  ;;  %v6965_v13 = vor.u32 %v7998_v61, %v6964_v2  ;;  %v6856_v17 = vld [vmem:[#allocation8 + $0x360] sm:$0xf]  ;;  %v7965_v62 = vld [vmem:[#allocation8 + $0x338] sm:$0xf0]  ;;  %v7037_v63 = vor.u32 %v8016_v8, %v7036_v40  ;;  %v7133_v12 = vor.u32 %v8040_v42, %v7132_v14  ;;  %v7024_v61 = vld [vmem:[#allocation8 + $0x4b0] sm:$0xf] }
 0x158   :  { %4579 = vmatpush.bf16.msrb.mxu1 %v6521_v5  ;;  %v8608_v11 = vpop.f32.mrf.mxu0  ;;  %v7971_v5 = vld [vmem:[#allocation8 + $0x368] sm:$0xf0]  ;;  %v7989_v2 = vld [vmem:[#allocation8 + $0x3f8] sm:$0xf0]  ;;  %v6904_v8 = vld [vmem:[#allocation8 + $0x3c0] sm:$0xf] }
 0x159   :  { %4598 = vmatpush.bf16.msrb.mxu2 %v6617_v39  ;;  %v8604_v7 = vpop.f32.mrf.mxu3  ;;  %v7995_v39 = vld [vmem:[#allocation8 + $0x428] sm:$0xf0]  ;;  %v6857_v60 = vor.u32 %v7971_v5, %v6856_v17  ;;  %v7962_v17 = vld [vmem:[#allocation8 + $0x320] sm:$0xf0]  ;;  %v7025_v5 = vor.u32 %v8013_v4, %v7024_v61  ;;  %v8076_v61 = vld [vmem:[#allocation8 + $0x6b0] sm:$0xf0] }
 0x15a   :  { %4617 = vmatpush.bf16.msrb.mxu3 %v6713_v16  ;;  %v8610_v3 = vpop.f32.mrf.mxu1  ;;  %v7048_v16 = vld [vmem:[#allocation8 + $0x4e0] sm:$0xf]  ;;  %4561 = vmatmul.bf16.vlgmr.msrb.gmra.mxu0 %v8438_v18  ;;  %v6953_v15 = vor.u32 %v7995_v39, %v6952_v22  ;;  %v7986_v22 = vld [vmem:[#allocation8 + $0x3e0] sm:$0xf0]  ;;  %v7012_v39 = vld [vmem:[#allocation8 + $0x498] sm:$0xf] }
 0x15b   :  { %4629 = vmatpush.bf16.msra.mxu0 %v6893_v28  ;;  %4580 = vmatmul.bf16.vlgmr.msrb.gmra.mxu1 %v8476_v26  ;;  %v7144_v28 = vld [vmem:[#allocation8 + $0x5a0] sm:$0xf]  ;;  %v7959_v40 = vld [vmem:[#allocation8 + $0x308] sm:$0xf0]  ;;  %v7372_v4 = vld [vmem:[#allocation8 + $0x768] sm:$0xf] }
 0x15c   :  { %4648 = vmatpush.bf16.msra.mxu1 %v6989_v29  ;;  %v8043_v29 = vld [vmem:[#allocation8 + $0x5a8] sm:$0xf0]  ;;  %4599 = vmatmul.bf16.vlgmr.msrb.gmra.mxu2 %v8510_v57 }
 0x15d   :  { %4667 = vmatpush.bf16.msra.mxu2 %v7085_v31  ;;  %4618 = vmatmul.bf16.vlgmr.msrb.gmra.mxu3 %v8522_v53  ;;  %v7049_v31 = vor.u32 %v8019_v44, %v7048_v16 }
 0x15e   :  { %4686 = vmatpush.bf16.msra.mxu3 %v7181_v32  ;;  %v7145_v32 = vor.u32 %v8043_v29, %v7144_v28  ;;  %v8010_v28 = vld [vmem:[#allocation8 + $0x4a0] sm:$0xf0]  ;;  %v7108_v29 = vld [vmem:[#allocation8 + $0x558] sm:$0xf] }
 0x15f   :  { %4630 = vmatpush.bf16.msra.mxu0 %v6881_v56  ;;  %v8616_v41 = vpop.f32.mrf.mxu2  ;;  %v7013_v14 = vor.u32 %v8010_v28, %v7012_v39 }
 0x160   :  { %4649 = vmatpush.bf16.msra.mxu1 %v6977_v50  ;;  %v8620_v54 = vpop.f32.mrf.mxu0  ;;  %v6845_v50 = vor.u32 %v7968_v9, %v6844_v30  ;;  %v8626_v30 = vperm.slane %v8528_v19, 7 }
 0x161   :  { %4668 = vmatpush.bf16.msra.mxu2 %v7073_v46  ;;  %v8618_v36 = vpop.f32.mrf.mxu3  ;;  %v6941_v46 = vor.u32 %v7992_v37, %v6940_v35  ;;  %v6808_v37 = vld [vmem:[#allocation8 + $0x300] sm:$0xf] }
 0x162   :  { %4687 = vmatpush.bf16.msra.mxu3 %v7169_v43  ;;  %v2279_v56 = vpop.f32.mrf.mxu1  ;;  %v6832_v43 = vld [vmem:[#allocation8 + $0x330] sm:$0xf] }
 0x163   :  { %4631 = vmatpush.bf16.msra.mxu0 %v6869_v55  ;;  %v6833_v10 = vor.u32 %v7965_v62, %v6832_v43  ;;  %v6929_v55 = vor.u32 %v7989_v2, %v6928_v51  ;;  %v8007_v43 = vld [vmem:[#allocation8 + $0x488] sm:$0xf0]  ;;  %v2278_v51 = vadd.f32 %v8610_v3, %v8626_v30  ;;  %v2280_v2 = vadd.f32 %v2279_v56, %v8626_v30 }
 0x164   :  { %4650 = vmatpush.bf16.msra.mxu1 %v6965_v13  ;;  %v6820_v13 = vld [vmem:[#allocation8 + $0x318] sm:$0xf]  ;;  %v8031_v62 = vld [vmem:[#allocation8 + $0x548] sm:$0xf0] }
 0x165   :  { %4669 = vmatpush.bf16.msra.mxu2 %v7061_v38  ;;  %v7121_v38 = vor.u32 %v8037_v20, %v7120_v0  ;;  %v8100_v0 = vld [vmem:[#allocation8 + $0x770] sm:$0xf0] }
 0x166   :  { %4688 = vmatpush.bf16.msra.mxu3 %v7157_v21  ;;  %v6916_v21 = vld [vmem:[#allocation8 + $0x3d8] sm:$0xf] }
 0x167   :  { %4632 = vmatpush.bf16.msra.mxu0 %v6857_v60  ;;  %v2298_v16 = vpop.f32.mrf.mxu2  ;;  %v8034_v60 = vld [vmem:[#allocation8 + $0x560] sm:$0xf0]  ;;  %v6917_v35 = vor.u32 %v7986_v22, %v6916_v21  ;;  %v7373_v21 = vor.u32 %v8100_v0, %v7372_v4  ;;  %v8067_v4 = vld [vmem:[#allocation8 + $0x668] sm:$0xf0]  ;;  %v7336_v0 = vld [vmem:[#allocation8 + $0x720] sm:$0xf] }
 0x168   :  { %4651 = vmatpush.bf16.msra.mxu1 %v6953_v15  ;;  %v8623_v15 = vperm.slane %v8528_v19, 6  ;;  %v8628_v9 = vpop.f32.mrf.mxu0  ;;  %v7109_v42 = vor.u32 %v8034_v60, %v7108_v29  ;;  %v7096_v19 = vld [vmem:[#allocation8 + $0x540] sm:$0xf]  ;;  %v8073_v29 = vld [vmem:[#allocation8 + $0x698] sm:$0xf0] }
 0x169   :  { %4670 = vmatpush.bf16.msra.mxu2 %v7049_v31  ;;  %v2317_v44 = vpop.f32.mrf.mxu3  ;;  %v8097_v60 = vld [vmem:[#allocation8 + $0x758] sm:$0xf0] }
 0x16a   :  { %4689 = vmatpush.bf16.msra.mxu3 %v7145_v32  ;;  %v8630_v31 = vpop.f32.mrf.mxu1  ;;  %v6821_v32 = vor.u32 %v7962_v17, %v6820_v13  ;;  %4566 = vmatmul.bf16.gmra.mxu0 %v8461_v33  ;;  %v2221_v20 = vadd.f32 %v8580_v52, %v8623_v15  ;;  %v7097_v13 = vor.u32 %v8031_v62, %v7096_v19  ;;  %v8094_v19 = vld [vmem:[#allocation8 + $0x740] sm:$0xf0] }
 0x16b   :  { %4633 = vmatpush.bf16.msra.mxu0 %v6845_v50  ;;  %v7983_v50 = vld [vmem:[#allocation8 + $0x3c8] sm:$0xf0]  ;;  %4585 = vmatmul.bf16.gmra.mxu1 %v8493_v59  ;;  %v2297_v52 = vadd.f32 %v8616_v41, %v2278_v51 }
 0x16c   :  { %4652 = vmatpush.bf16.msra.mxu1 %v6941_v46  ;;  %v7000_v46 = vld [vmem:[#allocation8 + $0x480] sm:$0xf]  ;;  %4604 = vmatmul.bf16.gmra.mxu2 %v8533_v23 }
 0x16d   :  { %4671 = vmatpush.bf16.msra.mxu2 %v7037_v63  ;;  %v7276_v63 = vld [vmem:[#allocation8 + $0x6a8] sm:$0xf]  ;;  %4623 = vmatmul.bf16.gmra.mxu3 %v8542_v27  ;;  %v7001_v3 = vor.u32 %v8007_v43, %v7000_v46  ;;  %v7348_v43 = vld [vmem:[#allocation8 + $0x738] sm:$0xf] }
 0x16e   :  { %4690 = vmatpush.bf16.msra.mxu3 %v7133_v12  ;;  %v2223_v12 = vadd.f32 %v8586_v47, %v8623_v15  ;;  %v2299_v47 = vadd.f32 %v2298_v16, %v2280_v2  ;;  %v7360_v16 = vld [vmem:[#allocation8 + $0x750] sm:$0xf]  ;;  %v7349_v2 = vor.u32 %v8094_v19, %v7348_v43  ;;  %v8058_v19 = vld [vmem:[#allocation8 + $0x620] sm:$0xf0] }
 0x16f   :  { %4634 = vmatpush.bf16.msra.mxu0 %v6833_v10  ;;  %v6809_v10 = vor.u32 %v7959_v40, %v6808_v37  ;;  %v8643_v56 = vpop.f32.mrf.mxu2 }
 0x170   :  { %4653 = vmatpush.bf16.msra.mxu1 %v6929_v55  ;;  %v6905_v55 = vor.u32 %v7983_v50, %v6904_v8  ;;  %v2242_v22 = vadd.f32 %v8588_v49, %v2223_v12  ;;  %v8649_v39 = vpop.f32.mrf.mxu0  ;;  %v2318_v37 = vadd.f32 %v2317_v44, %v2299_v47  ;;  %v7361_v49 = vor.u32 %v8097_v60, %v7360_v16 }
 0x171   :  { %4672 = vmatpush.bf16.msra.mxu2 %v7025_v5  ;;  %v8645_v17 = vpop.f32.mrf.mxu3  ;;  %v7277_v5 = vor.u32 %v8076_v61, %v7276_v63  ;;  %v2316_v8 = vadd.f32 %v8618_v36, %v2297_v52  ;;  %v2283_v47 = vadd.f32 %v8630_v31, %v8626_v30  ;;  %v8088_v52 = vld [vmem:[#allocation8 + $0x710] sm:$0xf0] }
 0x172   :  { %4691 = vmatpush.bf16.msra.mxu3 %v7121_v38  ;;  %v7264_v38 = vld [vmem:[#allocation8 + $0x690] sm:$0xf]  ;;  %v2284_v28 = vpop.f32.mrf.mxu1  ;;  %v2572_v46 = vmax.f32 %v2318_v37, 0.0 }
 0x173   :  { %4635 = vmatpush.bf16.msra.mxu0 %v6821_v32  ;;  %v2240_v32 = vadd.f32 %v8582_v1, %v2221_v20  ;;  %v7265_v40 = vor.u32 %v8073_v29, %v7264_v38  ;;  %v2560_v44 = vmax.f32 %v2316_v8, 0.0  ;;  %v8091_v20 = vld [vmem:[#allocation8 + $0x728] sm:$0xf0]  ;;  %v8064_v38 = vld [vmem:[#allocation8 + $0x650] sm:$0xf0]  ;;  %v2302_v31 = vadd.f32 %v8643_v56, %v2283_v47 }
 0x174   :  { %4654 = vmatpush.bf16.msra.mxu1 %v6917_v35  ;;  %v2261_v35 = vadd.f32 %v8620_v54, %v2242_v22  ;;  %v7324_v22 = vld [vmem:[#allocation8 + $0x708] sm:$0xf]  ;;  %v8085_v8 = vld [vmem:[#allocation8 + $0x6f8] sm:$0xf0]  ;;  %v8055_v47 = vld [vmem:[#allocation8 + $0x608] sm:$0xf0] }
 0x175   :  { %4673 = vmatpush.bf16.msra.mxu2 %v7013_v14  ;;  %v2259_v41 = vadd.f32 %v8608_v11, %v2240_v32  ;;  %v7252_v14 = vld [vmem:[#allocation8 + $0x678] sm:$0xf]  ;;  %v7240_v11 = vld [vmem:[#allocation8 + $0x660] sm:$0xf]  ;;  %v8661_v61 = vpack.c.bf16 %v2572_v46, %v2560_v44  ;;  %v8124_v44 = vld [vmem:[#allocation8 + $0x830] sm:$0xf0] }
 0x176   :  { %4692 = vmatpush.bf16.msra.mxu3 %v7109_v42  ;;  %v8070_v42 = vld [vmem:[#allocation8 + $0x680] sm:$0xf0]  ;;  %v2571_v50 = vmax.f32 %v2261_v35, 0.0 }
 0x177   :  { %4636 = vmatpush.bf16.msra.mxu0 %v6809_v10  ;;  %v2303_v1 = vpop.f32.mrf.mxu2  ;;  %v2559_v54 = vmax.f32 %v2259_v41, 0.0  ;;  %v7253_v51 = vor.u32 %v8070_v42, %v7252_v14  ;;  %9031 = vst [vmem:[#allocation18_spill] sm:$0xff] %v8661_v61  ;;  %v2228_v10 = vadd.f32 %v8602_v6, %v8623_v15  ;;  %v7337_v6 = vor.u32 %v8091_v20, %v7336_v0  ;;  %v7312_v41 = vld [vmem:[#allocation8 + $0x6f0] sm:$0xf]  ;;  %v7192_v20 = vld [vmem:[#allocation8 + $0x600] sm:$0xf] }
 0x178   :  { %4655 = vmatpush.bf16.msra.mxu1 %v6905_v55  ;;  %v8655_v63 = vpop.f32.mrf.mxu0  ;;  %v2285_v55 = vadd.f32 %v2284_v28, %v8626_v30  ;;  %v2321_v14 = vadd.f32 %v8645_v17, %v2302_v31  ;;  %v7907_v31 = vld [vmem:[#allocation8 + $0x16c] sm:$0xf] }
 0x179   :  { %4674 = vmatpush.bf16.msra.mxu2 %v7001_v3  ;;  %v2322_v62 = vpop.f32.mrf.mxu3  ;;  %v8659_v36 = vpack.c.bf16 %v2571_v50, %v2559_v54  ;;  %v2247_v28 = vadd.f32 %v8604_v7, %v2228_v10  ;;  %v7468_v54 = vld [vmem:[#allocation8 + $0x828] sm:$0xf] }
 0x17a   :  { %4693 = vmatpush.bf16.msra.mxu3 %v7097_v13  ;;  %v8657_v12 = vpop.f32.mrf.mxu1  ;;  %4637 = vmatmul.bf16.vlgmr.msra.gmra.mxu0 %v8555_v24  ;;  %v2304_v3 = vadd.f32 %v2303_v1, %v2285_v55  ;;  %v7241_v13 = vor.u32 %v8067_v4, %v7240_v11  ;;  %v7313_v1 = vor.u32 %v8085_v8, %v7312_v41  ;;  %v7564_v8 = vld [vmem:[#allocation8 + $0x8e8] sm:$0xf] }
 0x17b   :  { %4705 = vmatpush.bf16.msrb.mxu0 %v7277_v5  ;;  %9030 = vst [vmem:[#allocation17_spill] sm:$0xff] %v8659_v36  ;;  %4656 = vmatmul.bf16.vlgmr.msra.gmra.mxu1 %v8584_v58  ;;  %v7228_v5 = vld [vmem:[#allocation8 + $0x648] sm:$0xf]  ;;  %v2266_v35 = vadd.f32 %v8649_v39, %v2247_v28  ;;  %v7204_v39 = vld [vmem:[#allocation8 + $0x618] sm:$0xf] }
 0x17c   :  { %4724 = vmatpush.bf16.msrb.mxu1 %v7373_v21  ;;  %4675 = vmatmul.bf16.vlgmr.msra.gmra.mxu2 %v8659_v36  ;;  %v2226_v21 = vadd.f32 %v8598_v25, %v8623_v15  ;;  %v7229_v32 = vor.u32 %v8064_v38, %v7228_v5  ;;  %v2323_v37 = vadd.f32 %v2322_v62, %v2304_v3  ;;  %v7216_v25 = vld [vmem:[#allocation8 + $0x630] sm:$0xf]  ;;  %v7300_v62 = vld [vmem:[#allocation8 + $0x6d8] sm:$0xf]  ;;  %v7883_v3 = vld [vmem:[#allocation8 + $0xac] sm:$0xf] }
 0x17d   :  { %4694 = vmatmul.bf16.vlgmr.msra.gmra.mxu3 %v8661_v61  ;;  %v7325_v15 = vor.u32 %v8088_v52, %v7324_v22  ;;  %v2595_v50 = vmax.f32 %v2266_v35, 0.0  ;;  %v7205_v55 = vor.u32 %v8058_v19, %v7204_v39  ;;  %v7288_v5 = vld [vmem:[#allocation8 + $0x6c0] sm:$0xf]  ;;  %v7456_v22 = vld [vmem:[#allocation8 + $0x810] sm:$0xf] }
 0x17e   :  { %v2245_v7 = vadd.f32 %v8600_v45, %v2226_v21  ;;  %v2596_v46 = vmax.f32 %v2323_v37, 0.0  ;;  %v8082_v45 = vld [vmem:[#allocation8 + $0x6e0] sm:$0xf0]  ;;  %v8079_v21 = vld [vmem:[#allocation8 + $0x6c8] sm:$0xf0] }
 0x17f   :  { %4706 = vmatpush.bf16.msrb.mxu0 %v7265_v40  ;;  %v8675_v29 = vpop.f32.mrf.mxu2  ;;  %v8683_v40 = vld [vmem:[#allocation7 + $0x8] sm:$0xf] }
 0x180   :  { %4725 = vmatpush.bf16.msrb.mxu1 %v7361_v49  ;;  %v2336_v16 = vpop.f32.mrf.mxu0  ;;  %v8061_v49 = vld [vmem:[#allocation8 + $0x638] sm:$0xf0]  ;;  %v2264_v56 = vadd.f32 %v8628_v9, %v2245_v7  ;;  %v8689_v42 = vperm.slane %v8683_v40, 0  ;;  %v7469_v9 = vor.u32 %v8124_v44, %v7468_v54  ;;  %v6498_v7 = vld [vmem:[#allocation8 + $0x9c] sm:$0xf0] }
 0x181   :  { %v8677_v30 = vpop.f32.mrf.mxu3  ;;  %v7217_v43 = vor.u32 %v8061_v49, %v7216_v25  ;;  %v8121_v52 = vld [vmem:[#allocation8 + $0x818] sm:$0xf0]  ;;  %v7193_v25 = vor.u32 %v8055_v47, %v7192_v20 }
 0x182   :  { %v8680_v60 = vpop.f32.mrf.mxu1  ;;  %v2583_v17 = vmax.f32 %v2264_v56, 0.0  ;;  %v2335_v10 = vadd.f32 %v8655_v63, %v8689_v42  ;;  %4743 = vmatpush.bf16.msrb.mxu2 %v7469_v9  ;;  %v2337_v28 = vadd.f32 %v2336_v16, %v8689_v42  ;;  %v6510_v63 = vld [vmem:[#allocation8 + $0xb4] sm:$0xf0]  ;;  %v7457_v35 = vor.u32 %v8121_v52, %v7456_v22  ;;  %v8148_v56 = vld [vmem:[#allocation8 + $0x8f0] sm:$0xf0] }
 0x183   :  { %4707 = vmatpush.bf16.msrb.mxu0 %v7253_v51  ;;  %v7289_v16 = vor.u32 %v8079_v21, %v7288_v5  ;;  %v6513_v49 = vor.u32 %v7883_v3, %v6510_v63  ;;  %v7565_v19 = vor.u32 %v8148_v56, %v7564_v8  ;;  %v8145_v47 = vld [vmem:[#allocation8 + $0x8d8] sm:$0xf0]  ;;  %v6582_v3 = vld [vmem:[#allocation8 + $0x144] sm:$0xf0]  ;;  %v7432_v5 = vld [vmem:[#allocation8 + $0x7e0] sm:$0xf] }
 0x184   :  { %4726 = vmatpush.bf16.msrb.mxu1 %v7349_v2  ;;  %v2584_v2 = vmax.f32 %v2321_v14, 0.0  ;;  %v8699_v38 = vpack.c.bf16 %v2595_v50, %v2583_v17  ;;  %v2354_v37 = vadd.f32 %v8657_v12, %v2335_v10  ;;  %v7444_v14 = vld [vmem:[#allocation8 + $0x7f8] sm:$0xf]  ;;  %v2356_v39 = vadd.f32 %v8680_v60, %v2337_v28  ;;  %v6594_v12 = vld [vmem:[#allocation8 + $0x15c] sm:$0xf0] }
 0x185   :  { %v7877_v17 = vld [vmem:[#allocation8 + $0x7c] sm:$0xf]  ;;  %4762 = vmatpush.bf16.msrb.mxu3 %v7565_v19  ;;  %v8115_v21 = vld [vmem:[#allocation8 + $0x7e8] sm:$0xf0]  ;;  %v7874_v28 = vld [vmem:[#allocation8 + $0x64] sm:$0xf] }
 0x186   :  { %9032 = vst [vmem:[#allocation19_spill] sm:$0xff] %v8699_v38  ;;  %4744 = vmatpush.bf16.msrb.mxu2 %v7457_v35  ;;  %v2373_v44 = vadd.f32 %v8675_v29, %v2354_v37  ;;  %v7901_v10 = vld [vmem:[#allocation8 + $0x13c] sm:$0xf]  ;;  %v8718_v29 = vperm.slane %v8683_v40, 1  ;;  %v6474_v63 = vld [vmem:[#allocation8 + $0x6c] sm:$0xf0] }
 0x187   :  { %4708 = vmatpush.bf16.msrb.mxu0 %v7241_v13  ;;  %v2374_v51 = vpop.f32.mrf.mxu2  ;;  %v7301_v13 = vor.u32 %v8082_v45, %v7300_v62  ;;  %v7540_v35 = vld [vmem:[#allocation8 + $0x8b8] sm:$0xf]  ;;  %v8142_v37 = vld [vmem:[#allocation8 + $0x8c0] sm:$0xf0]  ;;  %v8112_v8 = vld [vmem:[#allocation8 + $0x7d0] sm:$0xf0] }
 0x188   :  { %4727 = vmatpush.bf16.msrb.mxu1 %v7337_v6  ;;  %v8693_v4 = vpop.f32.mrf.mxu0  ;;  %v8701_v6 = vpack.c.bf16 %v2596_v46, %v2584_v2  ;;  %v2375_v9 = vadd.f32 %v2374_v51, %v2356_v39  ;;  %v6486_v2 = vld [vmem:[#allocation8 + $0x84] sm:$0xf0]  ;;  %v7433_v51 = vor.u32 %v8115_v21, %v7432_v5  ;;  %v2561_v22 = vmax.f32 %v2373_v44, 0.0  ;;  %v7871_v19 = vld [vmem:[#allocation8 + $0x4c] sm:$0xf] }
 0x189   :  { %v8691_v11 = vpop.f32.mrf.mxu3  ;;  %v7868_v21 = vld [vmem:[#allocation8 + $0x34] sm:$0xf] }
 0x18a   :  { %v8695_v0 = vpop.f32.mrf.mxu1  ;;  %9033 = vst [vmem:[#allocation20_spill] sm:$0xff] %v8701_v6  ;;  %4642 = vmatmul.bf16.gmra.mxu0 %v8576_v48  ;;  %v2573_v52 = vmax.f32 %v2375_v9, 0.0  ;;  %v7895_v9 = vld [vmem:[#allocation8 + $0x10c] sm:$0xf] }
 0x18b   :  { %4709 = vmatpush.bf16.msrb.mxu0 %v7229_v32  ;;  %4661 = vmatmul.bf16.gmra.mxu1 %v8606_v34  ;;  %v6606_v32 = vld [vmem:[#allocation8 + $0x174] sm:$0xf0] }
 0x18c   :  { %4728 = vmatpush.bf16.msrb.mxu1 %v7325_v15  ;;  %4680 = vmatmul.bf16.gmra.mxu2 %v8699_v38  ;;  %v7880_v15 = vld [vmem:[#allocation8 + $0x94] sm:$0xf]  ;;  %v6609_v41 = vor.u32 %v7907_v31, %v6606_v32  ;;  %v6489_v31 = vor.u32 %v7877_v17, %v6486_v2  ;;  %v6585_v32 = vor.u32 %v7901_v10, %v6582_v3  ;;  %v7528_v17 = vld [vmem:[#allocation8 + $0x8a0] sm:$0xf]  ;;  %v8139_v2 = vld [vmem:[#allocation8 + $0x8a8] sm:$0xf0] }
 0x18d   :  { %4699 = vmatmul.bf16.gmra.mxu3 %v8701_v6  ;;  %v6501_v60 = vor.u32 %v7880_v15, %v6498_v7  ;;  %v6558_v10 = vld [vmem:[#allocation8 + $0x114] sm:$0xf0] }
 0x18f   :  { %4710 = vmatpush.bf16.msrb.mxu0 %v7217_v43  ;;  %v8710_v50 = vpop.f32.mrf.mxu2  ;;  %v7904_v43 = vld [vmem:[#allocation8 + $0x154] sm:$0xf] }
 0x190   :  { %4729 = vmatpush.bf16.msrb.mxu1 %v7313_v1  ;;  %v8118_v1 = vld [vmem:[#allocation8 + $0x800] sm:$0xf0]  ;;  %v2341_v62 = vpop.f32.mrf.mxu0  ;;  %v6597_v20 = vor.u32 %v7904_v43, %v6594_v12  ;;  %v8722_v43 = vpack.c.bf16 %v2573_v52, %v2561_v22  ;;  %v2340_v12 = vadd.f32 %v8693_v4, %v8689_v42  ;;  %v7408_v4 = vld [vmem:[#allocation8 + $0x7b0] sm:$0xf]  ;;  %v7516_v52 = vld [vmem:[#allocation8 + $0x888] sm:$0xf] }
 0x191   :  { %v8712_v46 = vpop.f32.mrf.mxu3  ;;  %v7445_v54 = vor.u32 %v8118_v1, %v7444_v14  ;;  %v6462_v1 = vld [vmem:[#allocation8 + $0x54] sm:$0xf0] }
 0x192   :  { %v8714_v45 = vpop.f32.mrf.mxu1  ;;  %v6465_v22 = vor.u32 %v7871_v19, %v6462_v1 }
 0x193   :  { %4711 = vmatpush.bf16.msrb.mxu0 %v7205_v55  ;;  %v7552_v55 = vld [vmem:[#allocation8 + $0x8d0] sm:$0xf]  ;;  %4745 = vmatpush.bf16.msrb.mxu2 %v7445_v54  ;;  %v6477_v54 = vor.u32 %v7874_v28, %v6474_v63  ;;  %v2394_v28 = vadd.f32 %v8691_v11, %v8718_v29 }
 0x194   :  { %4730 = vmatpush.bf16.msrb.mxu1 %v7301_v13  ;;  %v7553_v13 = vor.u32 %v8145_v47, %v7552_v55  ;;  %v7529_v55 = vor.u32 %v8139_v2, %v7528_v17  ;;  %v8109_v47 = vld [vmem:[#allocation8 + $0x7b8] sm:$0xf0] }
 0x195   :  { %v7409_v3 = vor.u32 %v8109_v47, %v7408_v4  ;;  %v7889_v2 = vld [vmem:[#allocation8 + $0xdc] sm:$0xf]  ;;  %v7862_v47 = vld [vmem:[#allocation8 + $0x4] sm:$0xf] }
 0x196   :  { %4763 = vmatpush.bf16.msrb.mxu3 %v7553_v13  ;;  %v2359_v13 = vadd.f32 %v8695_v0, %v2340_v12  ;;  %v7892_v0 = vld [vmem:[#allocation8 + $0xf4] sm:$0xf]  ;;  %v7865_v12 = vld [vmem:[#allocation8 + $0x1c] sm:$0xf] }
 0x197   :  { %4712 = vmatpush.bf16.msrb.mxu0 %v7193_v25  ;;  %v7420_v25 = vld [vmem:[#allocation8 + $0x7c8] sm:$0xf]  ;;  %v2379_v15 = vpop.f32.mrf.mxu2  ;;  %4746 = vmatpush.bf16.msrb.mxu2 %v7433_v51  ;;  %v6450_v51 = vld [vmem:[#allocation8 + $0x3c] sm:$0xf0] }
 0x198   :  { %4731 = vmatpush.bf16.msrb.mxu1 %v7289_v16  ;;  %v7898_v16 = vld [vmem:[#allocation8 + $0x124] sm:$0xf]  ;;  %v2410_v56 = vpop.f32.mrf.mxu0  ;;  %v7421_v39 = vor.u32 %v8112_v8, %v7420_v25  ;;  %v2378_v8 = vadd.f32 %v8710_v50, %v2359_v13  ;;  %v6453_v19 = vor.u32 %v7868_v21, %v6450_v51  ;;  %v7492_v51 = vld [vmem:[#allocation8 + $0x858] sm:$0xf] }
 0x199   :  { %v8720_v7 = vpop.f32.mrf.mxu3  ;;  %v8106_v25 = vld [vmem:[#allocation8 + $0x7a0] sm:$0xf0] }
 0x19a   :  { %v2429_v14 = vpop.f32.mrf.mxu1  ;;  %4713 = vmatmul.bf16.vlgmr.msrb.gmra.mxu0 %v8722_v43 }
 0x19b   :  { %4781 = vmatpush.bf16.msra.mxu0 %v6513_v49  ;;  %v6570_v49 = vld [vmem:[#allocation8 + $0x12c] sm:$0xf0]  ;;  %4747 = vmatpush.bf16.msrb.mxu2 %v7421_v39 }
 0x19c   :  { %4800 = vmatpush.bf16.msra.mxu1 %v6609_v41  ;;  %v7541_v41 = vor.u32 %v8142_v37, %v7540_v35  ;;  %v6573_v44 = vor.u32 %v7898_v16, %v6570_v49  ;;  %v6546_v35 = vld [vmem:[#allocation8 + $0xfc] sm:$0xf0] }
 0x19d   :  { %v6549_v1 = vor.u32 %v7892_v0, %v6546_v35  ;;  %v6702_v35 = vld [vmem:[#allocation8 + $0x234] sm:$0xf0] }
 0x19e   :  { %4764 = vmatpush.bf16.msrb.mxu3 %v7541_v41 }
 0x19f   :  { %4782 = vmatpush.bf16.msra.mxu0 %v6501_v60  ;;  %v2392_v60 = vadd.f32 %v8677_v30, %v8718_v29  ;;  %v6561_v30 = vor.u32 %v7895_v9, %v6558_v10  ;;  %4748 = vmatpush.bf16.msrb.mxu2 %v7409_v3  ;;  %v7384_v9 = vld [vmem:[#allocation8 + $0x780] sm:$0xf]  ;;  %v8103_v10 = vld [vmem:[#allocation8 + $0x788] sm:$0xf0]  ;;  %v6426_v3 = vld [vmem:[#allocation8 + $0xc] sm:$0xf0] }
 0x1a0   :  { %4801 = vmatpush.bf16.msra.mxu1 %v6597_v20  ;;  %v2342_v20 = vadd.f32 %v2341_v62, %v8689_v42  ;;  %v8136_v42 = vld [vmem:[#allocation8 + $0x890] sm:$0xf0]  ;;  %v7396_v62 = vld [vmem:[#allocation8 + $0x798] sm:$0xf]  ;;  %v2412_v16 = vpop.f32.mrf.mxu0  ;;  %v7385_v50 = vor.u32 %v8103_v10, %v7384_v9 }
 0x1a1   :  { %v2411_v5 = vadd.f32 %v2410_v56, %v2392_v60  ;;  %v7517_v37 = vor.u32 %v8136_v42, %v7516_v52  ;;  %v7397_v41 = vor.u32 %v8106_v25, %v7396_v62  ;;  %v2413_v11 = vadd.f32 %v2412_v16, %v2394_v28  ;;  %v6534_v60 = vld [vmem:[#allocation8 + $0xe4] sm:$0xf0]  ;;  %v7886_v28 = vld [vmem:[#allocation8 + $0xc4] sm:$0xf]  ;;  %v6894_v16 = vld [vmem:[#allocation8 + $0x3b4] sm:$0xf0] }
 0x1a2   :  { %v2361_v63 = vadd.f32 %v8714_v45, %v2342_v20  ;;  %4765 = vmatpush.bf16.msrb.mxu3 %v7529_v55  ;;  %v2431_v49 = vpop.f32.mrf.mxu1  ;;  %v6438_v45 = vld [vmem:[#allocation8 + $0x24] sm:$0xf0]  ;;  %v6537_v21 = vor.u32 %v7889_v2, %v6534_v60  ;;  %v6882_v2 = vld [vmem:[#allocation8 + $0x39c] sm:$0xf0]  ;;  %v8000_v10 = vld [vmem:[#allocation8 + $0x454] sm:$0xf] }
 0x1a3   :  { %4783 = vmatpush.bf16.msra.mxu0 %v6489_v31  ;;  %v8734_v31 = vpop.f32.mrf.mxu2  ;;  %v2430_v39 = vadd.f32 %v2429_v14, %v2411_v5  ;;  %v2432_v17 = vadd.f32 %v2431_v49, %v2413_v11  ;;  %4749 = vmatpush.bf16.msrb.mxu2 %v7397_v41  ;;  %v6441_v13 = vor.u32 %v7865_v12, %v6438_v45  ;;  %v7979_v5 = vld [vmem:[#allocation8 + $0x3ac] sm:$0xf]  ;;  %v7480_v12 = vld [vmem:[#allocation8 + $0x840] sm:$0xf] }
 0x1a4   :  { %4802 = vmatpush.bf16.msra.mxu1 %v6585_v32  ;;  %v8736_v32 = vpop.f32.mrf.mxu3  ;;  %v2380_v56 = vadd.f32 %v2379_v15, %v2361_v63  ;;  %v2585_v15 = vmax.f32 %v2378_v8, 0.0  ;;  %v6522_v63 = vld [vmem:[#allocation8 + $0xcc] sm:$0xf0]  ;;  %v8003_v41 = vld [vmem:[#allocation8 + $0x46c] sm:$0xf] }
 0x1a5   :  { %v2562_v55 = vmax.f32 %v2430_v39, 0.0  ;;  %v2574_v4 = vmax.f32 %v2432_v17, 0.0  ;;  %v6990_v8 = vld [vmem:[#allocation8 + $0x474] sm:$0xf0]  ;;  %v6429_v39 = vor.u32 %v7862_v47, %v6426_v3  ;;  %v6525_v11 = vor.u32 %v7886_v28, %v6522_v63  ;;  %v8127_v45 = vld [vmem:[#allocation8 + $0x848] sm:$0xf0] }
 0x1a6   :  { %4766 = vmatpush.bf16.msrb.mxu3 %v7517_v37  ;;  %v2597_v14 = vmax.f32 %v2380_v56, 0.0  ;;  %v6993_v9 = vor.u32 %v8003_v41, %v6990_v8  ;;  %v6690_v17 = vld [vmem:[#allocation8 + $0x21c] sm:$0xf0]  ;;  %v7481_v60 = vor.u32 %v8127_v45, %v7480_v12  ;;  %v7922_v8 = vld [vmem:[#allocation8 + $0x1e4] sm:$0xf] }
 0x1a7   :  { %4784 = vmatpush.bf16.msra.mxu0 %v6477_v54  ;;  %v7504_v54 = vld [vmem:[#allocation8 + $0x870] sm:$0xf]  ;;  %v8739_v52 = vpack.c.bf16 %v2574_v4, %v2562_v55  ;;  %4750 = vmatpush.bf16.msrb.mxu2 %v7385_v50  ;;  %v6978_v50 = vld [vmem:[#allocation8 + $0x45c] sm:$0xf0]  ;;  %v6798_v55 = vld [vmem:[#allocation8 + $0x2f4] sm:$0xf0] }
 0x1a8   :  { %4803 = vmatpush.bf16.msra.mxu1 %v6573_v44  ;;  %v8133_v44 = vld [vmem:[#allocation8 + $0x878] sm:$0xf0]  ;;  %v2415_v37 = vpop.f32.mrf.mxu0  ;;  %v8746_v56 = vpack.c.bf16 %v2597_v14, %v2585_v15  ;;  %v2399_v14 = vadd.f32 %v8720_v7, %v8718_v29  ;;  %v6786_v41 = vld [vmem:[#allocation8 + $0x2dc] sm:$0xf0]  ;;  %v6666_v45 = vld [vmem:[#allocation8 + $0x1ec] sm:$0xf0] }
 0x1a9   :  { %v7505_v20 = vor.u32 %v8133_v44, %v7504_v54  ;;  %9034 = vst [vmem:[#allocation21_spill] sm:$0xff] %v8739_v52  ;;  %4732 = vmatmul.bf16.vlgmr.msrb.gmra.mxu1 %v8739_v52  ;;  %v6897_v54 = vor.u32 %v7979_v5, %v6894_v16  ;;  %v7976_v44 = vld [vmem:[#allocation8 + $0x394] sm:$0xf]  ;;  %v7925_v4 = vld [vmem:[#allocation8 + $0x1fc] sm:$0xf] }
 0x1aa   :  { %v2434_v25 = vpop.f32.mrf.mxu1  ;;  %9035 = vst [vmem:[#allocation22_spill] sm:$0xff] %v8746_v56  ;;  %4718 = vmatmul.bf16.gmra.mxu0 %v8746_v56  ;;  %v7973_v5 = vld [vmem:[#allocation8 + $0x37c] sm:$0xf] }
 0x1ab   :  { %4785 = vmatpush.bf16.msra.mxu0 %v6465_v22  ;;  %v8130_v22 = vld [vmem:[#allocation8 + $0x860] sm:$0xf0]  ;;  %v8741_v42 = vpop.f32.mrf.mxu2  ;;  %4767 = vmatpush.bf16.msrb.mxu3 %v7505_v20  ;;  %v7997_v7 = vld [vmem:[#allocation8 + $0x43c] sm:$0xf] }
 0x1ac   :  { %4804 = vmatpush.bf16.msra.mxu1 %v6561_v30  ;;  %v7931_v30 = vld [vmem:[#allocation8 + $0x22c] sm:$0xf]  ;;  %v8743_v62 = vpop.f32.mrf.mxu3  ;;  %v7493_v0 = vor.u32 %v8130_v22, %v7492_v51  ;;  %v6981_v51 = vor.u32 %v8000_v10, %v6978_v50 }
 0x1ad   :  { %v6705_v49 = vor.u32 %v7931_v30, %v6702_v35  ;;  %v6678_v30 = vld [vmem:[#allocation8 + $0x204] sm:$0xf0]  ;;  %v7919_v10 = vld [vmem:[#allocation8 + $0x1cc] sm:$0xf] }
 0x1af   :  { %4786 = vmatpush.bf16.msra.mxu0 %v6453_v19  ;;  %v7928_v19 = vld [vmem:[#allocation8 + $0x214] sm:$0xf]  ;;  %4768 = vmatpush.bf16.msrb.mxu3 %v7493_v0  ;;  %v6966_v0 = vld [vmem:[#allocation8 + $0x444] sm:$0xf0] }
 0x1b0   :  { %4805 = vmatpush.bf16.msra.mxu1 %v6549_v1  ;;  %v2397_v1 = vadd.f32 %v8712_v46, %v8718_v29  ;;  %4819 = vmatpush.bf16.msra.mxu2 %v6705_v49  ;;  %v6693_v20 = vor.u32 %v7928_v19, %v6690_v17  ;;  %v7955_v46 = vld [vmem:[#allocation8 + $0x2ec] sm:$0xf]  ;;  %v2417_v28 = vpop.f32.mrf.mxu0  ;;  %v6681_v29 = vor.u32 %v7925_v4, %v6678_v30  ;;  %v7952_v49 = vld [vmem:[#allocation8 + $0x2d4] sm:$0xf]  ;;  %v8758_v19 = vperm.slane %v8683_v40, 2 }
 0x1b1   :  { %v6801_v22 = vor.u32 %v7955_v46, %v6798_v55  ;;  %v6789_v12 = vor.u32 %v7952_v49, %v6786_v41  ;;  %v7970_v17 = vld [vmem:[#allocation8 + $0x364] sm:$0xf]  ;;  %v6654_v4 = vld [vmem:[#allocation8 + $0x1d4] sm:$0xf0]  ;;  %v6642_v41 = vld [vmem:[#allocation8 + $0x1bc] sm:$0xf0] }
 0x1b2   :  { %v2416_v15 = vadd.f32 %v2415_v37, %v2397_v1  ;;  %v2436_v63 = vpop.f32.mrf.mxu1  ;;  %v2418_v37 = vadd.f32 %v2417_v28, %v2399_v14  ;;  %v6669_v1 = vor.u32 %v7922_v8, %v6666_v45  ;;  %v2449_v30 = vadd.f32 %v8734_v31, %v8758_v19  ;;  %v7967_v28 = vld [vmem:[#allocation8 + $0x34c] sm:$0xf] }
 0x1b3   :  { %4787 = vmatpush.bf16.msra.mxu0 %v6441_v13  ;;  %v8753_v47 = vpop.f32.mrf.mxu2  ;;  %v6885_v13 = vor.u32 %v7976_v44, %v6882_v2  ;;  %4769 = vmatpush.bf16.msrb.mxu3 %v7481_v60  ;;  %v6954_v44 = vld [vmem:[#allocation8 + $0x42c] sm:$0xf0]  ;;  %v7949_v60 = vld [vmem:[#allocation8 + $0x2bc] sm:$0xf]  ;;  %v8773_v31 = vperm.slane %v8683_v40, 3 }
 0x1b4   :  { %4806 = vmatpush.bf16.msra.mxu1 %v6537_v21  ;;  %v8755_v3 = vpop.f32.mrf.mxu3  ;;  %v6870_v21 = vld [vmem:[#allocation8 + $0x384] sm:$0xf0]  ;;  %4820 = vmatpush.bf16.msra.mxu2 %v6693_v20  ;;  %v2435_v35 = vadd.f32 %v2434_v25, %v2416_v15  ;;  %v6858_v2 = vld [vmem:[#allocation8 + $0x36c] sm:$0xf0]  ;;  %v2468_v45 = vadd.f32 %v8736_v32, %v2449_v30 }
 0x1b5   :  { %v6873_v16 = vor.u32 %v7973_v5, %v6870_v21  ;;  %v6774_v20 = vld [vmem:[#allocation8 + $0x2c4] sm:$0xf0]  ;;  %v6861_v21 = vor.u32 %v7970_v17, %v6858_v2 }
 0x1b6   :  { %v2586_v25 = vmax.f32 %v2435_v35, 0.0  ;;  %v6777_v55 = vor.u32 %v7949_v60, %v6774_v20  ;;  %v7916_v35 = vld [vmem:[#allocation8 + $0x1b4] sm:$0xf] }
 0x1b7   :  { %4788 = vmatpush.bf16.msra.mxu0 %v6429_v39  ;;  %4838 = vmatpush.bf16.msra.mxu3 %v6801_v22  ;;  %v2437_v39 = vadd.f32 %v2436_v63, %v2418_v37  ;;  %v7991_v22 = vld [vmem:[#allocation8 + $0x40c] sm:$0xf]  ;;  %v6846_v63 = vld [vmem:[#allocation8 + $0x354] sm:$0xf0]  ;;  %v2451_v37 = vadd.f32 %v8741_v42, %v8758_v19 }
 0x1b8   :  { %4807 = vmatpush.bf16.msra.mxu1 %v6525_v11  ;;  %v6969_v11 = vor.u32 %v7997_v7, %v6966_v0  ;;  %4821 = vmatpush.bf16.msra.mxu2 %v6681_v29  ;;  %v6942_v29 = vld [vmem:[#allocation8 + $0x414] sm:$0xf0]  ;;  %v7946_v7 = vld [vmem:[#allocation8 + $0x2a4] sm:$0xf]  ;;  %v6762_v0 = vld [vmem:[#allocation8 + $0x2ac] sm:$0xf0]  ;;  %v6849_v8 = vor.u32 %v7967_v28, %v6846_v63 }
 0x1b9   :  { %v6765_v49 = vor.u32 %v7946_v7, %v6762_v0  ;;  %v7943_v42 = vld [vmem:[#allocation8 + $0x28c] sm:$0xf]  ;;  %v7961_v28 = vld [vmem:[#allocation8 + $0x31c] sm:$0xf]  ;;  %v6738_v63 = vld [vmem:[#allocation8 + $0x27c] sm:$0xf0] }
 0x1ba   :  { %v2505_v5 = vpop.f32.mrf.mxu1  ;;  %4789 = vmatmul.bf16.vlgmr.msra.gmra.mxu0 %v8438_v18 }
 0x1bb   :  { %4857 = vmatpush.bf16.msrb.mxu0 %v6897_v54  ;;  %v7994_v54 = vld [vmem:[#allocation8 + $0x424] sm:$0xf]  ;;  %4839 = vmatpush.bf16.msra.mxu3 %v6789_v12  ;;  %v8760_v50 = vpop.f32.mrf.mxu2  ;;  %v6930_v12 = vld [vmem:[#allocation8 + $0x3fc] sm:$0xf0] }
 0x1bc   :  { %4876 = vmatpush.bf16.msrb.mxu1 %v6993_v9  ;;  %v2598_v9 = vmax.f32 %v2437_v39, 0.0  ;;  %v8762_v15 = vpop.f32.mrf.mxu3  ;;  %v6957_v46 = vor.u32 %v7994_v54, %v6954_v44  ;;  %4822 = vmatpush.bf16.msra.mxu2 %v6669_v1  ;;  %v6645_v39 = vor.u32 %v7916_v35, %v6642_v41  ;;  %v7964_v1 = vld [vmem:[#allocation8 + $0x334] sm:$0xf]  ;;  %v6834_v54 = vld [vmem:[#allocation8 + $0x33c] sm:$0xf0] }
 0x1bd   :  { %v6750_v44 = vld [vmem:[#allocation8 + $0x294] sm:$0xf0]  ;;  %v6837_v32 = vor.u32 %v7964_v1, %v6834_v54  ;;  %v7958_v41 = vld [vmem:[#allocation8 + $0x304] sm:$0xf]  ;;  %v6906_v54 = vld [vmem:[#allocation8 + $0x3cc] sm:$0xf0] }
 0x1be   :  { %v8764_v14 = vpack.c.bf16 %v2598_v9, %v2586_v25  ;;  %v7913_v25 = vld [vmem:[#allocation8 + $0x19c] sm:$0xf]  ;;  %v2470_v9 = vadd.f32 %v8743_v62, %v2451_v37  ;;  %v6753_v20 = vor.u32 %v7943_v42, %v6750_v44  ;;  %v6822_v62 = vld [vmem:[#allocation8 + $0x324] sm:$0xf0]  ;;  %v6618_v37 = vld [vmem:[#allocation8 + $0x18c] sm:$0xf0] }
 0x1bf   :  { %4858 = vmatpush.bf16.msrb.mxu0 %v6885_v13  ;;  %v2486_v13 = vpop.f32.mrf.mxu0  ;;  %4840 = vmatpush.bf16.msra.mxu3 %v6777_v55  ;;  %v7278_v1 = vld [vmem:[#allocation8 + $0x6b4] sm:$0xf0]  ;;  %v7937_v44 = vld [vmem:[#allocation8 + $0x25c] sm:$0xf] }
 0x1c0   :  { %4877 = vmatpush.bf16.msrb.mxu1 %v6981_v51  ;;  %9036 = vst [vmem:[#allocation23_spill] sm:$0xff] %v8764_v14  ;;  %v6657_v51 = vor.u32 %v7919_v10, %v6654_v4  ;;  %v2487_v17 = vadd.f32 %v2486_v13, %v2468_v45  ;;  %v6630_v10 = vld [vmem:[#allocation8 + $0x1a4] sm:$0xf0]  ;;  %v7940_v13 = vld [vmem:[#allocation8 + $0x274] sm:$0xf] }
 0x1c1   :  { %4737 = vmatmul.bf16.gmra.mxu1 %v8764_v14  ;;  %v8075_v45 = vld [vmem:[#allocation8 + $0x6ac] sm:$0xf] }
 0x1c2   :  { %4823 = vmatpush.bf16.msra.mxu2 %v6657_v51  ;;  %v2507_v4 = vpop.f32.mrf.mxu1  ;;  %v7985_v51 = vld [vmem:[#allocation8 + $0x3dc] sm:$0xf]  ;;  %v2563_v7 = vmax.f32 %v2487_v17, 0.0 }
 0x1c3   :  { %4859 = vmatpush.bf16.msrb.mxu0 %v6873_v16  ;;  %v6945_v16 = vor.u32 %v7991_v22, %v6942_v29  ;;  %4841 = vmatpush.bf16.msra.mxu3 %v6765_v49  ;;  %v2524_v2 = vpop.f32.mrf.mxu2  ;;  %v6918_v22 = vld [vmem:[#allocation8 + $0x3e4] sm:$0xf0]  ;;  %v7910_v29 = vld [vmem:[#allocation8 + $0x184] sm:$0xf]  ;;  %v6825_v49 = vor.u32 %v7961_v28, %v6822_v62  ;;  %v2508_v42 = vadd.f32 %v2507_v4, %v8773_v31  ;;  %v8099_v4 = vld [vmem:[#allocation8 + $0x76c] sm:$0xf] }
 0x1c4   :  { %4878 = vmatpush.bf16.msrb.mxu1 %v6969_v11  ;;  %v7988_v11 = vld [vmem:[#allocation8 + $0x3f4] sm:$0xf]  ;;  %v2543_v40 = vpop.f32.mrf.mxu3  ;;  %v6921_v35 = vor.u32 %v7985_v51, %v6918_v22  ;;  %v2454_v28 = vadd.f32 %v8753_v47, %v8758_v19  ;;  %v7281_v62 = vor.u32 %v8075_v45, %v7278_v1  ;;  %v7074_v47 = vld [vmem:[#allocation8 + $0x51c] sm:$0xf0]  ;;  %v8069_v45 = vld [vmem:[#allocation8 + $0x67c] sm:$0xf] }
 0x1c5   :  { %v6933_v60 = vor.u32 %v7988_v11, %v6930_v12  ;;  %v7982_v11 = vld [vmem:[#allocation8 + $0x3c4] sm:$0xf]  ;;  %v7254_v1 = vld [vmem:[#allocation8 + $0x684] sm:$0xf0] }
 0x1c6   :  { %4824 = vmatpush.bf16.msra.mxu2 %v6645_v39  ;;  %v6621_v39 = vor.u32 %v7910_v29, %v6618_v37 }
 0x1c7   :  { %4860 = vmatpush.bf16.msrb.mxu0 %v6861_v21  ;;  %v2488_v55 = vpop.f32.mrf.mxu0  ;;  %v6633_v21 = vor.u32 %v7913_v25, %v6630_v10  ;;  %4842 = vmatpush.bf16.msra.mxu3 %v6753_v20  ;;  %v6726_v25 = vld [vmem:[#allocation8 + $0x264] sm:$0xf0]  ;;  %v6909_v20 = vor.u32 %v7982_v11, %v6906_v54  ;;  %v7362_v54 = vld [vmem:[#allocation8 + $0x75c] sm:$0xf0] }
 0x1c8   :  { %4879 = vmatpush.bf16.msrb.mxu1 %v6957_v46  ;;  %v2506_v46 = vadd.f32 %v2505_v5, %v8773_v31  ;;  %v2489_v30 = vadd.f32 %v2488_v55, %v2470_v9  ;;  %v6741_v5 = vor.u32 %v7940_v13, %v6738_v63  ;;  %v8027_v9 = vld [vmem:[#allocation8 + $0x52c] sm:$0xf]  ;;  %v6729_v10 = vor.u32 %v7937_v44, %v6726_v25  ;;  %v8072_v13 = vld [vmem:[#allocation8 + $0x694] sm:$0xf]  ;;  %v7266_v63 = vld [vmem:[#allocation8 + $0x69c] sm:$0xf0] }
 0x1c9   :  { %v7269_v11 = vor.u32 %v8072_v13, %v7266_v63  ;;  %v7182_v44 = vld [vmem:[#allocation8 + $0x5f4] sm:$0xf0]  ;;  %v8021_v25 = vld [vmem:[#allocation8 + $0x4fc] sm:$0xf]  ;;  %v8048_v13 = vld [vmem:[#allocation8 + $0x5d4] sm:$0xf] }
 0x1ca   :  { %v2575_v0 = vmax.f32 %v2489_v30, 0.0  ;;  %4825 = vmatpush.bf16.msra.mxu2 %v6633_v21  ;;  %v2510_v51 = vpop.f32.mrf.mxu1  ;;  %v7374_v30 = vld [vmem:[#allocation8 + $0x774] sm:$0xf0]  ;;  %4794 = vmatmul.bf16.gmra.mxu0 %v8461_v33  ;;  %v7170_v63 = vld [vmem:[#allocation8 + $0x5dc] sm:$0xf0] }
 0x1cb   :  { %4861 = vmatpush.bf16.msrb.mxu0 %v6849_v8  ;;  %v6810_v8 = vld [vmem:[#allocation8 + $0x30c] sm:$0xf0]  ;;  %4843 = vmatpush.bf16.msra.mxu3 %v6741_v5  ;;  %v2526_v17 = vpop.f32.mrf.mxu2  ;;  %v7377_v29 = vor.u32 %v8099_v4, %v7374_v30  ;;  %v2456_v5 = vadd.f32 %v8760_v50, %v8758_v19  ;;  %v7350_v4 = vld [vmem:[#allocation8 + $0x744] sm:$0xf0] }
 0x1cc   :  { %4880 = vmatpush.bf16.msrb.mxu1 %v6945_v16  ;;  %v2525_v16 = vadd.f32 %v2524_v2, %v2506_v46  ;;  %v8778_v12 = vpack.c.bf16 %v2575_v0, %v2563_v7  ;;  %v2545_v2 = vpop.f32.mrf.mxu3  ;;  %v7086_v46 = vld [vmem:[#allocation8 + $0x534] sm:$0xf0]  ;;  %v6714_v0 = vld [vmem:[#allocation8 + $0x24c] sm:$0xf0] }
 0x1cd   :  { %v7089_v22 = vor.u32 %v8027_v9, %v7086_v46  ;;  %v2475_v9 = vadd.f32 %v8762_v15, %v2456_v5  ;;  %v7242_v15 = vld [vmem:[#allocation8 + $0x66c] sm:$0xf0] }
 0x1ce   :  { %9037 = vst [vmem:[#allocation24_spill] sm:$0xff] %v8778_v12  ;;  %4751 = vmatmul.bf16.vlgmr.msrb.gmra.mxu2 %v8778_v12  ;;  %v2544_v55 = vadd.f32 %v2543_v40, %v2525_v16  ;;  %v7934_v40 = vld [vmem:[#allocation8 + $0x244] sm:$0xf] }
 0x1cf   :  { %4862 = vmatpush.bf16.msrb.mxu0 %v6837_v32  ;;  %v2527_v32 = vadd.f32 %v2526_v17, %v2508_v42  ;;  %v2491_v21 = vpop.f32.mrf.mxu0  ;;  %4826 = vmatpush.bf16.msra.mxu2 %v6621_v39  ;;  %v6717_v37 = vor.u32 %v7934_v40, %v6714_v0  ;;  %v2473_v39 = vadd.f32 %v8755_v3, %v2454_v28  ;;  %v8051_v42 = vld [vmem:[#allocation8 + $0x5ec] sm:$0xf]  ;;  %v7062_v3 = vld [vmem:[#allocation8 + $0x504] sm:$0xf0]  ;;  %v7050_v0 = vld [vmem:[#allocation8 + $0x4ec] sm:$0xf0] }
 0x1d0   :  { %4881 = vmatpush.bf16.msrb.mxu1 %v6933_v60  ;;  %v6813_v60 = vor.u32 %v7958_v41, %v6810_v8  ;;  %4844 = vmatpush.bf16.msra.mxu3 %v6729_v10  ;;  %v2564_v16 = vmax.f32 %v2544_v55, 0.0  ;;  %v8096_v8 = vld [vmem:[#allocation8 + $0x754] sm:$0xf]  ;;  %v2511_v10 = vadd.f32 %v2510_v51, %v8773_v31  ;;  %v7257_v28 = vor.u32 %v8069_v45, %v7254_v1  ;;  %v8045_v45 = vld [vmem:[#allocation8 + $0x5bc] sm:$0xf] }
 0x1d1   :  { %4808 = vmatmul.bf16.vlgmr.msra.gmra.mxu1 %v8476_v26  ;;  %v2546_v7 = vadd.f32 %v2545_v2, %v2527_v32  ;;  %v7365_v50 = vor.u32 %v8096_v8, %v7362_v54  ;;  %v2492_v17 = vadd.f32 %v2491_v21, %v2473_v39  ;;  %v7065_v32 = vor.u32 %v8021_v25, %v7062_v3  ;;  %v7338_v8 = vld [vmem:[#allocation8 + $0x72c] sm:$0xf0]  ;;  %v7158_v1 = vld [vmem:[#allocation8 + $0x5c4] sm:$0xf0]  ;;  %v8015_v54 = vld [vmem:[#allocation8 + $0x4cc] sm:$0xf] }
 0x1d2   :  { %v2512_v55 = vpop.f32.mrf.mxu1  ;;  %v7173_v40 = vor.u32 %v8048_v13, %v7170_v63  ;;  %v8087_v3 = vld [vmem:[#allocation8 + $0x70c] sm:$0xf] }
 0x1d3   :  { %4863 = vmatpush.bf16.msrb.mxu0 %v6825_v49  ;;  %4895 = vmatpush.bf16.msrb.mxu2 %v7089_v22  ;;  %v2576_v49 = vmax.f32 %v2546_v7, 0.0  ;;  %v2529_v2 = vpop.f32.mrf.mxu2  ;;  %v8093_v22 = vld [vmem:[#allocation8 + $0x73c] sm:$0xf]  ;;  %v2587_v51 = vmax.f32 %v2492_v17, 0.0  ;;  %v2513_v39 = vadd.f32 %v2512_v55, %v8773_v31  ;;  %v7326_v31 = vld [vmem:[#allocation8 + $0x714] sm:$0xf0] }
 0x1d4   :  { %4882 = vmatpush.bf16.msrb.mxu1 %v6921_v35  ;;  %v8024_v35 = vld [vmem:[#allocation8 + $0x514] sm:$0xf]  ;;  %4845 = vmatpush.bf16.msra.mxu3 %v6717_v37  ;;  %v7353_v21 = vor.u32 %v8093_v22, %v7350_v4  ;;  %v8090_v37 = vld [vmem:[#allocation8 + $0x724] sm:$0xf]  ;;  %v7329_v22 = vor.u32 %v8087_v3, %v7326_v31  ;;  %v6516_v31 = vld [vmem:[#allocation8 + $0xb0] sm:$0xf] }
 0x1d5   :  { %v7077_v41 = vor.u32 %v8024_v35, %v7074_v47  ;;  %v8789_v19 = vpack.c.bf16 %v2576_v49, %v2564_v16  ;;  %v2530_v35 = vadd.f32 %v2529_v2, %v2511_v10  ;;  %v8063_v49 = vld [vmem:[#allocation8 + $0x64c] sm:$0xf]  ;;  %v8060_v55 = vld [vmem:[#allocation8 + $0x634] sm:$0xf]  ;;  %v8006_v3 = vld [vmem:[#allocation8 + $0x484] sm:$0xf] }
 0x1d7   :  { %4864 = vmatpush.bf16.msrb.mxu0 %v6813_v60  ;;  %9038 = vst [vmem:[#allocation25_spill] sm:$0xff] %v8789_v19  ;;  %4896 = vmatpush.bf16.msrb.mxu2 %v7077_v41  ;;  %v2548_v60 = vpop.f32.mrf.mxu3  ;;  %v2493_v46 = vpop.f32.mrf.mxu0  ;;  %v7230_v41 = vld [vmem:[#allocation8 + $0x654] sm:$0xf0] }
 0x1d8   :  { %4883 = vmatpush.bf16.msrb.mxu1 %v6909_v20  ;;  %v7185_v20 = vor.u32 %v8051_v42, %v7182_v44  ;;  %4770 = vmatmul.bf16.vlgmr.msrb.gmra.mxu3 %v8789_v19  ;;  %v2494_v30 = vadd.f32 %v2493_v46, %v2475_v9  ;;  %v7161_v42 = vor.u32 %v8045_v45, %v7158_v1  ;;  %v7038_v44 = vld [vmem:[#allocation8 + $0x4d4] sm:$0xf0]  ;;  %v8081_v45 = vld [vmem:[#allocation8 + $0x6dc] sm:$0xf]  ;;  %v7302_v1 = vld [vmem:[#allocation8 + $0x6e4] sm:$0xf0] }
 0x1d9   :  { %v2549_v25 = vadd.f32 %v2548_v60, %v2530_v35  ;;  %v7233_v46 = vor.u32 %v8063_v49, %v7230_v41  ;;  %v8042_v60 = vld [vmem:[#allocation8 + $0x5a4] sm:$0xf]  ;;  %v8009_v49 = vld [vmem:[#allocation8 + $0x49c] sm:$0xf] }
 0x1da   :  { %4914 = vmatpush.bf16.msrb.mxu3 %v7185_v20  ;;  %v2599_v7 = vmax.f32 %v2494_v30, 0.0  ;;  %v8800_v2 = vpop.f32.mrf.mxu1  ;;  %v7041_v20 = vor.u32 %v8015_v54, %v7038_v44  ;;  %v7146_v30 = vld [vmem:[#allocation8 + $0x5ac] sm:$0xf0]  ;;  %4865 = vmatmul.bf16.vlgmr.msrb.gmra.mxu0 %v8555_v24  ;;  %v7305_v44 = vor.u32 %v8081_v45, %v7302_v1  ;;  %v7879_v45 = vld [vmem:[#allocation8 + $0x88] sm:$0xf0] }
 0x1db   :  { %4933 = vmatpush.bf16.msra.mxu0 %v7281_v62  ;;  %v8066_v62 = vld [vmem:[#allocation8 + $0x664] sm:$0xf]  ;;  %4897 = vmatpush.bf16.msrb.mxu2 %v7065_v32  ;;  %v7218_v32 = vld [vmem:[#allocation8 + $0x63c] sm:$0xf0] }
 0x1dc   :  { %4952 = vmatpush.bf16.msra.mxu1 %v7377_v29  ;;  %v8018_v29 = vld [vmem:[#allocation8 + $0x4e4] sm:$0xf]  ;;  %v8794_v47 = vpack.c.bf16 %v2599_v7, %v2587_v51  ;;  %v7245_v16 = vor.u32 %v8066_v62, %v7242_v15  ;;  %v7149_v62 = vor.u32 %v8042_v60, %v7146_v30  ;;  %v7026_v15 = vld [vmem:[#allocation8 + $0x4bc] sm:$0xf0]  ;;  %v7221_v7 = vor.u32 %v8060_v55, %v7218_v32  ;;  %v7002_v55 = vld [vmem:[#allocation8 + $0x48c] sm:$0xf0] }
 0x1dd   :  { %v7053_v5 = vor.u32 %v8018_v29, %v7050_v0  ;;  %v8084_v29 = vld [vmem:[#allocation8 + $0x6f4] sm:$0xf]  ;;  %v7314_v51 = vld [vmem:[#allocation8 + $0x6fc] sm:$0xf0]  ;;  %v7206_v0 = vld [vmem:[#allocation8 + $0x624] sm:$0xf0]  ;;  %v7005_v32 = vor.u32 %v8006_v3, %v7002_v55 }
 0x1de   :  { %9039 = vst [vmem:[#allocation26_spill] sm:$0xff] %v8794_v47  ;;  %4915 = vmatpush.bf16.msrb.mxu3 %v7173_v40  ;;  %4756 = vmatmul.bf16.gmra.mxu2 %v8794_v47  ;;  %v8057_v40 = vld [vmem:[#allocation8 + $0x61c] sm:$0xf]  ;;  %v7317_v35 = vor.u32 %v8084_v29, %v7314_v51  ;;  %v7470_v51 = vld [vmem:[#allocation8 + $0x834] sm:$0xf0] }
 0x1df   :  { %4934 = vmatpush.bf16.msra.mxu0 %v7269_v11  ;;  %4898 = vmatpush.bf16.msrb.mxu2 %v7053_v5  ;;  %v7341_v11 = vor.u32 %v8090_v37, %v7338_v8  ;;  %v8798_v17 = vpop.f32.mrf.mxu0  ;;  %v2550_v10 = vpop.f32.mrf.mxu3  ;;  %v8039_v37 = vld [vmem:[#allocation8 + $0x58c] sm:$0xf]  ;;  %v7014_v8 = vld [vmem:[#allocation8 + $0x4a4] sm:$0xf0]  ;;  %v7209_v54 = vor.u32 %v8057_v40, %v7206_v0  ;;  %v6612_v0 = vld [vmem:[#allocation8 + $0x170] sm:$0xf] }
 0x1e0   :  { %4953 = vmatpush.bf16.msra.mxu1 %v7365_v50  ;;  %v2531_v50 = vpop.f32.mrf.mxu2  ;;  %v6480_v55 = vld [vmem:[#allocation8 + $0x68] sm:$0xf] }
 0x1e1   :  { %v2532_v9 = vadd.f32 %v2531_v50, %v2513_v39  ;;  %4813 = vmatmul.bf16.gmra.mxu1 %v8493_v59  ;;  %v8054_v50 = vld [vmem:[#allocation8 + $0x604] sm:$0xf] }
 0x1e2   :  { %4916 = vmatpush.bf16.msrb.mxu3 %v7161_v42  ;;  %v7194_v42 = vld [vmem:[#allocation8 + $0x60c] sm:$0xf0] }
 0x1e3   :  { %4935 = vmatpush.bf16.msra.mxu0 %v7257_v28  ;;  %v2551_v4 = vadd.f32 %v2550_v10, %v2532_v9  ;;  %4899 = vmatpush.bf16.msrb.mxu2 %v7041_v20  ;;  %v8012_v28 = vld [vmem:[#allocation8 + $0x4b4] sm:$0xf]  ;;  %v7122_v20 = vld [vmem:[#allocation8 + $0x57c] sm:$0xf0]  ;;  %v7885_v10 = vld [vmem:[#allocation8 + $0xb8] sm:$0xf0]  ;;  %v7197_v60 = vor.u32 %v8054_v50, %v7194_v42 }
 0x1e4   :  { %4954 = vmatpush.bf16.msra.mxu1 %v7353_v21  ;;  %v2588_v21 = vmax.f32 %v2549_v25, 0.0  ;;  %v7029_v63 = vor.u32 %v8012_v28, %v7026_v15  ;;  %v8809_v25 = vpop.f32.mrf.mxu1  ;;  %v8036_v9 = vld [vmem:[#allocation8 + $0x574] sm:$0xf]  ;;  %v6517_v28 = vor.u32 %v7885_v10, %v6516_v31  ;;  %v7110_v15 = vld [vmem:[#allocation8 + $0x564] sm:$0xf0] }
 0x1e5   :  { %v2600_v13 = vmax.f32 %v2551_v4, 0.0  ;;  %v7290_v4 = vld [vmem:[#allocation8 + $0x6cc] sm:$0xf0]  ;;  %v8147_v31 = vld [vmem:[#allocation8 + $0x8ec] sm:$0xf] }
 0x1e6   :  { %4917 = vmatpush.bf16.msrb.mxu3 %v7149_v62  ;;  %v8033_v62 = vld [vmem:[#allocation8 + $0x55c] sm:$0xf]  ;;  %v7566_v10 = vld [vmem:[#allocation8 + $0x8f4] sm:$0xf0] }
 0x1e7   :  { %4936 = vmatpush.bf16.msra.mxu0 %v7245_v16  ;;  %v8804_v5 = vpack.c.bf16 %v2600_v13, %v2588_v21  ;;  %4900 = vmatpush.bf16.msrb.mxu2 %v7029_v63  ;;  %v7134_v16 = vld [vmem:[#allocation8 + $0x594] sm:$0xf0]  ;;  %v8807_v39 = vpop.f32.mrf.mxu0  ;;  %v8123_v21 = vld [vmem:[#allocation8 + $0x82c] sm:$0xf]  ;;  %v7882_v63 = vld [vmem:[#allocation8 + $0xa0] sm:$0xf0]  ;;  %v7113_v29 = vor.u32 %v8033_v62, %v7110_v15 }
 0x1e8   :  { %4955 = vmatpush.bf16.msra.mxu1 %v7341_v11  ;;  %v7137_v41 = vor.u32 %v8039_v37, %v7134_v16  ;;  %v7017_v11 = vor.u32 %v8009_v49, %v7014_v8  ;;  %v6504_v13 = vld [vmem:[#allocation8 + $0x98] sm:$0xf]  ;;  %v7473_v40 = vor.u32 %v8123_v21, %v7470_v51  ;;  %v8030_v49 = vld [vmem:[#allocation8 + $0x544] sm:$0xf]  ;;  %v8120_v8 = vld [vmem:[#allocation8 + $0x814] sm:$0xf] }
 0x1e9   :  { %4775 = vmatmul.bf16.gmra.mxu3 %v8804_v5  ;;  %v6505_v16 = vor.u32 %v7882_v63, %v6504_v13  ;;  %v7903_v62 = vld [vmem:[#allocation8 + $0x148] sm:$0xf0]  ;;  %v8144_v13 = vld [vmem:[#allocation8 + $0x8d4] sm:$0xf]  ;;  %v7554_v63 = vld [vmem:[#allocation8 + $0x8dc] sm:$0xf0] }
 0x1ea   :  { %4918 = vmatpush.bf16.msrb.mxu3 %v7137_v41  ;;  %v7098_v41 = vld [vmem:[#allocation8 + $0x54c] sm:$0xf0]  ;;  %4870 = vmatmul.bf16.gmra.mxu0 %v8576_v48 }
 0x1eb   :  { %4937 = vmatpush.bf16.msra.mxu0 %v7233_v46  ;;  %4901 = vmatpush.bf16.msrb.mxu2 %v7017_v11  ;;  %v7125_v46 = vor.u32 %v8036_v9, %v7122_v20  ;;  %v6492_v11 = vld [vmem:[#allocation8 + $0x80] sm:$0xf]  ;;  %v7101_v1 = vor.u32 %v8030_v49, %v7098_v41  ;;  %v7906_v9 = vld [vmem:[#allocation8 + $0x160] sm:$0xf0]  ;;  %v6468_v51 = vld [vmem:[#allocation8 + $0x50] sm:$0xf] }
 0x1ec   :  { %4956 = vmatpush.bf16.msra.mxu1 %v7329_v22  ;;  %v8078_v22 = vld [vmem:[#allocation8 + $0x6c4] sm:$0xf]  ;;  %v8816_v50 = vpop.f32.mrf.mxu1  ;;  %v6493_v3 = vor.u32 %v7879_v45, %v6492_v11  ;;  %v7900_v49 = vld [vmem:[#allocation8 + $0x130] sm:$0xf0]  ;;  %v8141_v45 = vld [vmem:[#allocation8 + $0x8bc] sm:$0xf] }
 0x1ed   :  { %v7293_v30 = vor.u32 %v8078_v22, %v7290_v4  ;;  %v7569_v22 = vor.u32 %v8147_v31, %v7566_v10  ;;  %v7446_v4 = vld [vmem:[#allocation8 + $0x804] sm:$0xf0]  ;;  %v6564_v10 = vld [vmem:[#allocation8 + $0x110] sm:$0xf] }
 0x1ee   :  { %4919 = vmatpush.bf16.msrb.mxu3 %v7125_v46  ;;  %4827 = vmatmul.bf16.vlgmr.msra.gmra.mxu2 %v8510_v57  ;;  %v8117_v46 = vld [vmem:[#allocation8 + $0x7fc] sm:$0xf] }
 0x1ef   :  { %4938 = vmatpush.bf16.msra.mxu0 %v7221_v7  ;;  %4902 = vmatpush.bf16.msrb.mxu2 %v7005_v32  ;;  %v8812_v7 = vpop.f32.mrf.mxu0  ;;  %v7876_v32 = vld [vmem:[#allocation8 + $0x70] sm:$0xf0] }
 0x1f0   :  { %4957 = vmatpush.bf16.msra.mxu1 %v7317_v35  ;;  %v7909_v35 = vld [vmem:[#allocation8 + $0x178] sm:$0xf0]  ;;  %v6481_v21 = vor.u32 %v7876_v32, %v6480_v55 }
 0x1f1   :  { %4884 = vmatmul.bf16.vlgmr.msrb.gmra.mxu1 %v8584_v58  ;;  %v6613_v37 = vor.u32 %v7909_v35, %v6612_v0  ;;  %v7557_v0 = vor.u32 %v8144_v13, %v7554_v63  ;;  %v7434_v35 = vld [vmem:[#allocation8 + $0x7ec] sm:$0xf0]  ;;  %v8828_v13 = vpop.f32.mrf.mxu2 }
 0x1f2   :  { %4920 = vmatpush.bf16.msrb.mxu3 %v7113_v29  ;;  %v8114_v29 = vld [vmem:[#allocation8 + $0x7e4] sm:$0xf] }
 0x1f3   :  { %4939 = vmatpush.bf16.msra.mxu0 %v7209_v54  ;;  %4971 = vmatpush.bf16.msra.mxu2 %v7473_v40  ;;  %v7458_v54 = vld [vmem:[#allocation8 + $0x81c] sm:$0xf0]  ;;  %v7873_v40 = vld [vmem:[#allocation8 + $0x58] sm:$0xf0] }
 0x1f4   :  { %4958 = vmatpush.bf16.msra.mxu1 %v7305_v44  ;;  %v7461_v42 = vor.u32 %v8120_v8, %v7458_v54  ;;  %v6600_v44 = vld [vmem:[#allocation8 + $0x158] sm:$0xf]  ;;  %v8821_v8 = vpop.f32.mrf.mxu1  ;;  %v6469_v11 = vor.u32 %v7873_v40, %v6468_v51  ;;  %v8111_v54 = vld [vmem:[#allocation8 + $0x7cc] sm:$0xf]  ;;  %v7894_v51 = vld [vmem:[#allocation8 + $0x100] sm:$0xf0] }
 0x1f5   :  { %v6601_v20 = vor.u32 %v7906_v9, %v6600_v44  ;;  %v7870_v44 = vld [vmem:[#allocation8 + $0x40] sm:$0xf0]  ;;  %v6432_v40 = vld [vmem:[#allocation8 + $0x8] sm:$0xf] }
 0x1f6   :  { %4921 = vmatpush.bf16.msrb.mxu3 %v7101_v1  ;;  %v7542_v1 = vld [vmem:[#allocation8 + $0x8c4] sm:$0xf0] }
 0x1f7   :  { %4940 = vmatpush.bf16.msra.mxu0 %v7197_v60  ;;  %4972 = vmatpush.bf16.msra.mxu2 %v7461_v42  ;;  %v8819_v60 = vpop.f32.mrf.mxu0  ;;  %v6456_v42 = vld [vmem:[#allocation8 + $0x38] sm:$0xf]  ;;  %v7545_v9 = vor.u32 %v8141_v45, %v7542_v1  ;;  %v7398_v1 = vld [vmem:[#allocation8 + $0x7a4] sm:$0xf0] }
 0x1f8   :  { %4959 = vmatpush.bf16.msra.mxu1 %v7293_v30  ;;  %v7449_v30 = vor.u32 %v8117_v46, %v7446_v4  ;;  %v7897_v46 = vld [vmem:[#allocation8 + $0x118] sm:$0xf0]  ;;  %v6457_v32 = vor.u32 %v7870_v44, %v6456_v42  ;;  %v7530_v4 = vld [vmem:[#allocation8 + $0x8ac] sm:$0xf0] }
 0x1f9   :  { %4846 = vmatmul.bf16.vlgmr.msra.gmra.mxu3 %v8522_v53  ;;  %v6565_v55 = vor.u32 %v7897_v46, %v6564_v10  ;;  %v7981_v44 = vld [vmem:[#allocation8 + $0x3b8] sm:$0xf0]  ;;  %v8132_v46 = vld [vmem:[#allocation8 + $0x874] sm:$0xf] }
 0x1fa   :  { %4990 = vmatpush.bf16.msra.mxu3 %v7569_v22  ;;  %v8138_v22 = vld [vmem:[#allocation8 + $0x8a4] sm:$0xf]  ;;  %4941 = vmatmul.bf16.vlgmr.msra.gmra.mxu0 %v8722_v43 }
 0x1fb   :  { %5009 = vmatpush.bf16.msrb.mxu0 %v6517_v28  ;;  %v6588_v28 = vld [vmem:[#allocation8 + $0x140] sm:$0xf]  ;;  %4973 = vmatpush.bf16.msra.mxu2 %v7449_v30  ;;  %v8108_v30 = vld [vmem:[#allocation8 + $0x7b4] sm:$0xf] }
 0x1fc   :  { %5028 = vmatpush.bf16.msrb.mxu1 %v6613_v37  ;;  %v6589_v15 = vor.u32 %v7903_v62, %v6588_v28  ;;  %v7437_v37 = vor.u32 %v8114_v29, %v7434_v35  ;;  %v6444_v28 = vld [vmem:[#allocation8 + $0x20] sm:$0xf]  ;;  %v7867_v62 = vld [vmem:[#allocation8 + $0x28] sm:$0xf0]  ;;  %v6552_v29 = vld [vmem:[#allocation8 + $0xf8] sm:$0xf] }
 0x1fd   :  { %v6445_v35 = vor.u32 %v7867_v62, %v6444_v28 }
 0x1fe   :  { %4991 = vmatpush.bf16.msra.mxu3 %v7557_v0  ;;  %4832 = vmatmul.bf16.gmra.mxu2 %v8533_v23  ;;  %v6553_v0 = vor.u32 %v7894_v51, %v6552_v29  ;;  %v6888_v29 = vld [vmem:[#allocation8 + $0x398] sm:$0xf]  ;;  %v7978_v51 = vld [vmem:[#allocation8 + $0x3a0] sm:$0xf0] }
 0x1ff   :  { %5010 = vmatpush.bf16.msrb.mxu0 %v6505_v16  ;;  %v6576_v16 = vld [vmem:[#allocation8 + $0x128] sm:$0xf]  ;;  %4974 = vmatpush.bf16.msra.mxu2 %v7437_v37  ;;  %v8135_v37 = vld [vmem:[#allocation8 + $0x88c] sm:$0xf] }
 0x200   :  { %5029 = vmatpush.bf16.msrb.mxu1 %v6601_v20  ;;  %v6577_v41 = vor.u32 %v7900_v49, %v6576_v16  ;;  %v7422_v20 = vld [vmem:[#allocation8 + $0x7d4] sm:$0xf0]  ;;  %v8105_v49 = vld [vmem:[#allocation8 + $0x79c] sm:$0xf] }
 0x201   :  { %v7425_v31 = vor.u32 %v8111_v54, %v7422_v20  ;;  %4889 = vmatmul.bf16.gmra.mxu1 %v8606_v34  ;;  %v7518_v16 = vld [vmem:[#allocation8 + $0x894] sm:$0xf0]  ;;  %v8830_v54 = vpop.f32.mrf.mxu1  ;;  %v6540_v20 = vld [vmem:[#allocation8 + $0xe0] sm:$0xf] }
 0x202   :  { %4992 = vmatpush.bf16.msra.mxu3 %v7545_v9  ;;  %v7521_v45 = vor.u32 %v8135_v37, %v7518_v16  ;;  %v7401_v9 = vor.u32 %v8105_v49, %v7398_v1  ;;  %v8129_v16 = vld [vmem:[#allocation8 + $0x85c] sm:$0xf]  ;;  %v6876_v1 = vld [vmem:[#allocation8 + $0x380] sm:$0xf] }
 0x203   :  { %5011 = vmatpush.bf16.msrb.mxu0 %v6493_v3  ;;  %v8824_v3 = vpop.f32.mrf.mxu0  ;;  %4975 = vmatpush.bf16.msra.mxu2 %v7425_v31  ;;  %v7891_v31 = vld [vmem:[#allocation8 + $0xe8] sm:$0xf0] }
 0x204   :  { %5030 = vmatpush.bf16.msrb.mxu1 %v6589_v15  ;;  %v7533_v15 = vor.u32 %v8138_v22, %v7530_v4  ;;  %v6541_v10 = vor.u32 %v7891_v31, %v6540_v20  ;;  %v8005_v20 = vld [vmem:[#allocation8 + $0x478] sm:$0xf0]  ;;  %v7975_v31 = vld [vmem:[#allocation8 + $0x388] sm:$0xf0] }
 0x206   :  { %4993 = vmatpush.bf16.msra.mxu3 %v7533_v15  ;;  %v6528_v15 = vld [vmem:[#allocation8 + $0xc8] sm:$0xf] }
 0x207   :  { %5012 = vmatpush.bf16.msrb.mxu0 %v6481_v21  ;;  %v7410_v21 = vld [vmem:[#allocation8 + $0x7bc] sm:$0xf0] }
 0x208   :  { %5031 = vmatpush.bf16.msrb.mxu1 %v6577_v41  ;;  %v7413_v63 = vor.u32 %v8108_v30, %v7410_v21  ;;  %v7864_v41 = vld [vmem:[#allocation8 + $0x10] sm:$0xf0]  ;;  %v7386_v30 = vld [vmem:[#allocation8 + $0x78c] sm:$0xf0] }
 0x209   :  { %4851 = vmatmul.bf16.gmra.mxu3 %v8542_v27  ;;  %v6433_v22 = vor.u32 %v7864_v41, %v6432_v40  ;;  %v7888_v21 = vld [vmem:[#allocation8 + $0xd0] sm:$0xf0]  ;;  %v6708_v40 = vld [vmem:[#allocation8 + $0x230] sm:$0xf]  ;;  %v7933_v41 = vld [vmem:[#allocation8 + $0x238] sm:$0xf0] }
 0x20a   :  { %4976 = vmatpush.bf16.msra.mxu2 %v7413_v63  ;;  %4994 = vmatpush.bf16.msra.mxu3 %v7521_v45  ;;  %v8835_v63 = vpop.f32.mrf.mxu3  ;;  %v6529_v37 = vor.u32 %v7888_v21, %v6528_v15  ;;  %v6889_v45 = vor.u32 %v7978_v51, %v6888_v29  ;;  %v6984_v15 = vld [vmem:[#allocation8 + $0x458] sm:$0xf]  ;;  %v8002_v21 = vld [vmem:[#allocation8 + $0x460] sm:$0xf0]  ;;  %v6864_v29 = vld [vmem:[#allocation8 + $0x368] sm:$0xf] }
 0x20b   :  { %5013 = vmatpush.bf16.msrb.mxu0 %v6469_v11  ;;  %v6900_v11 = vld [vmem:[#allocation8 + $0x3b0] sm:$0xf]  ;;  %v8833_v42 = vpop.f32.mrf.mxu0  ;;  %v7972_v51 = vld [vmem:[#allocation8 + $0x370] sm:$0xf0]  ;;  %v8050_v27 = vld [vmem:[#allocation8 + $0x5e0] sm:$0xf0] }
 0x20c   :  { %5032 = vmatpush.bf16.msrb.mxu1 %v6565_v55  ;;  %v7506_v55 = vld [vmem:[#allocation8 + $0x87c] sm:$0xf0]  ;;  %v6901_v28 = vor.u32 %v7981_v44, %v6900_v11  ;;  %v6709_v44 = vor.u32 %v7933_v41, %v6708_v40  ;;  %4946 = vmatmul.bf16.gmra.mxu0 %v8746_v56  ;;  %v7957_v40 = vld [vmem:[#allocation8 + $0x2f8] sm:$0xf0]  ;;  %v6852_v41 = vld [vmem:[#allocation8 + $0x350] sm:$0xf] }
 0x20d   :  { %v7509_v4 = vor.u32 %v8132_v46, %v7506_v55  ;;  %v8126_v46 = vld [vmem:[#allocation8 + $0x844] sm:$0xf]  ;;  %v7482_v55 = vld [vmem:[#allocation8 + $0x84c] sm:$0xf0]  ;;  %v6624_v56 = vld [vmem:[#allocation8 + $0x188] sm:$0xf] }
 0x20e   :  { %4977 = vmatpush.bf16.msra.mxu2 %v7401_v9  ;;  %v6996_v9 = vld [vmem:[#allocation8 + $0x470] sm:$0xf] }
 0x20f   :  { %5014 = vmatpush.bf16.msrb.mxu0 %v6457_v32  ;;  %v8102_v32 = vld [vmem:[#allocation8 + $0x784] sm:$0xf]  ;;  %4995 = vmatpush.bf16.msra.mxu3 %v7509_v4  ;;  %v6696_v4 = vld [vmem:[#allocation8 + $0x218] sm:$0xf] }
 0x210   :  { %5033 = vmatpush.bf16.msrb.mxu1 %v6553_v0  ;;  %v7389_v62 = vor.u32 %v8102_v32, %v7386_v30  ;;  %v8837_v0 = vpop.f32.mrf.mxu2  ;;  %4903 = vmatmul.bf16.vlgmr.msrb.gmra.mxu2 %v8659_v36  ;;  %v8843_v32 = vpop.f32.mrf.mxu1  ;;  %v7930_v30 = vld [vmem:[#allocation8 + $0x220] sm:$0xf0] }
 0x211   :  { %4960 = vmatmul.bf16.vlgmr.msra.gmra.mxu1 %v8739_v52  ;;  %v7272_v52 = vld [vmem:[#allocation8 + $0x698] sm:$0xf] }
 0x212   :  { %4978 = vmatpush.bf16.msra.mxu2 %v7389_v62  ;;  %v6877_v62 = vor.u32 %v7975_v31, %v6876_v1  ;;  %v6865_v1 = vor.u32 %v7972_v51, %v6864_v29  ;;  %v7969_v31 = vld [vmem:[#allocation8 + $0x358] sm:$0xf0]  ;;  %v7996_v29 = vld [vmem:[#allocation8 + $0x430] sm:$0xf0]  ;;  %v6840_v51 = vld [vmem:[#allocation8 + $0x338] sm:$0xf] }
 0x213   :  { %5015 = vmatpush.bf16.msrb.mxu0 %v6445_v35  ;;  %v7494_v35 = vld [vmem:[#allocation8 + $0x864] sm:$0xf0]  ;;  %v8840_v11 = vpop.f32.mrf.mxu0 }
 0x214   :  { %5034 = vmatpush.bf16.msrb.mxu1 %v6541_v10  ;;  %v7497_v49 = vor.u32 %v8129_v16, %v7494_v35  ;;  %v6997_v10 = vor.u32 %v8005_v20, %v6996_v9  ;;  %v6985_v16 = vor.u32 %v8002_v21, %v6984_v15  ;;  %v6804_v35 = vld [vmem:[#allocation8 + $0x2f0] sm:$0xf]  ;;  %v7927_v9 = vld [vmem:[#allocation8 + $0x208] sm:$0xf0]  ;;  %v7924_v21 = vld [vmem:[#allocation8 + $0x1f0] sm:$0xf0] }
 0x216   :  { %4996 = vmatpush.bf16.msra.mxu3 %v7497_v49  ;;  %5047 = vmatpush.bf16.msrb.mxu2 %v6709_v44  ;;  %v8846_v49 = vpop.f32.mrf.mxu3  ;;  %v6805_v44 = vor.u32 %v7957_v40, %v6804_v35  ;;  %v6853_v40 = vor.u32 %v7969_v31, %v6852_v41  ;;  %v6828_v41 = vld [vmem:[#allocation8 + $0x320] sm:$0xf] }
 0x217   :  { %5016 = vmatpush.bf16.msrb.mxu0 %v6433_v22  ;;  %v7485_v22 = vor.u32 %v8126_v46, %v7482_v55  ;;  %v6972_v46 = vld [vmem:[#allocation8 + $0x440] sm:$0xf]  ;;  %v7999_v55 = vld [vmem:[#allocation8 + $0x448] sm:$0xf0] }
 0x218   :  { %5035 = vmatpush.bf16.msrb.mxu1 %v6529_v37  ;;  %v6684_v37 = vld [vmem:[#allocation8 + $0x200] sm:$0xf]  ;;  %v8848_v20 = vpop.f32.mrf.mxu2  ;;  %v8853_v35 = vpop.f32.mrf.mxu1 }
 0x219   :  { %4922 = vmatmul.bf16.vlgmr.msrb.gmra.mxu3 %v8661_v61 }
 0x21a   :  { %4997 = vmatpush.bf16.msra.mxu3 %v7485_v22  ;;  %v6973_v22 = vor.u32 %v7999_v55, %v6972_v46  ;;  %v7951_v46 = vld [vmem:[#allocation8 + $0x2c8] sm:$0xf0]  ;;  %v6660_v55 = vld [vmem:[#allocation8 + $0x1d0] sm:$0xf] }
 0x21b   :  { %5085 = vmatpush.bf16.msra.mxu0 %v6901_v28  ;;  %v6697_v28 = vor.u32 %v7930_v30, %v6696_v4  ;;  %v6792_v4 = vld [vmem:[#allocation8 + $0x2d8] sm:$0xf]  ;;  %v7954_v30 = vld [vmem:[#allocation8 + $0x2e0] sm:$0xf0] }
 0x21c   :  { %5104 = vmatpush.bf16.msra.mxu1 %v6997_v10  ;;  %v6685_v10 = vor.u32 %v7927_v9, %v6684_v37  ;;  %v6793_v15 = vor.u32 %v7954_v30, %v6792_v4  ;;  %v7966_v37 = vld [vmem:[#allocation8 + $0x340] sm:$0xf0]  ;;  %v6948_v30 = vld [vmem:[#allocation8 + $0x410] sm:$0xf]  ;;  %5017 = vmatmul.bf16.vlgmr.msrb.gmra.mxu0 %v8438_v18 }
 0x21d   :  { %5048 = vmatpush.bf16.msrb.mxu2 %v6697_v28  ;;  %v6672_v28 = vld [vmem:[#allocation8 + $0x1e8] sm:$0xf] }
 0x21e   :  { %5066 = vmatpush.bf16.msrb.mxu3 %v6805_v44  ;;  %v6780_v44 = vld [vmem:[#allocation8 + $0x2c0] sm:$0xf] }
 0x21f   :  { %5086 = vmatpush.bf16.msra.mxu0 %v6889_v45  ;;  %v8851_v45 = vpop.f32.mrf.mxu0 }
 0x220   :  { %5105 = vmatpush.bf16.msra.mxu1 %v6985_v16  ;;  %v6673_v16 = vor.u32 %v7924_v21, %v6672_v28  ;;  %4908 = vmatmul.bf16.gmra.mxu2 %v8699_v38  ;;  %v7993_v28 = vld [vmem:[#allocation8 + $0x418] sm:$0xf0]  ;;  %v8858_v21 = vpop.f32.mrf.mxu3  ;;  %v7960_v38 = vld [vmem:[#allocation8 + $0x310] sm:$0xf0]  ;;  %v8864_v61 = vpop.f32.mrf.mxu1 }
 0x221   :  { %5049 = vmatpush.bf16.msrb.mxu2 %v6685_v10  ;;  %v6781_v10 = vor.u32 %v7951_v46, %v6780_v44  ;;  %4965 = vmatmul.bf16.gmra.mxu1 %v8764_v14  ;;  %v6648_v46 = vld [vmem:[#allocation8 + $0x1b8] sm:$0xf]  ;;  %v7990_v14 = vld [vmem:[#allocation8 + $0x400] sm:$0xf0] }
 0x222   :  { %5067 = vmatpush.bf16.msrb.mxu3 %v6793_v15  ;;  %v7963_v15 = vld [vmem:[#allocation8 + $0x328] sm:$0xf0] }
 0x223   :  { %5087 = vmatpush.bf16.msra.mxu0 %v6877_v62  ;;  %v6960_v62 = vld [vmem:[#allocation8 + $0x428] sm:$0xf] }
 0x224   :  { %5106 = vmatpush.bf16.msra.mxu1 %v6973_v22  ;;  %v6961_v9 = vor.u32 %v7996_v29, %v6960_v62  ;;  %v7921_v22 = vld [vmem:[#allocation8 + $0x1d8] sm:$0xf0]  ;;  %v6768_v62 = vld [vmem:[#allocation8 + $0x2a8] sm:$0xf]  ;;  %v7948_v29 = vld [vmem:[#allocation8 + $0x2b0] sm:$0xf0] }
 0x225   :  { %5050 = vmatpush.bf16.msrb.mxu2 %v6673_v16  ;;  %v6661_v31 = vor.u32 %v7921_v22, %v6660_v55  ;;  %v6949_v16 = vor.u32 %v7993_v28, %v6948_v30  ;;  %v6769_v44 = vor.u32 %v7948_v29, %v6768_v62  ;;  %v6816_v55 = vld [vmem:[#allocation8 + $0x308] sm:$0xf]  ;;  %v6936_v22 = vld [vmem:[#allocation8 + $0x3f8] sm:$0xf]  ;;  %v8077_v30 = vld [vmem:[#allocation8 + $0x6b8] sm:$0xf0] }
 0x226   :  { %5068 = vmatpush.bf16.msrb.mxu3 %v6781_v10  ;;  %v7284_v10 = vld [vmem:[#allocation8 + $0x6b0] sm:$0xf]  ;;  %v6937_v28 = vor.u32 %v7990_v14, %v6936_v22  ;;  %v7945_v62 = vld [vmem:[#allocation8 + $0x298] sm:$0xf0]  ;;  %v6636_v29 = vld [vmem:[#allocation8 + $0x1a0] sm:$0xf] }
 0x227   :  { %5088 = vmatpush.bf16.msra.mxu0 %v6865_v1  ;;  %v8856_v4 = vpop.f32.mrf.mxu0  ;;  %v6841_v1 = vor.u32 %v7966_v37, %v6840_v51  ;;  %v6829_v37 = vor.u32 %v7963_v15, %v6828_v41  ;;  %v6817_v41 = vor.u32 %v7960_v38, %v6816_v55  ;;  %v6744_v22 = vld [vmem:[#allocation8 + $0x278] sm:$0xf]  ;;  %v6912_v38 = vld [vmem:[#allocation8 + $0x3c8] sm:$0xf]  ;;  %v7984_v55 = vld [vmem:[#allocation8 + $0x3d0] sm:$0xf0] }
 0x228   :  { %5107 = vmatpush.bf16.msra.mxu1 %v6961_v9  ;;  %v8861_v9 = vpop.f32.mrf.mxu2  ;;  %v8869_v36 = vpop.f32.mrf.mxu3 }
 0x229   :  { %5051 = vmatpush.bf16.msrb.mxu2 %v6661_v31  ;;  %v6756_v31 = vld [vmem:[#allocation8 + $0x290] sm:$0xf]  ;;  %4927 = vmatmul.bf16.gmra.mxu3 %v8701_v6 }
 0x22a   :  { %5069 = vmatpush.bf16.msrb.mxu3 %v6769_v44  ;;  %v6757_v18 = vor.u32 %v7945_v62, %v6756_v31  ;;  %v6924_v44 = vld [vmem:[#allocation8 + $0x3e0] sm:$0xf]  ;;  %v7912_v62 = vld [vmem:[#allocation8 + $0x190] sm:$0xf0] }
 0x22b   :  { %5089 = vmatpush.bf16.msra.mxu0 %v6853_v40  ;;  %v7918_v40 = vld [vmem:[#allocation8 + $0x1c0] sm:$0xf0]  ;;  %v6625_v6 = vor.u32 %v7912_v62, %v6624_v56  ;;  %v6720_v62 = vld [vmem:[#allocation8 + $0x248] sm:$0xf] }
 0x22c   :  { %5108 = vmatpush.bf16.msra.mxu1 %v6949_v16  ;;  %v6649_v51 = vor.u32 %v7918_v40, %v6648_v46  ;;  %v7915_v16 = vld [vmem:[#allocation8 + $0x1a8] sm:$0xf0]  ;;  %v7285_v40 = vor.u32 %v8077_v30, %v7284_v10  ;;  %v7260_v30 = vld [vmem:[#allocation8 + $0x680] sm:$0xf]  ;;  %5022 = vmatmul.bf16.gmra.mxu0 %v8461_v33  ;;  %v7188_v33 = vld [vmem:[#allocation8 + $0x5f0] sm:$0xf] }
 0x22d   :  { %v6637_v15 = vor.u32 %v7915_v16, %v6636_v29  ;;  %v7987_v46 = vld [vmem:[#allocation8 + $0x3e8] sm:$0xf0]  ;;  %v8873_v16 = vpop.f32.mrf.mxu1 }
 0x22e   :  { %5052 = vmatpush.bf16.msrb.mxu2 %v6649_v51  ;;  %5070 = vmatpush.bf16.msrb.mxu3 %v6757_v18  ;;  %v6925_v14 = vor.u32 %v7987_v46, %v6924_v44  ;;  %v7942_v51 = vld [vmem:[#allocation8 + $0x280] sm:$0xf0]  ;;  %v8071_v29 = vld [vmem:[#allocation8 + $0x688] sm:$0xf0]  ;;  %v6913_v18 = vor.u32 %v7984_v55, %v6912_v38  ;;  %v7092_v46 = vld [vmem:[#allocation8 + $0x530] sm:$0xf] }
 0x22f   :  { %5090 = vmatpush.bf16.msra.mxu0 %v6841_v1  ;;  %v8867_v1 = vpop.f32.mrf.mxu0  ;;  %v6745_v31 = vor.u32 %v7942_v51, %v6744_v22  ;;  %v7939_v44 = vld [vmem:[#allocation8 + $0x268] sm:$0xf0]  ;;  %v7380_v22 = vld [vmem:[#allocation8 + $0x770] sm:$0xf]  ;;  %v8101_v51 = vld [vmem:[#allocation8 + $0x778] sm:$0xf0] }
 0x230   :  { %5109 = vmatpush.bf16.msra.mxu1 %v6937_v28  ;;  %v8074_v28 = vld [vmem:[#allocation8 + $0x6a0] sm:$0xf0]  ;;  %4979 = vmatmul.bf16.vlgmr.msra.gmra.mxu2 %v8778_v12  ;;  %v7936_v38 = vld [vmem:[#allocation8 + $0x250] sm:$0xf0]  ;;  %v7080_v55 = vld [vmem:[#allocation8 + $0x518] sm:$0xf] }
 0x231   :  { %v7273_v10 = vor.u32 %v8074_v28, %v7272_v52  ;;  %5036 = vmatmul.bf16.vlgmr.msrb.gmra.mxu1 %v8476_v26  ;;  %v7261_v52 = vor.u32 %v8071_v29, %v7260_v30  ;;  %v7248_v28 = vld [vmem:[#allocation8 + $0x668] sm:$0xf]  ;;  %v8880_v12 = vld [vmem:[#allocation10] sm:$0x7]  ;;  %v8882_v26 = vpop.f32.mrf.mxu3  ;;  %v7236_v30 = vld [vmem:[#allocation8 + $0x650] sm:$0xf] }
 0x232   :  { %5053 = vmatpush.bf16.msrb.mxu2 %v6637_v15  ;;  %5071 = vmatpush.bf16.msrb.mxu3 %v6745_v31  ;;  %v6732_v15 = vld [vmem:[#allocation8 + $0x260] sm:$0xf]  ;;  %v8068_v31 = vld [vmem:[#allocation8 + $0x670] sm:$0xf0]  ;;  %9041 = vst [vmem:[#allocation28_spill] sm:$0xff] %v8880_v12 }
 0x233   :  { %5091 = vmatpush.bf16.msra.mxu0 %v6829_v37  ;;  %v8871_v37 = vpop.f32.mrf.mxu2  ;;  %v6733_v56 = vor.u32 %v7939_v44, %v6732_v15  ;;  %v8026_v15 = vld [vmem:[#allocation8 + $0x520] sm:$0xf0]  ;;  %v8065_v29 = vld [vmem:[#allocation8 + $0x658] sm:$0xf0] }
 0x234   :  { %5110 = vmatpush.bf16.msra.mxu1 %v6925_v14  ;;  %v8029_v14 = vld [vmem:[#allocation8 + $0x538] sm:$0xf0]  ;;  %v7081_v44 = vor.u32 %v8026_v15, %v7080_v55  ;;  %v7237_v15 = vor.u32 %v8065_v29, %v7236_v30  ;;  %v8059_v30 = vld [vmem:[#allocation8 + $0x628] sm:$0xf0] }
 0x236   :  { %5054 = vmatpush.bf16.msrb.mxu2 %v6625_v6  ;;  %v7381_v6 = vor.u32 %v8101_v51, %v7380_v22  ;;  %5072 = vmatpush.bf16.msrb.mxu3 %v6733_v56  ;;  %v8886_v22 = vpop.f32.mrf.mxu1  ;;  %v8053_v51 = vld [vmem:[#allocation8 + $0x5f8] sm:$0xf0] }
 0x237   :  { %5092 = vmatpush.bf16.msra.mxu0 %v6817_v41  ;;  %v7093_v41 = vor.u32 %v8029_v14, %v7092_v46  ;;  %v7368_v46 = vld [vmem:[#allocation8 + $0x758] sm:$0xf]  ;;  %v8098_v14 = vld [vmem:[#allocation8 + $0x760] sm:$0xf0] }
 0x238   :  { %5111 = vmatpush.bf16.msra.mxu1 %v6913_v18  ;;  %v6721_v18 = vor.u32 %v7936_v38, %v6720_v62  ;;  %v7369_v56 = vor.u32 %v8098_v14, %v7368_v46  ;;  %v7189_v62 = vor.u32 %v8053_v51, %v7188_v33  ;;  %v8023_v38 = vld [vmem:[#allocation8 + $0x508] sm:$0xf0]  ;;  %v7224_v46 = vld [vmem:[#allocation8 + $0x638] sm:$0xf] }
 0x239   :  { %4998 = vmatmul.bf16.vlgmr.msra.gmra.mxu3 %v8789_v19  ;;  %v7176_v14 = vld [vmem:[#allocation8 + $0x5d8] sm:$0xf]  ;;  %v7344_v19 = vld [vmem:[#allocation8 + $0x728] sm:$0xf] }
 0x23a   :  { %5123 = vmatpush.bf16.msra.mxu2 %v7093_v41  ;;  %5073 = vmatpush.bf16.msrb.mxu3 %v6721_v18  ;;  %v8062_v18 = vld [vmem:[#allocation8 + $0x640] sm:$0xf0]  ;;  %v7177_v51 = vor.u32 %v8050_v27, %v7176_v14  ;;  %v8898_v27 = vpop.f32.mrf.mxu3 }
 0x23b   :  { %5161 = vmatpush.bf16.msrb.mxu0 %v7285_v40  ;;  %v8876_v40 = vpop.f32.mrf.mxu0  ;;  %v8884_v41 = vpop.f32.mrf.mxu2 }
 0x23c   :  { %9040 = vst [vmem:[#allocation27_spill] sm:$0xff] %v8876_v40  ;;  %5180 = vmatpush.bf16.msrb.mxu1 %v7381_v6  ;;  %v7068_v6 = vld [vmem:[#allocation8 + $0x500] sm:$0xf]  ;;  %v8092_v40 = vld [vmem:[#allocation8 + $0x730] sm:$0xf0]  ;;  %5093 = vmatmul.bf16.vlgmr.msra.gmra.mxu0 %v8555_v24 }
 0x23d   :  { %v7069_v55 = vor.u32 %v8023_v38, %v7068_v6  ;;  %v8020_v6 = vld [vmem:[#allocation8 + $0x4f0] sm:$0xf0]  ;;  %v7345_v29 = vor.u32 %v8092_v40, %v7344_v19  ;;  %v7332_v19 = vld [vmem:[#allocation8 + $0x710] sm:$0xf]  ;;  %v8089_v40 = vld [vmem:[#allocation8 + $0x718] sm:$0xf0] }
 0x23e   :  { %5124 = vmatpush.bf16.msra.mxu2 %v7081_v44  ;;  %5142 = vmatpush.bf16.msra.mxu3 %v7189_v62  ;;  %v7140_v24 = vld [vmem:[#allocation8 + $0x590] sm:$0xf] }
 0x23f   :  { %5162 = vmatpush.bf16.msrb.mxu0 %v7273_v10  ;;  %v7249_v10 = vor.u32 %v8068_v31, %v7248_v28  ;;  %v8095_v28 = vld [vmem:[#allocation8 + $0x748] sm:$0xf0]  ;;  %v8890_v31 = vperm.slane %v8880_v12, 0  ;;  %v7225_v12 = vor.u32 %v8062_v18, %v7224_v46  ;;  %v8017_v46 = vld [vmem:[#allocation8 + $0x4d8] sm:$0xf0] }
 0x240   :  { %5181 = vmatpush.bf16.msrb.mxu1 %v7369_v56  ;;  %v7056_v56 = vld [vmem:[#allocation8 + $0x4e8] sm:$0xf]  ;;  %4984 = vmatmul.bf16.gmra.mxu2 %v8794_v47 }
 0x241   :  { %v7057_v38 = vor.u32 %v8020_v6, %v7056_v56  ;;  %v4563_v62 = vadd.f32 %v8798_v17, %v8890_v31  ;;  %5041 = vmatmul.bf16.gmra.mxu1 %v8493_v59  ;;  %v7200_v56 = vld [vmem:[#allocation8 + $0x608] sm:$0xf]  ;;  %v7333_v6 = vor.u32 %v8089_v40, %v7332_v19  ;;  %v8011_v40 = vld [vmem:[#allocation8 + $0x4a8] sm:$0xf0] }
 0x242   :  { %5125 = vmatpush.bf16.msra.mxu2 %v7069_v55  ;;  %5143 = vmatpush.bf16.msra.mxu3 %v7177_v51  ;;  %v8896_v55 = vpop.f32.mrf.mxu1  ;;  %v8056_v51 = vld [vmem:[#allocation8 + $0x610] sm:$0xf0]  ;;  %v7152_v47 = vld [vmem:[#allocation8 + $0x5a8] sm:$0xf] }
 0x243   :  { %5163 = vmatpush.bf16.msrb.mxu0 %v7261_v52  ;;  %v7356_v52 = vld [vmem:[#allocation8 + $0x740] sm:$0xf]  ;;  %v8892_v33 = vpop.f32.mrf.mxu0  ;;  %v8901_v18 = vpop.f32.mrf.mxu2  ;;  %v7201_v19 = vor.u32 %v8056_v51, %v7200_v56  ;;  %v8083_v51 = vld [vmem:[#allocation8 + $0x6e8] sm:$0xf0] }
 0x244   :  { %v7357_v44 = vor.u32 %v8095_v28, %v7356_v52  ;;  %v7164_v52 = vld [vmem:[#allocation8 + $0x5c0] sm:$0xf]  ;;  %v8047_v28 = vld [vmem:[#allocation8 + $0x5c8] sm:$0xf0] }
 0x245   :  { %v7308_v56 = vld [vmem:[#allocation8 + $0x6e0] sm:$0xf] }
 0x246   :  { %5182 = vmatpush.bf16.msrb.mxu1 %v7357_v44  ;;  %5126 = vmatpush.bf16.msra.mxu2 %v7057_v38  ;;  %v7044_v44 = vld [vmem:[#allocation8 + $0x4d0] sm:$0xf]  ;;  %v4582_v38 = vadd.f32 %v8800_v2, %v4563_v62  ;;  %v4565_v62 = vadd.f32 %v8807_v39, %v8890_v31  ;;  %v7309_v39 = vor.u32 %v8083_v51, %v7308_v56 }
 0x247   :  { %5164 = vmatpush.bf16.msrb.mxu0 %v7249_v10  ;;  %v7212_v10 = vld [vmem:[#allocation8 + $0x620] sm:$0xf]  ;;  %v7045_v14 = vor.u32 %v8017_v46, %v7044_v44  ;;  %v8014_v44 = vld [vmem:[#allocation8 + $0x4c0] sm:$0xf0] }
 0x248   :  { %v7213_v17 = vor.u32 %v8059_v30, %v7212_v10  ;;  %v4601_v46 = vadd.f32 %v8828_v13, %v4582_v38  ;;  %v8086_v10 = vld [vmem:[#allocation8 + $0x700] sm:$0xf0]  ;;  %v8915_v38 = vpop.f32.mrf.mxu3 }
 0x249   :  { %5003 = vmatmul.bf16.gmra.mxu3 %v8804_v5 }
 0x24a   :  { %5183 = vmatpush.bf16.msrb.mxu1 %v7345_v29  ;;  %5127 = vmatpush.bf16.msra.mxu2 %v7045_v14  ;;  %v8044_v29 = vld [vmem:[#allocation8 + $0x5b0] sm:$0xf0]  ;;  %v7020_v14 = vld [vmem:[#allocation8 + $0x4a0] sm:$0xf] }
 0x24b   :  { %5165 = vmatpush.bf16.msrb.mxu0 %v7237_v15  ;;  %v7165_v15 = vor.u32 %v8047_v28, %v7164_v52  ;;  %v7032_v52 = vld [vmem:[#allocation8 + $0x4b8] sm:$0xf]  ;;  %v7153_v28 = vor.u32 %v8044_v29, %v7152_v47  ;;  %v8907_v30 = vpop.f32.mrf.mxu0  ;;  %v8041_v47 = vld [vmem:[#allocation8 + $0x598] sm:$0xf0]  ;;  %v4584_v29 = vadd.f32 %v8809_v25, %v4565_v62  ;;  %v4568_v25 = vadd.f32 %v8812_v7, %v8890_v31 }
 0x24c   :  { %v7033_v59 = vor.u32 %v8014_v44, %v7032_v52  ;;  %v7141_v13 = vor.u32 %v8041_v47, %v7140_v24  ;;  %v7128_v44 = vld [vmem:[#allocation8 + $0x578] sm:$0xf]  ;;  %v7296_v24 = vld [vmem:[#allocation8 + $0x6c8] sm:$0xf]  ;;  %5098 = vmatmul.bf16.gmra.mxu0 %v8576_v48  ;;  %v8149_v48 = vld [vmem:[#allocation8 + $0x8f8] sm:$0xf0] }
 0x24d   :  { %5144 = vmatpush.bf16.msra.mxu3 %v7165_v15  ;;  %v8911_v15 = vpop.f32.mrf.mxu1 }
 0x24e   :  { %5184 = vmatpush.bf16.msrb.mxu1 %v7333_v6  ;;  %5128 = vmatpush.bf16.msra.mxu2 %v7033_v59  ;;  %v4620_v6 = vadd.f32 %v8835_v63, %v4601_v46  ;;  %v8038_v59 = vld [vmem:[#allocation8 + $0x580] sm:$0xf0]  ;;  %v7008_v63 = vld [vmem:[#allocation8 + $0x488] sm:$0xf] }
 0x24f   :  { %5166 = vmatpush.bf16.msrb.mxu0 %v7225_v12  ;;  %v7320_v12 = vld [vmem:[#allocation8 + $0x6f8] sm:$0xf]  ;;  %v7129_v46 = vor.u32 %v8038_v59, %v7128_v44  ;;  %v8032_v44 = vld [vmem:[#allocation8 + $0x550] sm:$0xf0] }
 0x250   :  { %v7321_v2 = vor.u32 %v8086_v10, %v7320_v12  ;;  %v4639_v52 = vadd.f32 %v8824_v3, %v4620_v6  ;;  %v8008_v12 = vld [vmem:[#allocation8 + $0x490] sm:$0xf0]  ;;  %v4603_v10 = vadd.f32 %v8837_v0, %v4584_v29  ;;  %5055 = vmatmul.bf16.vlgmr.msrb.gmra.mxu2 %v8510_v57  ;;  %v7464_v57 = vld [vmem:[#allocation8 + $0x818] sm:$0xf]  ;;  %v8935_v59 = vpop.f32.mrf.mxu3 }
 0x251   :  { %5145 = vmatpush.bf16.msra.mxu3 %v7153_v28  ;;  %v8919_v28 = vpop.f32.mrf.mxu2  ;;  %5112 = vmatmul.bf16.vlgmr.msra.gmra.mxu1 %v8584_v58 }
 0x252   :  { %5185 = vmatpush.bf16.msrb.mxu1 %v7321_v2  ;;  %v7009_v2 = vor.u32 %v8008_v12, %v7008_v63  ;;  %v4658_v3 = vadd.f32 %v8830_v54, %v4639_v52  ;;  %v4622_v56 = vadd.f32 %v8846_v49, %v4603_v10  ;;  %v4587_v54 = vadd.f32 %v8816_v50, %v4568_v25  ;;  %v7104_v52 = vld [vmem:[#allocation8 + $0x548] sm:$0xf]  ;;  %v8122_v63 = vld [vmem:[#allocation8 + $0x820] sm:$0xf0] }
 0x253   :  { %5167 = vmatpush.bf16.msrb.mxu0 %v7213_v17  ;;  %v7021_v17 = vor.u32 %v8011_v40, %v7020_v14  ;;  %v7116_v14 = vld [vmem:[#allocation8 + $0x560] sm:$0xf]  ;;  %v7476_v40 = vld [vmem:[#allocation8 + $0x830] sm:$0xf]  ;;  %v8927_v6 = vpop.f32.mrf.mxu0  ;;  %v7105_v49 = vor.u32 %v8032_v44, %v7104_v52  ;;  %v4570_v50 = vadd.f32 %v8819_v60, %v8890_v31 }
 0x254   :  { %v4677_v7 = vadd.f32 %v8871_v37, %v4658_v3  ;;  %v4606_v37 = vadd.f32 %v8848_v20, %v4587_v54  ;;  %v7548_v54 = vld [vmem:[#allocation8 + $0x8c0] sm:$0xf]  ;;  %v7428_v52 = vld [vmem:[#allocation8 + $0x7d0] sm:$0xf] }
 0x255   :  { %5146 = vmatpush.bf16.msra.mxu3 %v7141_v13  ;;  %5129 = vmatpush.bf16.msra.mxu2 %v7021_v17  ;;  %v8925_v62 = vpop.f32.mrf.mxu1  ;;  %v8035_v13 = vld [vmem:[#allocation8 + $0x568] sm:$0xf0]  ;;  %v8125_v17 = vld [vmem:[#allocation8 + $0x838] sm:$0xf0] }
 0x256   :  { %5186 = vmatpush.bf16.msrb.mxu1 %v7309_v39  ;;  %v7117_v0 = vor.u32 %v8035_v13, %v7116_v14  ;;  %v7477_v51 = vor.u32 %v8125_v17, %v7476_v40  ;;  %v4641_v39 = vadd.f32 %v8833_v42, %v4622_v56  ;;  %v4696_v58 = vadd.f32 %v8882_v26, %v4677_v7  ;;  %v7560_v13 = vld [vmem:[#allocation8 + $0x8d8] sm:$0xf]  ;;  %v8146_v40 = vld [vmem:[#allocation8 + $0x8e0] sm:$0xf0]  ;;  %v8116_v17 = vld [vmem:[#allocation8 + $0x7f0] sm:$0xf0] }
 0x257   :  { %5168 = vmatpush.bf16.msrb.mxu0 %v7201_v19  ;;  %v8080_v19 = vld [vmem:[#allocation8 + $0x6d0] sm:$0xf0]  ;;  %v4625_v20 = vadd.f32 %v8858_v21, %v4606_v37  ;;  %v7440_v21 = vld [vmem:[#allocation8 + $0x7e8] sm:$0xf] }
 0x258   :  { %v7297_v47 = vor.u32 %v8080_v19, %v7296_v24  ;;  %v4660_v42 = vadd.f32 %v8843_v32, %v4641_v39  ;;  %v4715_v12 = vadd.f32 %v8856_v4, %v4696_v58  ;;  %v7452_v24 = vld [vmem:[#allocation8 + $0x800] sm:$0xf]  ;;  %v4589_v4 = vadd.f32 %v8821_v8, %v4570_v50  ;;  %v8143_v39 = vld [vmem:[#allocation8 + $0x8c8] sm:$0xf0]  ;;  %v7536_v37 = vld [vmem:[#allocation8 + $0x8a8] sm:$0xf] }
 0x259   :  { %5147 = vmatpush.bf16.msra.mxu3 %v7129_v46  ;;  %5130 = vmatpush.bf16.msra.mxu2 %v7009_v2  ;;  %v4752_v29 = vpop.f32.mrf.mxu2  ;;  %v7465_v46 = vor.u32 %v8122_v63, %v7464_v57  ;;  %v7572_v2 = vld [vmem:[#allocation8 + $0x8f0] sm:$0xf]  ;;  %v4644_v31 = vadd.f32 %v8840_v11, %v4625_v20  ;;  %v7441_v7 = vor.u32 %v8116_v17, %v7440_v21  ;;  %v7416_v58 = vld [vmem:[#allocation8 + $0x7b8] sm:$0xf]  ;;  %v7404_v20 = vld [vmem:[#allocation8 + $0x7a0] sm:$0xf] }
 0x25a   :  { %5187 = vmatpush.bf16.msrb.mxu1 %v7297_v47  ;;  %v7573_v19 = vor.u32 %v8149_v48, %v7572_v2  ;;  %v8119_v47 = vld [vmem:[#allocation8 + $0x808] sm:$0xf0]  ;;  %v4679_v26 = vadd.f32 %v8884_v41, %v4660_v42  ;;  %v4734_v25 = vadd.f32 %v8873_v16, %v4715_v12  ;;  %5074 = vmatmul.bf16.vlgmr.msrb.gmra.mxu3 %v8522_v53  ;;  %v9042_v12 = vld [vmem:[#allocation27_spill] sm:$0xff]  ;;  %v8104_v21 = vld [vmem:[#allocation8 + $0x790] sm:$0xf0] }
 0x25b   :  { %v7453_v60 = vor.u32 %v8119_v47, %v7452_v24  ;;  %v8950_v32 = vpop.f32.mrf.mxu0  ;;  %v7561_v41 = vor.u32 %v8146_v40, %v7560_v13  ;;  %v4608_v16 = vadd.f32 %v8861_v9, %v4589_v4  ;;  %v4663_v8 = vadd.f32 %v8853_v35, %v4644_v31  ;;  %v8113_v9 = vld [vmem:[#allocation8 + $0x7d8] sm:$0xf0]  ;;  %v7524_v24 = vld [vmem:[#allocation8 + $0x890] sm:$0xf]  ;;  %v7512_v31 = vld [vmem:[#allocation8 + $0x878] sm:$0xf] }
 0x25c   :  { %v4753_v3 = vadd.f32 %v4752_v29, %v4734_v25  ;;  %v4698_v53 = vadd.f32 %v8898_v27, %v4679_v26  ;;  %v7549_v29 = vor.u32 %v8143_v39, %v7548_v54  ;;  %v7429_v35 = vor.u32 %v8113_v9, %v7428_v52  ;;  %5169 = vmatmul.bf16.vlgmr.msrb.gmra.mxu0 %v8722_v43  ;;  %v8107_v43 = vld [vmem:[#allocation8 + $0x7a8] sm:$0xf0]  ;;  %v9043_v25 = vld [vmem:[#allocation16_spill] sm:$0xff]  ;;  %v8128_v52 = vld [vmem:[#allocation8 + $0x850] sm:$0xf0] }
 0x25d   :  { %5148 = vmatpush.bf16.msra.mxu3 %v7117_v0  ;;  %5199 = vmatpush.bf16.msrb.mxu2 %v7477_v51  ;;  %v8944_v10 = vpop.f32.mrf.mxu1  ;;  %v4771_v0 = vpop.f32.mrf.mxu3  ;;  %v4627_v27 = vadd.f32 %v8869_v36, %v4608_v16  ;;  %v4682_v44 = vadd.f32 %v8901_v18, %v4663_v8  ;;  %v8110_v18 = vld [vmem:[#allocation8 + $0x7c0] sm:$0xf0]  ;;  %v7500_v16 = vld [vmem:[#allocation8 + $0x860] sm:$0xf]  ;;  %v9045_v54 = vld [vmem:[#allocation21_spill] sm:$0xff] }
 0x25e   :  { %v4772_v56 = vadd.f32 %v4771_v0, %v4753_v3  ;;  %v4717_v11 = vadd.f32 %v8867_v1, %v4698_v53  ;;  %v8134_v3 = vld [vmem:[#allocation8 + $0x880] sm:$0xf0]  ;;  %v8131_v53 = vld [vmem:[#allocation8 + $0x868] sm:$0xf0] }
 0x25f   :  { %v4646_v1 = vadd.f32 %v8851_v45, %v4627_v27  ;;  %v7513_v40 = vor.u32 %v8134_v3, %v7512_v31  ;;  %v9046_v27 = vld [vmem:[#allocation22_spill] sm:$0xff] }
 0x260   :  { %5237 = vst [vmem:[#allocation11] sm:$0xff] %v4772_v56  ;;  %5060 = vmatmul.bf16.gmra.mxu2 %v8533_v23  ;;  %v4736_v57 = vadd.f32 %v8886_v22, %v4717_v11  ;;  %v8140_v23 = vld [vmem:[#allocation8 + $0x8b0] sm:$0xf0]  ;;  %v4701_v22 = vadd.f32 %v8915_v38, %v4682_v44  ;;  %v9044_v56 = vld [vmem:[#allocation17_spill] sm:$0xff] }
 0x261   :  { %5149 = vmatpush.bf16.msra.mxu3 %v7105_v49  ;;  %5200 = vmatpush.bf16.msrb.mxu2 %v7465_v46  ;;  %v4754_v14 = vpop.f32.mrf.mxu2  ;;  %v7537_v36 = vor.u32 %v8140_v23, %v7536_v37  ;;  %v4665_v45 = vadd.f32 %v8864_v61, %v4646_v1  ;;  %v9049_v23 = vld [vmem:[#allocation23_spill] sm:$0xff] }
 0x262   :  { %5117 = vmatmul.bf16.gmra.mxu1 %v8606_v34  ;;  %v4755_v49 = vadd.f32 %v4754_v14, %v4736_v57  ;;  %v7417_v34 = vor.u32 %v8110_v18, %v7416_v58  ;;  %v4720_v2 = vadd.f32 %v9042_v12, %v4701_v22  ;;  %v7392_v14 = vld [vmem:[#allocation8 + $0x788] sm:$0xf] }
 0x263   :  { %v8966_v46 = vpop.f32.mrf.mxu0  ;;  %v4684_v26 = vadd.f32 %v8919_v28, %v4665_v45  ;;  %v7393_v17 = vor.u32 %v8104_v21, %v7392_v14  ;;  %v9050_v18 = vld [vmem:[#allocation20_spill] sm:$0xff] }
 0x264   :  { %v4739_v38 = vadd.f32 %v8896_v55, %v4720_v2  ;;  %v9051_v12 = vld [vmem:[#allocation24_spill] sm:$0xff] }
 0x265   :  { %5218 = vmatpush.bf16.msrb.mxu3 %v7573_v19  ;;  %5201 = vmatpush.bf16.msrb.mxu2 %v7453_v60  ;;  %v8958_v51 = vpop.f32.mrf.mxu1  ;;  %v4773_v50 = vpop.f32.mrf.mxu3  ;;  %v8137_v19 = vld [vmem:[#allocation8 + $0x898] sm:$0xf0]  ;;  %v7405_v60 = vor.u32 %v8107_v43, %v7404_v20  ;;  %v4703_v0 = vadd.f32 %v8935_v59, %v4684_v26  ;;  %v9052_v20 = vld [vmem:[#allocation25_spill] sm:$0xff]  ;;  %v9053_v43 = vld [vmem:[#allocation28_spill] sm:$0xff] }
 0x266   :  { %v4774_v42 = vadd.f32 %v4773_v50, %v4755_v49  ;;  %v7525_v47 = vor.u32 %v8137_v19, %v7524_v24  ;;  %v3012_v26 = vperm.slane %v9053_v43, 1 }
 0x267   :  { %v4722_v55 = vadd.f32 %v8892_v33, %v4703_v0 }
 0x268   :  { %5240 = vst [vmem:[#allocation11 + $0x18] sm:$0xff] %v4774_v42  ;;  %v4793_v0 = vadd.f32 %v8927_v6, %v3012_v26 }
 0x269   :  { %5219 = vmatpush.bf16.msrb.mxu3 %v7561_v41  ;;  %5202 = vmatpush.bf16.msrb.mxu2 %v7441_v7  ;;  %v4757_v63 = vpop.f32.mrf.mxu2  ;;  %v7501_v7 = vor.u32 %v8131_v53, %v7500_v16  ;;  %v4741_v8 = vadd.f32 %v8911_v15, %v4722_v55 }
 0x26a   :  { %5079 = vmatmul.bf16.gmra.mxu3 %v9043_v25  ;;  %v4758_v61 = vadd.f32 %v4757_v63, %v4739_v38  ;;  %v9048_v63 = vld [vmem:[#allocation19_spill] sm:$0xff] }
 0x26b   :  { %v4866_v28 = vpop.f32.mrf.mxu0 }
 0x26c   :  { %5174 = vmatmul.bf16.gmra.mxu0 %v9046_v27 }
 0x26d   :  { %5220 = vmatpush.bf16.msrb.mxu3 %v7549_v29  ;;  %5203 = vmatpush.bf16.msrb.mxu2 %v7429_v35  ;;  %v8972_v48 = vpop.f32.mrf.mxu1  ;;  %v4776_v13 = vpop.f32.mrf.mxu3  ;;  %v7488_v29 = vld [vmem:[#allocation8 + $0x848] sm:$0xf]  ;;  %v9047_v35 = vld [vmem:[#allocation18_spill] sm:$0xff] }
 0x26e   :  { %v4777_v41 = vadd.f32 %v4776_v13, %v4758_v61  ;;  %v7489_v33 = vor.u32 %v8128_v52, %v7488_v29 }
 0x270   :  { %5243 = vst [vmem:[#allocation11 + $0x30] sm:$0xff] %v4777_v41  ;;  %5131 = vmatmul.bf16.vlgmr.msra.gmra.mxu2 %v9044_v56  ;;  %v4812_v41 = vadd.f32 %v8944_v10, %v4793_v0 }
 0x271   :  { %5221 = vmatpush.bf16.msrb.mxu3 %v7537_v36  ;;  %5204 = vmatpush.bf16.msrb.mxu2 %v7417_v34  ;;  %v4759_v4 = vpop.f32.mrf.mxu2 }
 0x272   :  { %5188 = vmatmul.bf16.vlgmr.msrb.gmra.mxu1 %v9045_v54  ;;  %v4760_v59 = vadd.f32 %v4759_v4, %v4741_v8  ;;  %v9054_v4 = vld [vmem:[#allocation26_spill] sm:$0xff] }
 0x273   :  { %v4868_v57 = vpop.f32.mrf.mxu0 }
 0x275   :  { %5222 = vmatpush.bf16.msrb.mxu3 %v7525_v47  ;;  %5205 = vmatpush.bf16.msrb.mxu2 %v7405_v60  ;;  %v4885_v11 = vpop.f32.mrf.mxu1  ;;  %v4778_v9 = vpop.f32.mrf.mxu3  ;;  %v4791_v60 = vadd.f32 %v8907_v30, %v3012_v26 }
 0x276   :  { %v4779_v44 = vadd.f32 %v4778_v9, %v4760_v59 }
 0x277   :  { %v4810_v31 = vadd.f32 %v8925_v62, %v4791_v60  ;;  %v4796_v62 = vadd.f32 %v8950_v32, %v3012_v26 }
 0x278   :  { %5246 = vst [vmem:[#allocation11 + $0x48] sm:$0xff] %v4779_v44 }
 0x279   :  { %5223 = vmatpush.bf16.msrb.mxu3 %v7513_v40  ;;  %5206 = vmatpush.bf16.msrb.mxu2 %v7393_v17  ;;  %v4828_v39 = vpop.f32.mrf.mxu2  ;;  %v4815_v59 = vadd.f32 %v8958_v51, %v4796_v62 }
 0x27a   :  { %5150 = vmatmul.bf16.vlgmr.msra.gmra.mxu3 %v9047_v35  ;;  %v4829_v3 = vadd.f32 %v4828_v39, %v4810_v31 }
 0x27b   :  { %v4871_v37 = vpop.f32.mrf.mxu0 }
 0x27d   :  { %5224 = vmatpush.bf16.msrb.mxu3 %v7501_v7  ;;  %v4887_v1 = vpop.f32.mrf.mxu1  ;;  %v4847_v49 = vpop.f32.mrf.mxu3 }
 0x27e   :  { %v4848_v21 = vadd.f32 %v4847_v49, %v4829_v3 }
 0x280   :  { %5136 = vmatmul.bf16.gmra.mxu2 %v9048_v63  ;;  %v4867_v17 = vadd.f32 %v4866_v28, %v4848_v21 }
 0x281   :  { %5225 = vmatpush.bf16.msrb.mxu3 %v7489_v33  ;;  %v4830_v15 = vpop.f32.mrf.mxu2  ;;  %v4798_v33 = vadd.f32 %v8966_v46, %v3012_v26 }
 0x282   :  { %5193 = vmatmul.bf16.gmra.mxu1 %v9049_v23  ;;  %v4831_v16 = vadd.f32 %v4830_v15, %v4812_v41  ;;  %v4886_v7 = vadd.f32 %v4885_v11, %v4867_v17 }
 0x283   :  { %v4873_v42 = vpop.f32.mrf.mxu0  ;;  %v4817_v11 = vadd.f32 %v8972_v48, %v4798_v33 }
 0x285   :  { %v4849_v50 = vpop.f32.mrf.mxu3  ;;  %v4890_v36 = vpop.f32.mrf.mxu1 }
 0x286   :  { %v4850_v56 = vadd.f32 %v4849_v50, %v4831_v16 }
 0x288   :  { %v4869_v39 = vadd.f32 %v4868_v57, %v4850_v56 }
 0x289   :  { %v4833_v58 = vpop.f32.mrf.mxu2 }
 0x28a   :  { %5155 = vmatmul.bf16.gmra.mxu3 %v9050_v18  ;;  %v4834_v6 = vadd.f32 %v4833_v58, %v4815_v59 }
 0x28b   :  { %v4942_v19 = vpop.f32.mrf.mxu0 }
 0x28d   :  { %v4852_v34 = vpop.f32.mrf.mxu3  ;;  %v8987_v45 = vpop.f32.mrf.mxu1 }
 0x28e   :  { %v4853_v9 = vadd.f32 %v4852_v34, %v4834_v6 }
 0x290   :  { %5207 = vmatmul.bf16.vlgmr.msrb.gmra.mxu2 %v9051_v12  ;;  %v4872_v15 = vadd.f32 %v4871_v37, %v4853_v9 }
 0x291   :  { %v4835_v22 = vpop.f32.mrf.mxu2 }
 0x292   :  { %v4836_v63 = vadd.f32 %v4835_v22, %v4817_v11  ;;  %v4891_v50 = vadd.f32 %v4890_v36, %v4872_v15 }
 0x293   :  { %v4944_v61 = vpop.f32.mrf.mxu0 }
 0x295   :  { %v4854_v24 = vpop.f32.mrf.mxu3  ;;  %v4961_v47 = vpop.f32.mrf.mxu1 }
 0x296   :  { %v4855_v58 = vadd.f32 %v4854_v24, %v4836_v63 }
 0x299   :  { %v4904_v2 = vpop.f32.mrf.mxu2 }
 0x29a   :  { %5226 = vmatmul.bf16.vlgmr.msrb.gmra.mxu3 %v9052_v20  ;;  %v4905_v54 = vadd.f32 %v4904_v2, %v4886_v7  ;;  %v4874_v2 = vadd.f32 %v4873_v42, %v4855_v58 }
 0x29b   :  { %v4947_v55 = vpop.f32.mrf.mxu0 }
 0x29d   :  { %v4923_v25 = vpop.f32.mrf.mxu3  ;;  %v4963_v14 = vpop.f32.mrf.mxu1 }
 0x29e   :  { %v4924_v29 = vadd.f32 %v4923_v25, %v4905_v54 }
 0x2a0   :  { %5212 = vmatmul.bf16.gmra.mxu2 %v9054_v4  ;;  %v4943_v27 = vadd.f32 %v4942_v19, %v4924_v29 }
 0x2a1   :  { %v4906_v38 = vpop.f32.mrf.mxu2 }
 0x2a2   :  { %v4962_v49 = vadd.f32 %v4961_v47, %v4943_v27  ;;  %v4893_v47 = vadd.f32 %v8987_v45, %v4874_v2 }
 0x2a3   :  { %v4949_v10 = vpop.f32.mrf.mxu0 }
 0x2a5   :  { %v4925_v40 = vpop.f32.mrf.mxu3  ;;  %v4966_v8 = vpop.f32.mrf.mxu1 }
 0x2a9   :  { %v4909_v13 = vpop.f32.mrf.mxu2 }
 0x2aa   :  { %5231 = vmatmul.bf16.gmra.mxu3 %v8804_v5  ;;  %v4888_v5 = vadd.f32 %v4887_v1, %v4869_v39  ;;  %v4910_v1 = vadd.f32 %v4909_v13, %v4891_v50 }
 0x2ab   :  { %v5018_v34 = vpop.f32.mrf.mxu0 }
 0x2ac   :  { %v4907_v44 = vadd.f32 %v4906_v38, %v4888_v5 }
 0x2ad   :  { %v4928_v53 = vpop.f32.mrf.mxu3  ;;  %v4968_v35 = vpop.f32.mrf.mxu1 }
 0x2ae   :  { %v4926_v32 = vadd.f32 %v4925_v40, %v4907_v44  ;;  %v4929_v46 = vadd.f32 %v4928_v53, %v4910_v1 }
 0x2b0   :  { %v4945_v18 = vadd.f32 %v4944_v61, %v4926_v32  ;;  %v4948_v22 = vadd.f32 %v4947_v55, %v4929_v46 }
 0x2b1   :  { %v4911_v30 = vpop.f32.mrf.mxu2 }
 0x2b2   :  { %v4964_v20 = vadd.f32 %v4963_v14, %v4945_v18  ;;  %v4912_v25 = vadd.f32 %v4911_v30, %v4893_v47  ;;  %v4967_v60 = vadd.f32 %v4966_v8, %v4948_v22 }
 0x2b3   :  { %v5020_v24 = vpop.f32.mrf.mxu0 }
 0x2b5   :  { %v4930_v28 = vpop.f32.mrf.mxu3  ;;  %v5037_v19 = vpop.f32.mrf.mxu1 }
 0x2b6   :  { %v4931_v36 = vadd.f32 %v4930_v28, %v4912_v25  ;;  %v3013_v28 = vperm.slane %v9053_v43, 2 }
 0x2b8   :  { %v4950_v42 = vadd.f32 %v4949_v10, %v4931_v36  ;;  %v5019_v33 = vadd.f32 %v5018_v34, %v3013_v28  ;;  %v5021_v63 = vadd.f32 %v5020_v24, %v3013_v28 }
 0x2b9   :  { %v4980_v52 = vpop.f32.mrf.mxu2 }
 0x2ba   :  { %v4981_v51 = vadd.f32 %v4980_v52, %v4962_v49  ;;  %v4969_v14 = vadd.f32 %v4968_v35, %v4950_v42  ;;  %v5038_v44 = vadd.f32 %v5037_v19, %v5019_v33 }
 0x2bb   :  { %v5023_v40 = vpop.f32.mrf.mxu0 }
 0x2bc   :  { %v5024_v2 = vadd.f32 %v5023_v40, %v3013_v28 }
 0x2bd   :  { %v4999_v23 = vpop.f32.mrf.mxu3  ;;  %v5039_v61 = vpop.f32.mrf.mxu1 }
 0x2be   :  { %v5000_v12 = vadd.f32 %v4999_v23, %v4981_v51 }
 0x2c0   :  { %5238 = vst [vmem:[#allocation11 + $0x8] sm:$0xff] %v5000_v12 }
 0x2c1   :  { %v4982_v57 = vpop.f32.mrf.mxu2 }
 0x2c2   :  { %v4983_v26 = vadd.f32 %v4982_v57, %v4964_v20  ;;  %v5040_v57 = vadd.f32 %v5039_v61, %v5021_v63 }
 0x2c3   :  { %v5025_v16 = vpop.f32.mrf.mxu0 }
 0x2c4   :  { %v5026_v24 = vadd.f32 %v5025_v16, %v3013_v28 }
 0x2c5   :  { %v5001_v37 = vpop.f32.mrf.mxu3  ;;  %v5042_v45 = vpop.f32.mrf.mxu1 }
 0x2c6   :  { %v5002_v38 = vadd.f32 %v5001_v37, %v4983_v26  ;;  %v5043_v20 = vadd.f32 %v5042_v45, %v5024_v2 }
 0x2c8   :  { %5241 = vst [vmem:[#allocation11 + $0x20] sm:$0xff] %v5002_v38 }
 0x2c9   :  { %v4985_v48 = vpop.f32.mrf.mxu2 }
 0x2ca   :  { %v4986_v4 = vadd.f32 %v4985_v48, %v4967_v60 }
 0x2cb   :  { %v5094_v8 = vpop.f32.mrf.mxu0 }
 0x2cd   :  { %v5004_v3 = vpop.f32.mrf.mxu3  ;;  %v5044_v53 = vpop.f32.mrf.mxu1 }
 0x2ce   :  { %v5005_v13 = vadd.f32 %v5004_v3, %v4986_v4  ;;  %v5045_v61 = vadd.f32 %v5044_v53, %v5026_v24 }
 0x2d0   :  { %5244 = vst [vmem:[#allocation11 + $0x38] sm:$0xff] %v5005_v13 }
 0x2d1   :  { %v4987_v31 = vpop.f32.mrf.mxu2 }
 0x2d2   :  { %v4988_v21 = vadd.f32 %v4987_v31, %v4969_v14 }
 0x2d3   :  { %v5096_v39 = vpop.f32.mrf.mxu0 }
 0x2d5   :  { %v5006_v41 = vpop.f32.mrf.mxu3  ;;  %v5113_v62 = vpop.f32.mrf.mxu1 }
 0x2d6   :  { %v5007_v17 = vadd.f32 %v5006_v41, %v4988_v21 }
 0x2d8   :  { %5247 = vst [vmem:[#allocation11 + $0x50] sm:$0xff] %v5007_v17 }
 0x2d9   :  { %v5056_v0 = vpop.f32.mrf.mxu2 }
 0x2da   :  { %v5057_v35 = vadd.f32 %v5056_v0, %v5038_v44 }
 0x2db   :  { %v5099_v10 = vpop.f32.mrf.mxu0 }
 0x2dd   :  { %v5075_v30 = vpop.f32.mrf.mxu3  ;;  %v5115_v29 = vpop.f32.mrf.mxu1 }
 0x2de   :  { %v5076_v49 = vadd.f32 %v5075_v30, %v5057_v35 }
 0x2e0   :  { %v5095_v23 = vadd.f32 %v5094_v8, %v5076_v49 }
 0x2e1   :  { %v5058_v55 = vpop.f32.mrf.mxu2 }
 0x2e2   :  { %v5059_v58 = vadd.f32 %v5058_v55, %v5040_v57  ;;  %v5114_v1 = vadd.f32 %v5113_v62, %v5095_v23 }
 0x2e3   :  { %v5101_v15 = vpop.f32.mrf.mxu0 }
 0x2e5   :  { %v5077_v7 = vpop.f32.mrf.mxu3  ;;  %v5118_v27 = vpop.f32.mrf.mxu1 }
 0x2e6   :  { %v5078_v12 = vadd.f32 %v5077_v7, %v5059_v58 }
 0x2e8   :  { %v5097_v34 = vadd.f32 %v5096_v39, %v5078_v12 }
 0x2e9   :  { %v5061_v56 = vpop.f32.mrf.mxu2 }
 0x2ea   :  { %v5062_v48 = vadd.f32 %v5061_v56, %v5043_v20  ;;  %v5116_v38 = vadd.f32 %v5115_v29, %v5097_v34 }
 0x2eb   :  { %v5170_v43 = vpop.f32.mrf.mxu0 }
 0x2ed   :  { %v5080_v59 = vpop.f32.mrf.mxu3  ;;  %v5120_v51 = vpop.f32.mrf.mxu1 }
 0x2ee   :  { %v5081_v22 = vadd.f32 %v5080_v59, %v5062_v48 }
 0x2f0   :  { %v5100_v4 = vadd.f32 %v5099_v10, %v5081_v22 }
 0x2f1   :  { %v5063_v54 = vpop.f32.mrf.mxu2 }
 0x2f2   :  { %v5064_v42 = vadd.f32 %v5063_v54, %v5045_v61  ;;  %v5119_v41 = vadd.f32 %v5118_v27, %v5100_v4 }
 0x2f3   :  { %v5172_v60 = vpop.f32.mrf.mxu0 }
 0x2f5   :  { %v5082_v52 = vpop.f32.mrf.mxu3  ;;  %v5189_v19 = vpop.f32.mrf.mxu1 }
 0x2f6   :  { %v5083_v0 = vadd.f32 %v5082_v52, %v5064_v42 }
 0x2f8   :  { %v5102_v30 = vadd.f32 %v5101_v15, %v5083_v0 }
 0x2f9   :  { %v5132_v6 = vpop.f32.mrf.mxu2 }
 0x2fa   :  { %v5133_v46 = vadd.f32 %v5132_v6, %v5114_v1  ;;  %v5121_v62 = vadd.f32 %v5120_v51, %v5102_v30 }
 0x2fb   :  { %v5175_v7 = vpop.f32.mrf.mxu0 }
 0x2fd   :  { %v5151_v5 = vpop.f32.mrf.mxu3  ;;  %v5191_v13 = vpop.f32.mrf.mxu1 }
 0x2fe   :  { %v5152_v26 = vadd.f32 %v5151_v5, %v5133_v46 }
 0x300   :  { %v5171_v25 = vadd.f32 %v5170_v43, %v5152_v26 }
 0x301   :  { %v5134_v9 = vpop.f32.mrf.mxu2 }
 0x302   :  { %v5135_v36 = vadd.f32 %v5134_v9, %v5116_v38  ;;  %v5190_v3 = vadd.f32 %v5189_v19, %v5171_v25 }
 0x303   :  { %v5177_v9 = vpop.f32.mrf.mxu0 }
 0x305   :  { %v5153_v32 = vpop.f32.mrf.mxu3  ;;  %v5194_v54 = vpop.f32.mrf.mxu1 }
 0x306   :  { %v5154_v31 = vadd.f32 %v5153_v32, %v5135_v36 }
 0x308   :  { %v5173_v45 = vadd.f32 %v5172_v60, %v5154_v31 }
 0x309   :  { %v5137_v11 = vpop.f32.mrf.mxu2 }
 0x30a   :  { %v5138_v55 = vadd.f32 %v5137_v11, %v5119_v41  ;;  %v5192_v16 = vadd.f32 %v5191_v13, %v5173_v45 }
 0x30d   :  { %v5156_v18 = vpop.f32.mrf.mxu3  ;;  %v5196_v44 = vpop.f32.mrf.mxu1 }
 0x30e   :  { %v5157_v56 = vadd.f32 %v5156_v18, %v5138_v55 }
 0x310   :  { %v5176_v59 = vadd.f32 %v5175_v7, %v5157_v56 }
 0x311   :  { %v5139_v50 = vpop.f32.mrf.mxu2 }
 0x312   :  { %v5140_v6 = vadd.f32 %v5139_v50, %v5121_v62  ;;  %v5195_v52 = vadd.f32 %v5194_v54, %v5176_v59 }
 0x315   :  { %v5158_v47 = vpop.f32.mrf.mxu3 }
 0x316   :  { %v5159_v10 = vadd.f32 %v5158_v47, %v5140_v6 }
 0x318   :  { %v5178_v27 = vadd.f32 %v5177_v9, %v5159_v10 }
 0x319   :  { %v5208_v37 = vpop.f32.mrf.mxu2 }
 0x31a   :  { %v5209_v14 = vadd.f32 %v5208_v37, %v5190_v3  ;;  %v5197_v11 = vadd.f32 %v5196_v44, %v5178_v27 }
 0x31d   :  { %v5227_v21 = vpop.f32.mrf.mxu3 }
 0x31e   :  { %v5228_v17 = vadd.f32 %v5227_v21, %v5209_v14 }
 0x320   :  { %5239 = vst [vmem:[#allocation11 + $0x10] sm:$0xff] %v5228_v17 }
 0x321   :  { %v5210_v40 = vpop.f32.mrf.mxu2 }
 0x322   :  { %v5211_v8 = vadd.f32 %v5210_v40, %v5192_v16 }
 0x325   :  { %v5229_v53 = vpop.f32.mrf.mxu3 }
 0x326   :  { %v5230_v39 = vadd.f32 %v5229_v53, %v5211_v8 }
 0x328   :  { %5242 = vst [vmem:[#allocation11 + $0x28] sm:$0xff] %v5230_v39 }
 0x329   :  { %v5213_v29 = vpop.f32.mrf.mxu2 }
 0x32a   :  { %v5214_v28 = vadd.f32 %v5213_v29, %v5195_v52 }
 0x32d   :  { %v5232_v5 = vpop.f32.mrf.mxu3 }
 0x32e   :  { %v5233_v33 = vadd.f32 %v5232_v5, %v5214_v28 }
 0x330   :  { %5245 = vst [vmem:[#allocation11 + $0x40] sm:$0xff] %v5233_v33 }
 0x331   :  { %v5215_v35 = vpop.f32.mrf.mxu2 }
 0x332   :  { %v5216_v15 = vadd.f32 %v5215_v35, %v5197_v11 }
 0x335   :  { %v5234_v32 = vpop.f32.mrf.mxu3 }
 0x336   :  { %v5235_v49 = vadd.f32 %v5234_v32, %v5216_v15 }
 0x338   :  { %5248 = vst [vmem:[#allocation11 + $0x58] sm:$0xff] %v5235_v49 }
 0x339   :  { %5261 = dma.vmem_to_hbm [thread:$0]  %s5254_s4, 1536, %s5256_s23, [#allocation4], %s8322_s13, %s8322_s13, %s8323_s14  }
 0x33a   :  { %8313 = dma.done.wait [#allocation4], 1536  }
 0x33b   :  { %8314 = vsyncadd [#allocation4], 4294965760 }
 0x33c   :  { %5266 = vsyncpa [#allocation3], 1 }
 0x33d   :  { %5267 = vsyncpa [#allocation6], 1 }
 0x33e   :  { %5268 = vsyncpa [#allocation9], 1 }
 0x33f   :  { %5269 = vsyncpa [#allocation4], 1 }

</bundles_post_ra>
